<compile_context>
chip_gen: v7x
topology: tpu7x:2x2x1
jax: 0.10.0
libtpu: 0.0.40
codegen_flags: <defaults>
</compile_context>

<pallas_src>
import functools
import math

import jax
import jax.numpy as jnp
from jax import lax
from jax.experimental import pallas as pl
from jax.experimental.pallas import tpu as pltpu


# ---------------------------------------------------------------------------
# Kernel 1: pairwise squared distances  d[b, i, j] = ||x_i - x_j||^2
# ---------------------------------------------------------------------------
def _sqdist_kernel(xr_ref, xa_ref, cn_ref, d_ref):
    xr = xr_ref[0]            # (TV, E) f32  -- query rows of this tile
    xa = xa_ref[0]            # (V,  E) f32  -- all points of this batch
    # xr @ xa.T on the MXU (contraction over the feature dim of both).
    dots = lax.dot_general(xr, xa, (((1,), (1,)), ((), ())),
                           preferred_element_type=jnp.float32)     # (TV, V)
    rn = jnp.sum(xr * xr, axis=1, keepdims=True)                   # (TV, 1)
    d_ref[0] = rn - 2.0 * dots + cn_ref[0]                         # + (1, V)


def _pairwise_sqdist(x, *, tv=128):
    """x: (B, V, E) f32 -> (B, V, V) f32 squared distances."""
    B, V, E = x.shape
    tv = min(tv, V)
    assert V % tv == 0, "V must be a multiple of the row tile tv"
    col_norms = jnp.sum(x * x, axis=-1)[:, None, :]                # (B, 1, V)

    return pl.pallas_call(
        _sqdist_kernel,
        out_shape=jax.ShapeDtypeStruct((B, V, V), jnp.float32),
        grid_spec=pltpu.PrefetchScalarGridSpec(
            num_scalar_prefetch=0,
            grid=(B, V // tv),
            in_specs=[
                pl.BlockSpec((1, tv, E), lambda b, i: (b, i, 0)),  # row tile
                pl.BlockSpec((1, V, E), lambda b, i: (b, 0, 0)),   # all points
                pl.BlockSpec((1, 1, V), lambda b, i: (b, 0, 0)),   # col norms
            ],
            out_specs=pl.BlockSpec((1, tv, V), lambda b, i: (b, i, 0)),
        ),
        compiler_params=pltpu.CompilerParams(
            dimension_semantics=("parallel", "parallel")),
    )(x, x, col_norms)


# ---------------------------------------------------------------------------
# Kernel 2: fused per-point multi-head attention over the K gathered
# neighbours + residual.  One grid step handles `tm` points.
# ---------------------------------------------------------------------------
def _mha_knn_attn_kernel(x_ref, kk_ref, wq_ref, wk_ref, wv_ref, wo_ref,
                         hmask_ref, o_ref, *, scale):
    knn = kk_ref.shape[0]
    x_f32 = x_ref[...]                           # (TM, E) f32 (also residual)
    x_bf = x_f32.astype(jnp.bfloat16)
    hmask = hmask_ref[...]                       # (E, E) f32 block-diag head mask

    # q projection (bf16 MXU inputs, f32 accumulate), pre-scaled by 1/sqrt(Dh)
    q_p = jnp.dot(x_bf, wq_ref[...],
                  preferred_element_type=jnp.float32) * scale      # (TM, E)

    s_list = []                                  # per-neighbour head scores
    v_list = []                                  # per-neighbour projected values
    for j in range(knn):                         # K is small & static -> unrolled
        k_j = kk_ref[j]                          # (TM, E) bf16
        v_j = k_j - x_bf                         # direction vector (use_direction)
        k_p = jnp.dot(k_j, wk_ref[...], preferred_element_type=jnp.float32)
        v_p = jnp.dot(v_j, wv_ref[...], preferred_element_type=jnp.float32)
        # per-head score, broadcast across that head's lanes:
        #   s[n, e] = sum_{e' in head(e)} q_p[n, e'] * k_p[n, e']
        s_full = jnp.dot(q_p * k_p, hmask, preferred_element_type=jnp.float32)
        s_list.append(s_full)
        v_list.append(v_p)

    # softmax over the K neighbours (computed across the unrolled list)
    m = s_list[0]
    for j in range(1, knn):
        m = jnp.maximum(m, s_list[j])
    e_list = [jnp.exp(s - m) for s in s_list]
    denom = e_list[0]
    for j in range(1, knn):
        denom = denom + e_list[j]
    inv = pl.reciprocal(denom, approx=True)      # EUP, ~free slot

    acc = e_list[0] * inv * v_list[0]
    for j in range(1, knn):
        acc = acc + e_list[j] * inv * v_list[j]  # (TM, E) f32

    out = jnp.dot(acc.astype(jnp.bfloat16), wo_ref[...],
                  preferred_element_type=jnp.float32)
    o_ref[...] = (x_f32 + out).astype(o_ref.dtype)   # residual add, lane-dense


def _fused_knn_attention(x_flat, kk_t, wq, wk, wv, wo, *, num_heads, tm=256):
    """x_flat: (N, E) f32, kk_t: (K, N, E) bf16, weights: (E, E) f32 (torch layout).

    Returns (N, E) f32 = x + MHA(q=x, k=neighbours, v=neighbours - x).
    """
    N, E = x_flat.shape
    K = kk_t.shape[0]
    assert E % num_heads == 0
    head_dim = E // num_heads

    tm = min(tm, N)
    assert tm % 16 == 0, "tm must be a multiple of 16 (bf16 sublane packing)"
    n_pad = pl.cdiv(N, tm) * tm
    if n_pad != N:   # avoided on the hot path by choosing tm | N
        x_flat = jnp.pad(x_flat, ((0, n_pad - N), (0, 0)))
        kk_t = jnp.pad(kk_t, ((0, 0), (0, n_pad - N), (0, 0)))

    # Block-diagonal head mask: hmask[e', e] = 1 iff e', e belong to the same head.
    heads = jnp.arange(E) // head_dim
    hmask = (heads[:, None] == heads[None, :]).astype(jnp.float32)

    # Pre-transpose weights so the kernel does plain x @ W^T, cast to bf16 for MXU.
    wq_t = wq.T.astype(jnp.bfloat16)
    wk_t = wk.T.astype(jnp.bfloat16)
    wv_t = wv.T.astype(jnp.bfloat16)
    wo_t = wo.T.astype(jnp.bfloat16)

    kernel = functools.partial(_mha_knn_attn_kernel,
                               scale=1.0 / math.sqrt(head_dim))

    out = pl.pallas_call(
        kernel,
        out_shape=jax.ShapeDtypeStruct((n_pad, E), jnp.float32),
        grid_spec=pltpu.PrefetchScalarGridSpec(
            num_scalar_prefetch=0,
            grid=(n_pad // tm,),
            in_specs=[
                pl.BlockSpec((tm, E), lambda i: (i, 0)),          # x rows (f32)
                pl.BlockSpec((K, tm, E), lambda i: (0, i, 0)),    # neighbours (bf16)
                pl.BlockSpec((E, E), lambda i: (0, 0)),           # Wq^T
                pl.BlockSpec((E, E), lambda i: (0, 0)),           # Wk^T
                pl.BlockSpec((E, E), lambda i: (0, 0)),           # Wv^T
                pl.BlockSpec((E, E), lambda i: (0, 0)),           # Wo^T
                pl.BlockSpec((E, E), lambda i: (0, 0)),           # head mask
            ],
            out_specs=pl.BlockSpec((tm, E), lambda i: (i, 0)),
        ),
        compiler_params=pltpu.CompilerParams(
            dimension_semantics=("parallel",),       # shards rows across v7x TCs
            vmem_limit_bytes=48 * 1024 * 1024,       # safe on v5e/v6e/v7x
        ),
        # TODO(synk): for very large E (f32 W > VMEM budget) add a K(feature)
        # grid axis with an f32 VMEM accumulator instead of resident weights.
    )(x_flat, kk_t, wq_t, wk_t, wv_t, wo_t, hmask)
    return out[:N]


# ---------------------------------------------------------------------------
# Full MHA_KNN forward (default flags: returns x + attention output)
# ---------------------------------------------------------------------------
def mha_knn_forward(x, wq, wk, wv, wo, *, num_heads, K, tm=256, tv=128):
    B, V, E = x.shape
    # 1) pairwise squared distances (Pallas, MXU)
    d = _pairwise_sqdist(x, tv=tv)
    # 2) K nearest neighbours, sorted ascending (self included at slot 0)
    # TODO(synk): top-k selection + data-dependent gather stay in JAX glue;
    # a Pallas version would need manual DMA gather.
    idx = lax.top_k(-d, K)[1]                                     # (B, V, K)
    kk = jax.vmap(lambda xb, ib: xb[ib])(x, idx)                  # (B, V, K, E)
    # neighbour-major layout (K, B*V, E) -> dense (TM, E) slices in the kernel;
    # bf16 halves the dominant HBM stream of this memory-bound kernel.
    kk_t = kk.transpose(2, 0, 1, 3).reshape(K, B * V, E).astype(jnp.bfloat16)
    # 3) fused projections + per-head softmax over K + out-proj + residual
    out_flat = _fused_knn_attention(x.reshape(B * V, E), kk_t,
                                    wq, wk, wv, wo, num_heads=num_heads, tm=tm)
    return out_flat.reshape(B, V, E)
    # TODO(synk): return_weights scatter_add path, return_v, the random=True
    # branch and train-mode attention dropout are not implemented (module
    # defaults return only x; dropout is identity in eval mode).


# ---------------------------------------------------------------------------
# Pure-JAX f32 reference mirroring the PyTorch module semantics
# ---------------------------------------------------------------------------
def mha_knn_reference(x, wq, wk, wv, wo, *, num_heads, K):
    B, V, E = x.shape
    H = num_heads
    Dh = E // H
    sq = jnp.sum(x * x, axis=-1)
    d = sq[:, :, None] - 2.0 * jnp.einsum("bie,bje->bij", x, x) + sq[:, None, :]
    idx = lax.top_k(-d, K)[1]
    k = jax.vmap(lambda xb, ib: xb[ib])(x, idx)                   # (B, V, K, E)
    q = x[:, :, None, :]
    v = k - q
    N = B * V
    qf = q.reshape(N, 1, E) @ wq.T
    kf = k.reshape(N, K, E) @ wk.T
    vf = v.reshape(N, K, E) @ wv.T
    qh = qf.reshape(N, 1, H, Dh).transpose(0, 2, 1, 3)
    kh = kf.reshape(N, K, H, Dh).transpose(0, 2, 1, 3)
    vh = vf.reshape(N, K, H, Dh).transpose(0, 2, 1, 3)
    s = jnp.einsum("nhqd,nhkd->nhqk", qh, kh) / math.sqrt(Dh)
    w = jax.nn.softmax(s, axis=-1)
    o = jnp.einsum("nhqk,nhkd->nhqd", w, vh)
    o = o.transpose(0, 2, 1, 3).reshape(N, 1, E) @ wo.T
    return x + o.reshape(B, V, E)


if __name__ == "__main__":
    # Small, lane-aligned demo shapes: B=2, V=128 points, embed_dim=128,
    # num_heads=4, K=6 neighbours.
    B, V, E, H, K = 2, 128, 128, 4, 6
    key = jax.random.PRNGKey(0)
    kx, k1, k2, k3, k4 = jax.random.split(key, 5)
    x = jax.random.normal(kx, (B, V, E), jnp.float32)
    s = 1.0 / math.sqrt(E)
    wq = jax.random.normal(k1, (E, E), jnp.float32) * s
    wk = jax.random.normal(k2, (E, E), jnp.float32) * s
    wv = jax.random.normal(k3, (E, E), jnp.float32) * s
    wo = jax.random.normal(k4, (E, E), jnp.float32) * s

    fwd = jax.jit(functools.partial(mha_knn_forward,
                                    num_heads=H, K=K, tm=128, tv=128))
    y = jax.block_until_ready(fwd(x, wq, wk, wv, wo))

    y_ref = mha_knn_reference(x, wq, wk, wv, wo, num_heads=H, K=K)
    assert y.shape == (B, V, E), y.shape
    rel_l2 = jnp.linalg.norm(y - y_ref) / jnp.linalg.norm(y_ref)
    assert rel_l2 < 3e-2, rel_l2            # bf16 MXU vs f32 reference
    assert jnp.allclose(y, y_ref, atol=1e-1, rtol=1e-1)

    print("KERNEL_OK")
</pallas_src>

<mosaic_0001>
module attributes {stable_mosaic.version = 11 : i64} {
  func.func @_sqdist_kernel(%arg0: i32, %arg1: i32, %arg2: memref<1x128x128xf32, #tpu.memory_space<vmem>>, %arg3: memref<1x128x128xf32, #tpu.memory_space<vmem>>, %arg4: memref<1x1x128xf32, #tpu.memory_space<vmem>>, %arg5: memref<1x128x128xf32, #tpu.memory_space<vmem>>) attributes {dimension_semantics = [#tpu.dimension_semantics<parallel>, #tpu.dimension_semantics<parallel>], iteration_bounds = array<i64: 2, 1>, scalar_prefetch = 0 : i64, scratch_operands = 0 : i64, tpu.core_type = #tpu.core_type<tc>, window_params = [{transform_indices = @transform_0, window_bounds = array<i64: 1, 128, 128>}, {transform_indices = @transform_1, window_bounds = array<i64: 1, 128, 128>}, {transform_indices = @transform_2, window_bounds = array<i64: 1, 1, 128>}, {transform_indices = @transform_3, window_bounds = array<i64: 1, 128, 128>}]} {
    %c0 = arith.constant 0 : index
    %c0_0 = arith.constant 0 : index
    %c0_1 = arith.constant 0 : index
    %0 = vector.load %arg2[%c0, %c0_0, %c0_1] : memref<1x128x128xf32, #tpu.memory_space<vmem>>, vector<1x128x128xf32>
    %1 = vector.shape_cast %0 : vector<1x128x128xf32> to vector<128x128xf32>
    %c0_2 = arith.constant 0 : index
    %c0_3 = arith.constant 0 : index
    %c0_4 = arith.constant 0 : index
    %2 = vector.load %arg3[%c0_2, %c0_3, %c0_4] : memref<1x128x128xf32, #tpu.memory_space<vmem>>, vector<1x128x128xf32>
    %3 = vector.shape_cast %2 : vector<1x128x128xf32> to vector<128x128xf32>
    %cst = arith.constant dense<0.000000e+00> : vector<128x128xf32>
    %4 = tpu.matmul %1, %3, %cst {dimension_numbers = #tpu.dot_dimension_numbers<[1], [1], [0], [0], [0, 0, 1, 0], [], []>} : vector<128x128xf32>, vector<128x128xf32>, vector<128x128xf32> -> vector<128x128xf32>
    %5 = arith.mulf %1, %1 : vector<128x128xf32>
    %cst_5 = arith.constant dense<0.000000e+00> : vector<128xf32>
    %6 = vector.multi_reduction <add>, %5, %cst_5 [1] : vector<128x128xf32> to vector<128xf32>
    %7 = vector.shape_cast %6 : vector<128xf32> to vector<128x1xf32>
    %cst_6 = arith.constant 2.000000e+00 : f32
    %8 = vector.broadcast %cst_6 : f32 to vector<128x128xf32>
    %9 = arith.mulf %8, %4 : vector<128x128xf32>
    %10 = vector.broadcast %7 : vector<128x1xf32> to vector<128x128xf32>
    %11 = arith.subf %10, %9 : vector<128x128xf32>
    %c0_7 = arith.constant 0 : index
    %c0_8 = arith.constant 0 : index
    %c0_9 = arith.constant 0 : index
    %12 = vector.load %arg4[%c0_7, %c0_8, %c0_9] : memref<1x1x128xf32, #tpu.memory_space<vmem>>, vector<1x1x128xf32>
    %13 = vector.shape_cast %12 : vector<1x1x128xf32> to vector<1x128xf32>
    %14 = vector.broadcast %13 : vector<1x128xf32> to vector<128x128xf32>
    %15 = arith.addf %11, %14 : vector<128x128xf32>
    %c0_10 = arith.constant 0 : index
    %c0_11 = arith.constant 0 : index
    %c0_12 = arith.constant 0 : index
    %16 = vector.load %arg5[%c0_10, %c0_11, %c0_12] : memref<1x128x128xf32, #tpu.memory_space<vmem>>, vector<1x128x128xf32>
    %17 = vector.shape_cast %16 : vector<1x128x128xf32> to vector<128x128xf32>
    %18 = vector.shape_cast %15 : vector<128x128xf32> to vector<1x128x128xf32>
    tpu.vector_store %arg5[%c0_10, %c0_11, %c0_12], %18 {strides = array<i32>} : memref<1x128x128xf32, #tpu.memory_space<vmem>>, vector<1x128x128xf32>,
    return
  }
  func.func @transform_0(%arg0: i32, %arg1: i32) -> (i32, i32, i32) {
    %c0_i32 = arith.constant 0 : i32
    %c0_i32_0 = arith.constant 0 : i32
    return %arg0, %arg1, %c0_i32 : i32, i32, i32
  }
  func.func @transform_1(%arg0: i32, %arg1: i32) -> (i32, i32, i32) {
    %c0_i32 = arith.constant 0 : i32
    %c0_i32_0 = arith.constant 0 : i32
    %c0_i32_1 = arith.constant 0 : i32
    return %arg0, %c0_i32, %c0_i32_0 : i32, i32, i32
  }
  func.func @transform_2(%arg0: i32, %arg1: i32) -> (i32, i32, i32) {
    %c0_i32 = arith.constant 0 : i32
    %c0_i32_0 = arith.constant 0 : i32
    %c0_i32_1 = arith.constant 0 : i32
    return %arg0, %c0_i32, %c0_i32_0 : i32, i32, i32
  }
  func.func @transform_3(%arg0: i32, %arg1: i32) -> (i32, i32, i32) {
    %c0_i32 = arith.constant 0 : i32
    %c0_i32_0 = arith.constant 0 : i32
    return %arg0, %arg1, %c0_i32 : i32, i32, i32
  }
}

module attributes {stable_mosaic.version = 11 : i64} {
  func.func @_mha_knn_attn_kernel(%arg0: i32, %arg1: memref<128x128xf32, #tpu.memory_space<vmem>>, %arg2: memref<6x128x128xbf16, #tpu.memory_space<vmem>>, %arg3: memref<128x128xbf16, #tpu.memory_space<vmem>>, %arg4: memref<128x128xbf16, #tpu.memory_space<vmem>>, %arg5: memref<128x128xbf16, #tpu.memory_space<vmem>>, %arg6: memref<128x128xbf16, #tpu.memory_space<vmem>>, %arg7: memref<128x128xf32, #tpu.memory_space<vmem>>, %arg8: memref<128x128xf32, #tpu.memory_space<vmem>>) attributes {dimension_semantics = [#tpu.dimension_semantics<parallel>], iteration_bounds = array<i64: 2>, scalar_prefetch = 0 : i64, scratch_operands = 0 : i64, tpu.core_type = #tpu.core_type<tc>, window_params = [{transform_indices = @transform_0, window_bounds = array<i64: 128, 128>}, {transform_indices = @transform_1, window_bounds = array<i64: 6, 128, 128>}, {pipeline_mode = #tpu.pipeline_mode<synchronous>, transform_indices = @transform_2, window_bounds = array<i64: 128, 128>}, {pipeline_mode = #tpu.pipeline_mode<synchronous>, transform_indices = @transform_3, window_bounds = array<i64: 128, 128>}, {pipeline_mode = #tpu.pipeline_mode<synchronous>, transform_indices = @transform_4, window_bounds = array<i64: 128, 128>}, {pipeline_mode = #tpu.pipeline_mode<synchronous>, transform_indices = @transform_5, window_bounds = array<i64: 128, 128>}, {pipeline_mode = #tpu.pipeline_mode<synchronous>, transform_indices = @transform_6, window_bounds = array<i64: 128, 128>}, {transform_indices = @transform_7, window_bounds = array<i64: 128, 128>}]} {
    %c0 = arith.constant 0 : index
    %c0_0 = arith.constant 0 : index
    %0 = vector.load %arg1[%c0, %c0_0] : memref<128x128xf32, #tpu.memory_space<vmem>>, vector<128x128xf32>
    %1 = arith.truncf %0 : vector<128x128xf32> to vector<128x128xbf16>
    %c0_1 = arith.constant 0 : index
    %c0_2 = arith.constant 0 : index
    %2 = vector.load %arg7[%c0_1, %c0_2] : memref<128x128xf32, #tpu.memory_space<vmem>>, vector<128x128xf32>
    %c0_3 = arith.constant 0 : index
    %c0_4 = arith.constant 0 : index
    %3 = vector.load %arg3[%c0_3, %c0_4] : memref<128x128xbf16, #tpu.memory_space<vmem>>, vector<128x128xbf16>
    %cst = arith.constant dense<0.000000e+00> : vector<128x128xf32>
    %4 = tpu.matmul %1, %3, %cst {dimension_numbers = #tpu.dot_dimension_numbers<[1], [0], [0], [1], [0, 0, 1, 1], [], []>} : vector<128x128xbf16>, vector<128x128xbf16>, vector<128x128xf32> -> vector<128x128xf32>
    %cst_5 = arith.constant 0.176776692 : f32
    %5 = vector.broadcast %cst_5 : f32 to vector<128x128xf32>
    %6 = arith.mulf %4, %5 : vector<128x128xf32>
    %c0_6 = arith.constant 0 : index
    %c0_7 = arith.constant 0 : index
    %c0_8 = arith.constant 0 : index
    %7 = vector.load %arg2[%c0_6, %c0_7, %c0_8] : memref<6x128x128xbf16, #tpu.memory_space<vmem>>, vector<1x128x128xbf16>
    %8 = vector.shape_cast %7 : vector<1x128x128xbf16> to vector<128x128xbf16>
    %9 = arith.subf %8, %1 : vector<128x128xbf16>
    %c0_9 = arith.constant 0 : index
    %c0_10 = arith.constant 0 : index
    %10 = vector.load %arg4[%c0_9, %c0_10] : memref<128x128xbf16, #tpu.memory_space<vmem>>, vector<128x128xbf16>
    %cst_11 = arith.constant dense<0.000000e+00> : vector<128x128xf32>
    %11 = tpu.matmul %8, %10, %cst_11 {dimension_numbers = #tpu.dot_dimension_numbers<[1], [0], [0], [1], [0, 0, 1, 1], [], []>} : vector<128x128xbf16>, vector<128x128xbf16>, vector<128x128xf32> -> vector<128x128xf32>
    %c0_12 = arith.constant 0 : index
    %c0_13 = arith.constant 0 : index
    %12 = vector.load %arg5[%c0_12, %c0_13] : memref<128x128xbf16, #tpu.memory_space<vmem>>, vector<128x128xbf16>
    %cst_14 = arith.constant dense<0.000000e+00> : vector<128x128xf32>
    %13 = tpu.matmul %9, %12, %cst_14 {dimension_numbers = #tpu.dot_dimension_numbers<[1], [0], [0], [1], [0, 0, 1, 1], [], []>} : vector<128x128xbf16>, vector<128x128xbf16>, vector<128x128xf32> -> vector<128x128xf32>
    %14 = arith.mulf %6, %11 : vector<128x128xf32>
    %cst_15 = arith.constant dense<0.000000e+00> : vector<128x128xf32>
    %15 = tpu.matmul %14, %2, %cst_15 {dimension_numbers = #tpu.dot_dimension_numbers<[1], [0], [0], [1], [0, 0, 1, 1], [], []>} : vector<128x128xf32>, vector<128x128xf32>, vector<128x128xf32> -> vector<128x128xf32>
    %c1 = arith.constant 1 : index
    %c0_16 = arith.constant 0 : index
    %c0_17 = arith.constant 0 : index
    %16 = vector.load %arg2[%c1, %c0_16, %c0_17] : memref<6x128x128xbf16, #tpu.memory_space<vmem>>, vector<1x128x128xbf16>
    %17 = vector.shape_cast %16 : vector<1x128x128xbf16> to vector<128x128xbf16>
    %18 = arith.subf %17, %1 : vector<128x128xbf16>
    %c0_18 = arith.constant 0 : index
    %c0_19 = arith.constant 0 : index
    %19 = vector.load %arg4[%c0_18, %c0_19] : memref<128x128xbf16, #tpu.memory_space<vmem>>, vector<128x128xbf16>
    %cst_20 = arith.constant dense<0.000000e+00> : vector<128x128xf32>
    %20 = tpu.matmul %17, %19, %cst_20 {dimension_numbers = #tpu.dot_dimension_numbers<[1], [0], [0], [1], [0, 0, 1, 1], [], []>} : vector<128x128xbf16>, vector<128x128xbf16>, vector<128x128xf32> -> vector<128x128xf32>
    %c0_21 = arith.constant 0 : index
    %c0_22 = arith.constant 0 : index
    %21 = vector.load %arg5[%c0_21, %c0_22] : memref<128x128xbf16, #tpu.memory_space<vmem>>, vector<128x128xbf16>
    %cst_23 = arith.constant dense<0.000000e+00> : vector<128x128xf32>
    %22 = tpu.matmul %18, %21, %cst_23 {dimension_numbers = #tpu.dot_dimension_numbers<[1], [0], [0], [1], [0, 0, 1, 1], [], []>} : vector<128x128xbf16>, vector<128x128xbf16>, vector<128x128xf32> -> vector<128x128xf32>
    %23 = arith.mulf %6, %20 : vector<128x128xf32>
    %cst_24 = arith.constant dense<0.000000e+00> : vector<128x128xf32>
    %24 = tpu.matmul %23, %2, %cst_24 {dimension_numbers = #tpu.dot_dimension_numbers<[1], [0], [0], [1], [0, 0, 1, 1], [], []>} : vector<128x128xf32>, vector<128x128xf32>, vector<128x128xf32> -> vector<128x128xf32>
    %c2 = arith.constant 2 : index
    %c0_25 = arith.constant 0 : index
    %c0_26 = arith.constant 0 : index
    %25 = vector.load %arg2[%c2, %c0_25, %c0_26] : memref<6x128x128xbf16, #tpu.memory_space<vmem>>, vector<1x128x128xbf16>
    %26 = vector.shape_cast %25 : vector<1x128x128xbf16> to vector<128x128xbf16>
    %27 = arith.subf %26, %1 : vector<128x128xbf16>
    %c0_27 = arith.constant 0 : index
    %c0_28 = arith.constant 0 : index
    %28 = vector.load %arg4[%c0_27, %c0_28] : memref<128x128xbf16, #tpu.memory_space<vmem>>, vector<128x128xbf16>
    %cst_29 = arith.constant dense<0.000000e+00> : vector<128x128xf32>
    %29 = tpu.matmul %26, %28, %cst_29 {dimension_numbers = #tpu.dot_dimension_numbers<[1], [0], [0], [1], [0, 0, 1, 1], [], []>} : vector<128x128xbf16>, vector<128x128xbf16>, vector<128x128xf32> -> vector<128x128xf32>
    %c0_30 = arith.constant 0 : index
    %c0_31 = arith.constant 0 : index
    %30 = vector.load %arg5[%c0_30, %c0_31] : memref<128x128xbf16, #tpu.memory_space<vmem>>, vector<128x128xbf16>
    %cst_32 = arith.constant dense<0.000000e+00> : vector<128x128xf32>
    %31 = tpu.matmul %27, %30, %cst_32 {dimension_numbers = #tpu.dot_dimension_numbers<[1], [0], [0], [1], [0, 0, 1, 1], [], []>} : vector<128x128xbf16>, vector<128x128xbf16>, vector<128x128xf32> -> vector<128x128xf32>
    %32 = arith.mulf %6, %29 : vector<128x128xf32>
    %cst_33 = arith.constant dense<0.000000e+00> : vector<128x128xf32>
    %33 = tpu.matmul %32, %2, %cst_33 {dimension_numbers = #tpu.dot_dimension_numbers<[1], [0], [0], [1], [0, 0, 1, 1], [], []>} : vector<128x128xf32>, vector<128x128xf32>, vector<128x128xf32> -> vector<128x128xf32>
    %c3 = arith.constant 3 : index
    %c0_34 = arith.constant 0 : index
    %c0_35 = arith.constant 0 : index
    %34 = vector.load %arg2[%c3, %c0_34, %c0_35] : memref<6x128x128xbf16, #tpu.memory_space<vmem>>, vector<1x128x128xbf16>
    %35 = vector.shape_cast %34 : vector<1x128x128xbf16> to vector<128x128xbf16>
    %36 = arith.subf %35, %1 : vector<128x128xbf16>
    %c0_36 = arith.constant 0 : index
    %c0_37 = arith.constant 0 : index
    %37 = vector.load %arg4[%c0_36, %c0_37] : memref<128x128xbf16, #tpu.memory_space<vmem>>, vector<128x128xbf16>
    %cst_38 = arith.constant dense<0.000000e+00> : vector<128x128xf32>
    %38 = tpu.matmul %35, %37, %cst_38 {dimension_numbers = #tpu.dot_dimension_numbers<[1], [0], [0], [1], [0, 0, 1, 1], [], []>} : vector<128x128xbf16>, vector<128x128xbf16>, vector<128x128xf32> -> vector<128x128xf32>
    %c0_39 = arith.constant 0 : index
    %c0_40 = arith.constant 0 : index
    %39 = vector.load %arg5[%c0_39, %c0_40] : memref<128x128xbf16, #tpu.memory_space<vmem>>, vector<128x128xbf16>
    %cst_41 = arith.constant dense<0.000000e+00> : vector<128x128xf32>
    %40 = tpu.matmul %36, %39, %cst_41 {dimension_numbers = #tpu.dot_dimension_numbers<[1], [0], [0], [1], [0, 0, 1, 1], [], []>} : vector<128x128xbf16>, vector<128x128xbf16>, vector<128x128xf32> -> vector<128x128xf32>
    %41 = arith.mulf %6, %38 : vector<128x128xf32>
    %cst_42 = arith.constant dense<0.000000e+00> : vector<128x128xf32>
    %42 = tpu.matmul %41, %2, %cst_42 {dimension_numbers = #tpu.dot_dimension_numbers<[1], [0], [0], [1], [0, 0, 1, 1], [], []>} : vector<128x128xf32>, vector<128x128xf32>, vector<128x128xf32> -> vector<128x128xf32>
    %c4 = arith.constant 4 : index
    %c0_43 = arith.constant 0 : index
    %c0_44 = arith.constant 0 : index
    %43 = vector.load %arg2[%c4, %c0_43, %c0_44] : memref<6x128x128xbf16, #tpu.memory_space<vmem>>, vector<1x128x128xbf16>
    %44 = vector.shape_cast %43 : vector<1x128x128xbf16> to vector<128x128xbf16>
    %45 = arith.subf %44, %1 : vector<128x128xbf16>
    %c0_45 = arith.constant 0 : index
    %c0_46 = arith.constant 0 : index
    %46 = vector.load %arg4[%c0_45, %c0_46] : memref<128x128xbf16, #tpu.memory_space<vmem>>, vector<128x128xbf16>
    %cst_47 = arith.constant dense<0.000000e+00> : vector<128x128xf32>
    %47 = tpu.matmul %44, %46, %cst_47 {dimension_numbers = #tpu.dot_dimension_numbers<[1], [0], [0], [1], [0, 0, 1, 1], [], []>} : vector<128x128xbf16>, vector<128x128xbf16>, vector<128x128xf32> -> vector<128x128xf32>
    %c0_48 = arith.constant 0 : index
    %c0_49 = arith.constant 0 : index
    %48 = vector.load %arg5[%c0_48, %c0_49] : memref<128x128xbf16, #tpu.memory_space<vmem>>, vector<128x128xbf16>
    %cst_50 = arith.constant dense<0.000000e+00> : vector<128x128xf32>
    %49 = tpu.matmul %45, %48, %cst_50 {dimension_numbers = #tpu.dot_dimension_numbers<[1], [0], [0], [1], [0, 0, 1, 1], [], []>} : vector<128x128xbf16>, vector<128x128xbf16>, vector<128x128xf32> -> vector<128x128xf32>
    %50 = arith.mulf %6, %47 : vector<128x128xf32>
    %cst_51 = arith.constant dense<0.000000e+00> : vector<128x128xf32>
    %51 = tpu.matmul %50, %2, %cst_51 {dimension_numbers = #tpu.dot_dimension_numbers<[1], [0], [0], [1], [0, 0, 1, 1], [], []>} : vector<128x128xf32>, vector<128x128xf32>, vector<128x128xf32> -> vector<128x128xf32>
    %c5 = arith.constant 5 : index
    %c0_52 = arith.constant 0 : index
    %c0_53 = arith.constant 0 : index
    %52 = vector.load %arg2[%c5, %c0_52, %c0_53] : memref<6x128x128xbf16, #tpu.memory_space<vmem>>, vector<1x128x128xbf16>
    %53 = vector.shape_cast %52 : vector<1x128x128xbf16> to vector<128x128xbf16>
    %54 = arith.subf %53, %1 : vector<128x128xbf16>
    %c0_54 = arith.constant 0 : index
    %c0_55 = arith.constant 0 : index
    %55 = vector.load %arg4[%c0_54, %c0_55] : memref<128x128xbf16, #tpu.memory_space<vmem>>, vector<128x128xbf16>
    %cst_56 = arith.constant dense<0.000000e+00> : vector<128x128xf32>
    %56 = tpu.matmul %53, %55, %cst_56 {dimension_numbers = #tpu.dot_dimension_numbers<[1], [0], [0], [1], [0, 0, 1, 1], [], []>} : vector<128x128xbf16>, vector<128x128xbf16>, vector<128x128xf32> -> vector<128x128xf32>
    %c0_57 = arith.constant 0 : index
    %c0_58 = arith.constant 0 : index
    %57 = vector.load %arg5[%c0_57, %c0_58] : memref<128x128xbf16, #tpu.memory_space<vmem>>, vector<128x128xbf16>
    %cst_59 = arith.constant dense<0.000000e+00> : vector<128x128xf32>
    %58 = tpu.matmul %54, %57, %cst_59 {dimension_numbers = #tpu.dot_dimension_numbers<[1], [0], [0], [1], [0, 0, 1, 1], [], []>} : vector<128x128xbf16>, vector<128x128xbf16>, vector<128x128xf32> -> vector<128x128xf32>
    %59 = arith.mulf %6, %56 : vector<128x128xf32>
    %cst_60 = arith.constant dense<0.000000e+00> : vector<128x128xf32>
    %60 = tpu.matmul %59, %2, %cst_60 {dimension_numbers = #tpu.dot_dimension_numbers<[1], [0], [0], [1], [0, 0, 1, 1], [], []>} : vector<128x128xf32>, vector<128x128xf32>, vector<128x128xf32> -> vector<128x128xf32>
    %61 = arith.maximumf %15, %24 : vector<128x128xf32>
    %62 = arith.maximumf %61, %33 : vector<128x128xf32>
    %63 = arith.maximumf %62, %42 : vector<128x128xf32>
    %64 = arith.maximumf %63, %51 : vector<128x128xf32>
    %65 = arith.maximumf %64, %60 : vector<128x128xf32>
    %66 = arith.subf %15, %65 : vector<128x128xf32>
    %67 = math.exp %66 : vector<128x128xf32>
    %68 = arith.subf %24, %65 : vector<128x128xf32>
    %69 = math.exp %68 : vector<128x128xf32>
    %70 = arith.subf %33, %65 : vector<128x128xf32>
    %71 = math.exp %70 : vector<128x128xf32>
    %72 = arith.subf %42, %65 : vector<128x128xf32>
    %73 = math.exp %72 : vector<128x128xf32>
    %74 = arith.subf %51, %65 : vector<128x128xf32>
    %75 = math.exp %74 : vector<128x128xf32>
    %76 = arith.subf %60, %65 : vector<128x128xf32>
    %77 = math.exp %76 : vector<128x128xf32>
    %78 = arith.addf %67, %69 : vector<128x128xf32>
    %79 = arith.addf %78, %71 : vector<128x128xf32>
    %80 = arith.addf %79, %73 : vector<128x128xf32>
    %81 = arith.addf %80, %75 : vector<128x128xf32>
    %82 = arith.addf %81, %77 : vector<128x128xf32>
    %83 = tpu.reciprocal %82 {approx = true} : vector<128x128xf32> -> vector<128x128xf32>
    %84 = arith.mulf %67, %83 : vector<128x128xf32>
    %85 = arith.mulf %84, %13 : vector<128x128xf32>
    %86 = arith.mulf %69, %83 : vector<128x128xf32>
    %87 = arith.mulf %86, %22 : vector<128x128xf32>
    %88 = arith.addf %85, %87 : vector<128x128xf32>
    %89 = arith.mulf %71, %83 : vector<128x128xf32>
    %90 = arith.mulf %89, %31 : vector<128x128xf32>
    %91 = arith.addf %88, %90 : vector<128x128xf32>
    %92 = arith.mulf %73, %83 : vector<128x128xf32>
    %93 = arith.mulf %92, %40 : vector<128x128xf32>
    %94 = arith.addf %91, %93 : vector<128x128xf32>
    %95 = arith.mulf %75, %83 : vector<128x128xf32>
    %96 = arith.mulf %95, %49 : vector<128x128xf32>
    %97 = arith.addf %94, %96 : vector<128x128xf32>
    %98 = arith.mulf %77, %83 : vector<128x128xf32>
    %99 = arith.mulf %98, %58 : vector<128x128xf32>
    %100 = arith.addf %97, %99 : vector<128x128xf32>
    %101 = arith.truncf %100 : vector<128x128xf32> to vector<128x128xbf16>
    %c0_61 = arith.constant 0 : index
    %c0_62 = arith.constant 0 : index
    %102 = vector.load %arg6[%c0_61, %c0_62] : memref<128x128xbf16, #tpu.memory_space<vmem>>, vector<128x128xbf16>
    %cst_63 = arith.constant dense<0.000000e+00> : vector<128x128xf32>
    %103 = tpu.matmul %101, %102, %cst_63 {dimension_numbers = #tpu.dot_dimension_numbers<[1], [0], [0], [1], [0, 0, 1, 1], [], []>} : vector<128x128xbf16>, vector<128x128xbf16>, vector<128x128xf32> -> vector<128x128xf32>
    %104 = arith.addf %0, %103 : vector<128x128xf32>
    %c0_64 = arith.constant 0 : index
    %c0_65 = arith.constant 0 : index
    %105 = vector.load %arg8[%c0_64, %c0_65] : memref<128x128xf32, #tpu.memory_space<vmem>>, vector<128x128xf32>
    tpu.vector_store %arg8[%c0_64, %c0_65], %104 {strides = array<i32>} : memref<128x128xf32, #tpu.memory_space<vmem>>, vector<128x128xf32>,
    return
  }
  func.func @transform_0(%arg0: i32) -> (i32, i32) {
    %c0_i32 = arith.constant 0 : i32
    %c0_i32_0 = arith.constant 0 : i32
    return %arg0, %c0_i32 : i32, i32
  }
  func.func @transform_1(%arg0: i32) -> (i32, i32, i32) {
    %c0_i32 = arith.constant 0 : i32
    %c0_i32_0 = arith.constant 0 : i32
    %c0_i32_1 = arith.constant 0 : i32
    return %c0_i32, %arg0, %c0_i32_0 : i32, i32, i32
  }
  func.func @transform_2(%arg0: i32) -> (i32, i32) {
    %c0_i32 = arith.constant 0 : i32
    %c0_i32_0 = arith.constant 0 : i32
    %c0_i32_1 = arith.constant 0 : i32
    return %c0_i32, %c0_i32_0 : i32, i32
  }
  func.func @transform_3(%arg0: i32) -> (i32, i32) {
    %c0_i32 = arith.constant 0 : i32
    %c0_i32_0 = arith.constant 0 : i32
    %c0_i32_1 = arith.constant 0 : i32
    return %c0_i32, %c0_i32_0 : i32, i32
  }
  func.func @transform_4(%arg0: i32) -> (i32, i32) {
    %c0_i32 = arith.constant 0 : i32
    %c0_i32_0 = arith.constant 0 : i32
    %c0_i32_1 = arith.constant 0 : i32
    return %c0_i32, %c0_i32_0 : i32, i32
  }
  func.func @transform_5(%arg0: i32) -> (i32, i32) {
    %c0_i32 = arith.constant 0 : i32
    %c0_i32_0 = arith.constant 0 : i32
    %c0_i32_1 = arith.constant 0 : i32
    return %c0_i32, %c0_i32_0 : i32, i32
  }
  func.func @transform_6(%arg0: i32) -> (i32, i32) {
    %c0_i32 = arith.constant 0 : i32
    %c0_i32_0 = arith.constant 0 : i32
    %c0_i32_1 = arith.constant 0 : i32
    return %c0_i32, %c0_i32_0 : i32, i32
  }
  func.func @transform_7(%arg0: i32) -> (i32, i32) {
    %c0_i32 = arith.constant 0 : i32
    %c0_i32_0 = arith.constant 0 : i32
    return %arg0, %c0_i32 : i32, i32
  }
}

</mosaic_0001>

<bundles_post_ra>
// kernel: neg.1
= control target key start
LH: loop header
LB: loop body
LE: loop exit
PB: predicated region body
PF: predicated region fallthrough
CT: control target
= control target key end

     0   :  { %s520_s0 = inlined_call_operand.vmem [shape: f32[2,128,128], index: 0, kind: input, shape index: {}]   ;;  %s521_s1 = inlined_call_operand.vmem [shape: f32[2,128,128], index: 1, kind: output, shape index: {}]  }
   0x1   :  { %v2_v0 = vld [vmem:[%s520_s0] sm:$0xff]  ;;  %v258_v2 = vld [vmem:[%s520_s0 + $0x8] sm:$0xff]  ;;  %v262_v7 = vld [vmem:[%s520_s0 + $0x10] sm:$0xff] }
   0x2   :  { %v256_v1 = vld [vmem:[%s520_s0 + $0x80] sm:$0xff]  ;;  %v5_v3 = vxor.u32 2147483648, %v2_v0  ;;  %v20_v5 = vxor.u32 2147483648, %v258_v2  ;;  %v260_v6 = vld [vmem:[%s520_s0 + $0x88] sm:$0xff]  ;;  %v264_v8 = vld [vmem:[%s520_s0 + $0x90] sm:$0xff]  ;;  %v36_v10 = vxor.u32 2147483648, %v262_v7 }
   0x3   :  { %v12_v4 = vxor.u32 2147483648, %v256_v1  ;;  %v28_v9 = vxor.u32 2147483648, %v260_v6  ;;  %v44_v11 = vxor.u32 2147483648, %v264_v8  ;;  %v266_v12 = vld [vmem:[%s520_s0 + $0x18] sm:$0xff]  ;;  %v270_v14 = vld [vmem:[%s520_s0 + $0x20] sm:$0xff]  ;;  %v274_v19 = vld [vmem:[%s520_s0 + $0x28] sm:$0xff] }
   0x4   :  { %v268_v13 = vld [vmem:[%s520_s0 + $0x98] sm:$0xff]  ;;  %7 = vst [vmem:[%s521_s1] sm:$0xff] %v5_v3  ;;  %259 = vst [vmem:[%s521_s1 + $0x8] sm:$0xff] %v20_v5  ;;  %v52_v15 = vxor.u32 2147483648, %v266_v12  ;;  %v68_v17 = vxor.u32 2147483648, %v270_v14  ;;  %v272_v18 = vld [vmem:[%s520_s0 + $0xa0] sm:$0xff]  ;;  %v84_v22 = vxor.u32 2147483648, %v274_v19 }
   0x5   :  { %257 = vst [vmem:[%s521_s1 + $0x80] sm:$0xff] %v12_v4  ;;  %v60_v16 = vxor.u32 2147483648, %v268_v13  ;;  %v276_v20 = vld [vmem:[%s520_s0 + $0xa8] sm:$0xff]  ;;  %261 = vst [vmem:[%s521_s1 + $0x88] sm:$0xff] %v28_v9  ;;  %v76_v21 = vxor.u32 2147483648, %v272_v18  ;;  %v278_v24 = vld [vmem:[%s520_s0 + $0x30] sm:$0xff] }
   0x6   :  { %263 = vst [vmem:[%s521_s1 + $0x10] sm:$0xff] %v36_v10  ;;  %265 = vst [vmem:[%s521_s1 + $0x90] sm:$0xff] %v44_v11  ;;  %v92_v23 = vxor.u32 2147483648, %v276_v20  ;;  %v280_v25 = vld [vmem:[%s520_s0 + $0xb0] sm:$0xff]  ;;  %v282_v26 = vld [vmem:[%s520_s0 + $0x38] sm:$0xff]  ;;  %v100_v27 = vxor.u32 2147483648, %v278_v24 }
   0x7   :  { %267 = vst [vmem:[%s521_s1 + $0x18] sm:$0xff] %v52_v15  ;;  %269 = vst [vmem:[%s521_s1 + $0x98] sm:$0xff] %v60_v16  ;;  %v108_v28 = vxor.u32 2147483648, %v280_v25  ;;  %v116_v29 = vxor.u32 2147483648, %v282_v26  ;;  %v284_v30 = vld [vmem:[%s520_s0 + $0xb8] sm:$0xff]  ;;  %v286_v31 = vld [vmem:[%s520_s0 + $0x40] sm:$0xff] }
   0x8   :  { %271 = vst [vmem:[%s521_s1 + $0x20] sm:$0xff] %v68_v17  ;;  %v288_v32 = vld [vmem:[%s520_s0 + $0xc0] sm:$0xff]  ;;  %273 = vst [vmem:[%s521_s1 + $0xa0] sm:$0xff] %v76_v21  ;;  %v124_v33 = vxor.u32 2147483648, %v284_v30  ;;  %v132_v34 = vxor.u32 2147483648, %v286_v31  ;;  %v290_v36 = vld [vmem:[%s520_s0 + $0x48] sm:$0xff] }
   0x9   :  { %275 = vst [vmem:[%s521_s1 + $0x28] sm:$0xff] %v84_v22  ;;  %277 = vst [vmem:[%s521_s1 + $0xa8] sm:$0xff] %v92_v23  ;;  %v140_v35 = vxor.u32 2147483648, %v288_v32  ;;  %v292_v37 = vld [vmem:[%s520_s0 + $0xc8] sm:$0xff]  ;;  %v294_v38 = vld [vmem:[%s520_s0 + $0x50] sm:$0xff]  ;;  %v148_v39 = vxor.u32 2147483648, %v290_v36 }
   0xa   :  { %279 = vst [vmem:[%s521_s1 + $0x30] sm:$0xff] %v100_v27  ;;  %281 = vst [vmem:[%s521_s1 + $0xb0] sm:$0xff] %v108_v28  ;;  %v156_v40 = vxor.u32 2147483648, %v292_v37  ;;  %v164_v41 = vxor.u32 2147483648, %v294_v38  ;;  %v296_v42 = vld [vmem:[%s520_s0 + $0xd0] sm:$0xff]  ;;  %v298_v43 = vld [vmem:[%s520_s0 + $0x58] sm:$0xff] }
   0xb   :  { %283 = vst [vmem:[%s521_s1 + $0x38] sm:$0xff] %v116_v29  ;;  %v300_v44 = vld [vmem:[%s520_s0 + $0xd8] sm:$0xff]  ;;  %285 = vst [vmem:[%s521_s1 + $0xb8] sm:$0xff] %v124_v33  ;;  %v172_v45 = vxor.u32 2147483648, %v296_v42  ;;  %v180_v46 = vxor.u32 2147483648, %v298_v43  ;;  %v302_v48 = vld [vmem:[%s520_s0 + $0x60] sm:$0xff] }
   0xc   :  { %287 = vst [vmem:[%s521_s1 + $0x40] sm:$0xff] %v132_v34  ;;  %289 = vst [vmem:[%s521_s1 + $0xc0] sm:$0xff] %v140_v35  ;;  %v188_v47 = vxor.u32 2147483648, %v300_v44  ;;  %v304_v49 = vld [vmem:[%s520_s0 + $0xe0] sm:$0xff]  ;;  %v306_v50 = vld [vmem:[%s520_s0 + $0x68] sm:$0xff]  ;;  %v196_v51 = vxor.u32 2147483648, %v302_v48 }
   0xd   :  { %291 = vst [vmem:[%s521_s1 + $0x48] sm:$0xff] %v148_v39  ;;  %293 = vst [vmem:[%s521_s1 + $0xc8] sm:$0xff] %v156_v40  ;;  %v204_v52 = vxor.u32 2147483648, %v304_v49  ;;  %v212_v53 = vxor.u32 2147483648, %v306_v50  ;;  %v308_v54 = vld [vmem:[%s520_s0 + $0xe8] sm:$0xff]  ;;  %v310_v55 = vld [vmem:[%s520_s0 + $0x70] sm:$0xff] }
   0xe   :  { %295 = vst [vmem:[%s521_s1 + $0x50] sm:$0xff] %v164_v41  ;;  %v312_v56 = vld [vmem:[%s520_s0 + $0xf0] sm:$0xff]  ;;  %297 = vst [vmem:[%s521_s1 + $0xd0] sm:$0xff] %v172_v45  ;;  %v220_v57 = vxor.u32 2147483648, %v308_v54  ;;  %v228_v58 = vxor.u32 2147483648, %v310_v55  ;;  %v314_v60 = vld [vmem:[%s520_s0 + $0x78] sm:$0xff] }
   0xf   :  { %299 = vst [vmem:[%s521_s1 + $0x58] sm:$0xff] %v180_v46  ;;  %301 = vst [vmem:[%s521_s1 + $0xd8] sm:$0xff] %v188_v47  ;;  %v236_v59 = vxor.u32 2147483648, %v312_v56  ;;  %v316_v61 = vld [vmem:[%s520_s0 + $0xf8] sm:$0xff]  ;;  %v244_v62 = vxor.u32 2147483648, %v314_v60 }
  0x10   :  { %303 = vst [vmem:[%s521_s1 + $0x60] sm:$0xff] %v196_v51  ;;  %305 = vst [vmem:[%s521_s1 + $0xe0] sm:$0xff] %v204_v52  ;;  %v252_v63 = vxor.u32 2147483648, %v316_v61 }
  0x11   :  { %307 = vst [vmem:[%s521_s1 + $0x68] sm:$0xff] %v212_v53  ;;  %309 = vst [vmem:[%s521_s1 + $0xe8] sm:$0xff] %v220_v57 }
  0x12   :  { %311 = vst [vmem:[%s521_s1 + $0x70] sm:$0xff] %v228_v58  ;;  %313 = vst [vmem:[%s521_s1 + $0xf0] sm:$0xff] %v236_v59 }
  0x13   :  { %315 = vst [vmem:[%s521_s1 + $0x78] sm:$0xff] %v244_v62  ;;  %317 = vst [vmem:[%s521_s1 + $0xf8] sm:$0xff] %v252_v63 }

// kernel: mha_knn_forward.2
= control target key start
LH: loop header
LB: loop body
LE: loop exit
PB: predicated region body
PF: predicated region fallthrough
CT: control target
= control target key end

     0   :  { %s869_s12 = smov 0   ;;  %s871_s13 = smov 0   ;;  %s1036_s0 = inlined_call_operand.vmem [shape: f32[2,128,128], index: 0, kind: input, shape index: {}, may-alias: {0,1}]   ;;  %s1037_s1 = inlined_call_operand.vmem [shape: f32[2,128,128], index: 1, kind: input, shape index: {}, may-alias: {0,1}]   ;;  %s1038_s2 = inlined_call_operand.vmem [shape: f32[2,1,128], index: 2, kind: input, shape index: {}]   ;;  %s1039_s3 = inlined_call_operand.vmem [shape: f32[2,128,128], index: 3, kind: output, shape index: {}]  }
   0x1   :  { %s873_s14 = smov 0  }
   0x2 LB: > { %s25_s15 = sadd.s32 1, %s843_s13  ;;  %p652_p0 = scmp.ge.s32.totalorder %s847_s14, 1  ;;  %s847_s14 = sphi %s873_s14, %s13_s14   ;;  %s843_s13 = sphi %s871_s13, %s1041_s13   ;;  %s839_s12 = sphi %s869_s12, %s1040_s12  }
   0x3   : > { %p27_p1 = scmp.ge.s32.totalorder %s25_s15, 2  ;;  %p176_p2 = scmp.lt.s32.totalorder %s847_s14, 3 }
   0x5   : > { %s1043_s15 = smov (%p27_p1, %s25_s15), 0  ;;  %p177_p3 = pnand %p652_p0, %p176_p2 }
   0x6   : > { %p217_p4 = scmp.lt.s32.totalorder (!%p177_p3), %s839_s12, 1 }
   0x7   : > { %180 = sbr.rel (%p177_p3) target bundleno = 316 (0x13c), region = 32 }
   0xe   : > { %s1045_s12 = smov (!%p217_p4, %s839_s12), 1 }
   0xf   : > { %s890_s16 = sshll.u32 %s1045_s12, 7  ;;  %s233_s25 = scalar_lea.vmem %s1038_s2, %s1045_s12 }
  0x10   : > { %s896_s19 = scalar_lea.vmem %s1037_s1, %s890_s16  ;;  %s906_s22 = scalar_lea.vmem %s1036_s0, %s890_s16 }
  0x11   : > { %v260_v0 = vld [vmem:[%s896_s19] sm:$0xff]  ;;  %v261_v1 = vld [vmem:[%s896_s19 + $0x8] sm:$0xff]  ;;  %v262_v2 = vld [vmem:[%s896_s19 + $0x10] sm:$0xff]  ;;  %s989_s28 = scalar_lea.vmem %s1039_s3, %s890_s16 }
  0x12   : > { %v753_v3 = vpack.c.bf16 %v261_v1, %v260_v0  ;;  %v263_v4 = vld [vmem:[%s896_s19 + $0x18] sm:$0xff]  ;;  %v244_v6 = vld [vmem:[%s906_s22] sm:$0xff]  ;;  %v265_v9 = vld [vmem:[%s896_s19 + $0x28] sm:$0xff] }
  0x13   : > { %v757_v5 = vpack.c.bf16 %v263_v4, %v262_v2  ;;  %v252_v7 = vld [vmem:[%s906_s22 + $0x40] sm:$0xff]  ;;  %729 = vmatprep.mubr.f32.mxu0 %v244_v6  ;;  %v913_v10 = vld [vmem:[%s906_s22 + $0x10] sm:$0xff]  ;;  %v421_v11 = vmul.f32 %v244_v6, %v244_v6  ;;  %v918_v14 = vld [vmem:[%s906_s22 + $0x8] sm:$0xff] }
  0x14   : > { %754 = vmatprep.subr.bf16.mxu0 %v753_v3  ;;  %785 = vmatprep.subr.bf16.mxu1 %v753_v3  ;;  %v264_v8 = vld [vmem:[%s896_s19 + $0x20] sm:$0xff]  ;;  %v423_v12 = vmul.f32 %v913_v10, %v913_v10  ;;  %v921_v15 = vld [vmem:[%s906_s22 + $0x18] sm:$0xff]  ;;  %v422_v17 = vmul.f32 %v918_v14, %v918_v14  ;;  %v931_v19 = vld [vmem:[%s906_s22 + $0x28] sm:$0xff]  ;;  %v429_v33 = vmul.f32 %v252_v7, %v252_v7 }
  0x15   : > { %756 = vmatpush3.bf16.xpose.msra.mxu0 %v753_v3  ;;  %793 = vmatpush3.bf16.xpose.msra.mxu1 %v753_v3  ;;  %v761_v13 = vpack.c.bf16 %v265_v9, %v264_v8  ;;  %v424_v16 = vmul.f32 %v921_v15, %v921_v15  ;;  %v928_v18 = vld [vmem:[%s906_s22 + $0x20] sm:$0xff]  ;;  %v266_v20 = vld [vmem:[%s896_s19 + $0x30] sm:$0xff]  ;;  %v267_v21 = vld [vmem:[%s896_s19 + $0x38] sm:$0xff]  ;;  %v426_v22 = vmul.f32 %v931_v19, %v931_v19 }
  0x16   : > { %758 = vmatprep.subr.bf16.mxu0 %v757_v5  ;;  %786 = vmatprep.subr.bf16.mxu1 %v757_v5  ;;  %v425_v23 = vmul.f32 %v928_v18, %v928_v18  ;;  %v765_v24 = vpack.c.bf16 %v267_v21, %v266_v20  ;;  %v940_v25 = vld [vmem:[%s906_s22 + $0x30] sm:$0xff]  ;;  %v943_v26 = vld [vmem:[%s906_s22 + $0x38] sm:$0xff]  ;;  %v253_v29 = vld [vmem:[%s906_s22 + $0x48] sm:$0xff] }
  0x17   : > { %741 = vmatprep.mubr.f32.mxu1 %v252_v7  ;;  %437 = vadd.xlane.f32.xlu0 %v421_v11  ;;  %v428_v27 = vmul.f32 %v943_v26, %v943_v26  ;;  %v427_v28 = vmul.f32 %v940_v25, %v940_v25  ;;  %v268_v30 = vld [vmem:[%s896_s19 + $0x40] sm:$0xff]  ;;  %v269_v31 = vld [vmem:[%s896_s19 + $0x48] sm:$0xff]  ;;  %v430_v32 = vmul.f32 %v253_v29, %v253_v29  ;;  %v254_v35 = vld [vmem:[%s906_s22 + $0x50] sm:$0xff] }
  0x18   : > { %441 = vadd.xlane.f32.xlu1 %v423_v12  ;;  %v769_v34 = vpack.c.bf16 %v269_v31, %v268_v30  ;;  %v255_v36 = vld [vmem:[%s906_s22 + $0x58] sm:$0xff]  ;;  %v431_v38 = vmul.f32 %v254_v35, %v254_v35  ;;  %v256_v39 = vld [vmem:[%s906_s22 + $0x60] sm:$0xff]  ;;  %v257_v40 = vld [vmem:[%s906_s22 + $0x68] sm:$0xff] }
  0x19   : > { %v432_v37 = vmul.f32 %v255_v36, %v255_v36  ;;  %v270_v41 = vld [vmem:[%s896_s19 + $0x50] sm:$0xff]  ;;  %v271_v42 = vld [vmem:[%s896_s19 + $0x58] sm:$0xff]  ;;  %v434_v43 = vmul.f32 %v257_v40, %v257_v40  ;;  %v433_v44 = vmul.f32 %v256_v39, %v256_v39  ;;  %v272_v50 = vld [vmem:[%s896_s19 + $0x60] sm:$0xff] }
  0x1a   : > { %v773_v45 = vpack.c.bf16 %v271_v42, %v270_v41  ;;  %v258_v46 = vld [vmem:[%s906_s22 + $0x70] sm:$0xff]  ;;  %v259_v47 = vld [vmem:[%s906_s22 + $0x78] sm:$0xff]  ;;  %v273_v51 = vld [vmem:[%s896_s19 + $0x68] sm:$0xff] }
  0x1b   : > { %439 = vadd.xlane.f32.xlu0 %v422_v17  ;;  %v436_v48 = vmul.f32 %v259_v47, %v259_v47  ;;  %v435_v49 = vmul.f32 %v258_v46, %v258_v46  ;;  %v777_v52 = vpack.c.bf16 %v273_v51, %v272_v50  ;;  %v274_v53 = vld [vmem:[%s896_s19 + $0x70] sm:$0xff]  ;;  %v275_v54 = vld [vmem:[%s896_s19 + $0x78] sm:$0xff] }
  0x1c   : > { %443 = vadd.xlane.f32.xlu1 %v424_v16  ;;  %v781_v55 = vpack.c.bf16 %v275_v54, %v274_v53 }
  0x1d   : > { %760 = vmatpush3.bf16.xpose.msra.mxu0 %v757_v5  ;;  %794 = vmatpush3.bf16.xpose.msra.mxu1 %v757_v5 }
  0x1e   : > { %762 = vmatprep.subr.bf16.mxu0 %v761_v13  ;;  %787 = vmatprep.subr.bf16.mxu1 %v761_v13 }
  0x1f   : > { %445 = vadd.xlane.f32.xlu0 %v425_v23 }
  0x20   : > { %447 = vadd.xlane.f32.xlu1 %v426_v22 }
  0x23   : > { %449 = vadd.xlane.f32.xlu0 %v427_v28 }
  0x24   : > { %451 = vadd.xlane.f32.xlu1 %v428_v27 }
  0x25   : > { %764 = vmatpush3.bf16.xpose.msra.mxu0 %v761_v13  ;;  %795 = vmatpush3.bf16.xpose.msra.mxu1 %v761_v13 }
  0x26   : > { %766 = vmatprep.subr.bf16.mxu0 %v765_v24  ;;  %788 = vmatprep.subr.bf16.mxu1 %v765_v24 }
  0x27   : > { %453 = vadd.xlane.f32.xlu0 %v429_v33 }
  0x28   : > { %455 = vadd.xlane.f32.xlu1 %v430_v32 }
  0x2b   : > { %457 = vadd.xlane.f32.xlu0 %v431_v38 }
  0x2c   : > { %459 = vadd.xlane.f32.xlu1 %v432_v37 }
  0x2d   : > { %768 = vmatpush3.bf16.xpose.msra.mxu0 %v765_v24  ;;  %796 = vmatpush3.bf16.xpose.msra.mxu1 %v765_v24 }
  0x2e   : > { %770 = vmatprep.subr.bf16.mxu0 %v769_v34  ;;  %789 = vmatprep.subr.bf16.mxu1 %v769_v34 }
  0x2f   : > { %461 = vadd.xlane.f32.xlu0 %v433_v44 }
  0x30   : > { %463 = vadd.xlane.f32.xlu1 %v434_v43 }
  0x33   : > { %465 = vadd.xlane.f32.xlu0 %v435_v49 }
  0x34   : > { %467 = vadd.xlane.f32.xlu1 %v436_v48 }
  0x35   : > { %772 = vmatpush3.bf16.xpose.msra.mxu0 %v769_v34  ;;  %797 = vmatpush3.bf16.xpose.msra.mxu1 %v769_v34 }
  0x36   : > { %774 = vmatprep.subr.bf16.mxu0 %v773_v45  ;;  %790 = vmatprep.subr.bf16.mxu1 %v773_v45 }
  0x3d   : > { %776 = vmatpush3.bf16.xpose.msra.mxu0 %v773_v45  ;;  %798 = vmatpush3.bf16.xpose.msra.mxu1 %v773_v45 }
  0x3e   : > { %778 = vmatprep.subr.bf16.mxu0 %v777_v52  ;;  %791 = vmatprep.subr.bf16.mxu1 %v777_v52 }
  0x45   : > { %780 = vmatpush3.bf16.xpose.msra.mxu0 %v777_v52  ;;  %799 = vmatpush3.bf16.xpose.msra.mxu1 %v777_v52 }
  0x46   : > { %782 = vmatprep.subr.bf16.mxu0 %v781_v55  ;;  %792 = vmatprep.subr.bf16.mxu1 %v781_v55 }
  0x4d   : > { %784 = vmatpush3.bf16.xpose.msra.mxu0 %v781_v55  ;;  %800 = vmatpush3.bf16.xpose.msra.mxu1 %v781_v55 }
  0x54   : > { %730 = vmatmul.mubr.f32.vlgmr.msra.gmra.mrb[0].mxu0 %v918_v14  ;;  %742 = vmatmul.mubr.f32.vlgmr.msra.gmra.mrb[0].mxu1 %v253_v29 }
  0x55   : > { %732 = vmatprep.mubr.f32.mxu0 %v913_v10  ;;  %744 = vmatprep.mubr.f32.mxu1 %v254_v35  ;;  %v983_v10 = vld [vmem:[%s233_s25] ss:$0 sm:$0xff] }
  0x58   : > { %733 = vmatmul.mubr.f32.gmra.mrb[2].mxu0 %v921_v15  ;;  %745 = vmatmul.mubr.f32.gmra.mrb[2].mxu1 %v255_v36 }
  0x59   : > { %735 = vmatprep.mubr.f32.mxu0 %v928_v18  ;;  %747 = vmatprep.mubr.f32.mxu1 %v256_v39 }
  0x5c   : > { %736 = vmatmul.mubr.f32.gmra.mrb[4].mxu0 %v931_v19  ;;  %748 = vmatmul.mubr.f32.gmra.mrb[4].mxu1 %v257_v40 }
  0x5d   : > { %738 = vmatprep.mubr.f32.mxu0 %v940_v25  ;;  %750 = vmatprep.mubr.f32.mxu1 %v258_v46 }
  0x60   : > { %739 = vmatmul.mubr.f32.gmra.mrb[6].mxu0 %v943_v26  ;;  %751 = vmatmul.mubr.f32.gmra.mrb[6].mxu1 %v259_v47 }
  0xa4   : > { %v438_v57 = vpop.xlane.xlu0 %437 }
  0xa5   : > { %v442_v56 = vpop.xlane.xlu1 %441 }
  0xa8   : > { %v440_v59 = vpop.xlane.xlu0 %439 }
  0xa9   : > { %v444_v58 = vpop.xlane.xlu1 %443 }
  0xac   : > { %v973_v61 = vpop.xlane.xlu0 %445 }
  0xad   : > { %v971_v60 = vpop.xlane.xlu1 %447 }
  0xb0   : > { %v977_v63 = vpop.xlane.xlu0 %449 }
  0xb1   : > { %v975_v62 = vpop.xlane.xlu1 %451 }
  0xb4   : > { %v454_v1 = vpop.xlane.xlu0 %453 }
  0xb5   : > { %v456_v0 = vpop.xlane.xlu1 %455 }
  0xb8   : > { %v458_v3 = vpop.xlane.xlu0 %457 }
  0xb9   : > { %v460_v2 = vpop.xlane.xlu1 %459 }
  0xbc   : > { %v462_v16 = vpop.xlane.xlu0 %461 }
  0xbd   : > { %v464_v15 = vpop.xlane.xlu1 %463 }
  0xc0   : > { %v466_v50 = vpop.xlane.xlu0 %465 }
  0xc1   : > { %v468_v49 = vpop.xlane.xlu1 %467 }
 0x127   : > { %v731_v4 = vpop.f32.mrb[0].mxu0  ;;  %v743_v5 = vpop.f32.mrb[0].mxu1 }
 0x128   : > { %v470_v6 = vmul.f32 2.0, %v731_v4  ;;  %v478_v7 = vmul.f32 2.0, %v743_v5  ;;  %v342_v8 = vpop.f32.mrb[1].mxu0  ;;  %v382_v9 = vpop.f32.mrb[1].mxu1 }
 0x129   : > { %v469_v11 = vmul.f32 2.0, %v342_v8  ;;  %v477_v12 = vmul.f32 2.0, %v382_v9 }
 0x12a   : > { %v486_v13 = vsub.f32 %v440_v59, %v470_v6  ;;  %v494_v14 = vsub.f32 %v456_v0, %v478_v7 }
 0x12b   : > { %v485_v17 = vsub.f32 %v438_v57, %v469_v11  ;;  %v493_v18 = vsub.f32 %v454_v1, %v477_v12  ;;  %v734_v19 = vpop.f32.mrb[2].mxu0  ;;  %v746_v20 = vpop.f32.mrb[2].mxu1 }
 0x12c   : > { %v509_v21 = vadd.f32 %v983_v10, %v486_v13  ;;  %v517_v22 = vadd.f32 %v983_v10, %v494_v14  ;;  %v472_v23 = vmul.f32 2.0, %v734_v19  ;;  %v480_v24 = vmul.f32 2.0, %v746_v20  ;;  %v352_v25 = vpop.f32.mrb[3].mxu0  ;;  %v392_v26 = vpop.f32.mrb[3].mxu1 }
 0x12d   : > { %v508_v27 = vadd.f32 %v983_v10, %v485_v17  ;;  %v516_v28 = vadd.f32 %v983_v10, %v493_v18  ;;  %v471_v29 = vmul.f32 2.0, %v352_v25  ;;  %v479_v30 = vmul.f32 2.0, %v392_v26 }
 0x12e   : > { %525 = vst [vmem:[%s989_s28 + $0x8] sm:$0xff] %v509_v21  ;;  %533 = vst [vmem:[%s989_s28 + $0x48] sm:$0xff] %v517_v22  ;;  %v488_v31 = vsub.f32 %v444_v58, %v472_v23  ;;  %v496_v32 = vsub.f32 %v460_v2, %v480_v24 }
 0x12f   : > { %524 = vst [vmem:[%s989_s28] sm:$0xff] %v508_v27  ;;  %532 = vst [vmem:[%s989_s28 + $0x40] sm:$0xff] %v516_v28  ;;  %v487_v33 = vsub.f32 %v442_v56, %v471_v29  ;;  %v495_v34 = vsub.f32 %v458_v3, %v479_v30  ;;  %v737_v35 = vpop.f32.mrb[4].mxu0  ;;  %v749_v36 = vpop.f32.mrb[4].mxu1 }
 0x130   : > { %v511_v37 = vadd.f32 %v983_v10, %v488_v31  ;;  %v519_v38 = vadd.f32 %v983_v10, %v496_v32  ;;  %v474_v39 = vmul.f32 2.0, %v737_v35  ;;  %v482_v40 = vmul.f32 2.0, %v749_v36  ;;  %v362_v41 = vpop.f32.mrb[5].mxu0  ;;  %v402_v42 = vpop.f32.mrb[5].mxu1 }
 0x131   : > { %v510_v43 = vadd.f32 %v983_v10, %v487_v33  ;;  %v518_v44 = vadd.f32 %v983_v10, %v495_v34  ;;  %v473_v45 = vmul.f32 2.0, %v362_v41  ;;  %v481_v46 = vmul.f32 2.0, %v402_v42 }
 0x132   : > { %527 = vst [vmem:[%s989_s28 + $0x18] sm:$0xff] %v511_v37  ;;  %535 = vst [vmem:[%s989_s28 + $0x58] sm:$0xff] %v519_v38  ;;  %v490_v47 = vsub.f32 %v971_v60, %v474_v39  ;;  %v498_v48 = vsub.f32 %v464_v15, %v482_v40 }
 0x133   : > { %526 = vst [vmem:[%s989_s28 + $0x10] sm:$0xff] %v510_v43  ;;  %534 = vst [vmem:[%s989_s28 + $0x50] sm:$0xff] %v518_v44  ;;  %v489_v51 = vsub.f32 %v973_v61, %v473_v45  ;;  %v497_v52 = vsub.f32 %v462_v16, %v481_v46  ;;  %v740_v53 = vpop.f32.mrb[6].mxu0  ;;  %v752_v54 = vpop.f32.mrb[6].mxu1 }
 0x134   : > { %v513_v55 = vadd.f32 %v983_v10, %v490_v47  ;;  %v521_v56 = vadd.f32 %v983_v10, %v498_v48  ;;  %v476_v57 = vmul.f32 2.0, %v740_v53  ;;  %v484_v58 = vmul.f32 2.0, %v752_v54  ;;  %v372_v59 = vpop.f32.mrb[7].mxu0  ;;  %v412_v60 = vpop.f32.mrb[7].mxu1 }
 0x135   : > { %v512_v0 = vadd.f32 %v983_v10, %v489_v51  ;;  %v520_v1 = vadd.f32 %v983_v10, %v497_v52  ;;  %v475_v61 = vmul.f32 2.0, %v372_v59  ;;  %v483_v2 = vmul.f32 2.0, %v412_v60 }
 0x136   : > { %529 = vst [vmem:[%s989_s28 + $0x28] sm:$0xff] %v513_v55  ;;  %537 = vst [vmem:[%s989_s28 + $0x68] sm:$0xff] %v521_v56  ;;  %v492_v3 = vsub.f32 %v975_v62, %v476_v57  ;;  %v500_v4 = vsub.f32 %v468_v49, %v484_v58 }
 0x137   : > { %528 = vst [vmem:[%s989_s28 + $0x20] sm:$0xff] %v512_v0  ;;  %536 = vst [vmem:[%s989_s28 + $0x60] sm:$0xff] %v520_v1  ;;  %v491_v5 = vsub.f32 %v977_v63, %v475_v61  ;;  %v499_v6 = vsub.f32 %v466_v50, %v483_v2 }
 0x138   : > { %v515_v7 = vadd.f32 %v983_v10, %v492_v3  ;;  %v523_v8 = vadd.f32 %v983_v10, %v500_v4 }
 0x139   : > { %v514_v9 = vadd.f32 %v983_v10, %v491_v5  ;;  %v522_v11 = vadd.f32 %v983_v10, %v499_v6 }
 0x13a   : > { %531 = vst [vmem:[%s989_s28 + $0x38] sm:$0xff] %v515_v7  ;;  %539 = vst [vmem:[%s989_s28 + $0x78] sm:$0xff] %v523_v8 }
 0x13b   : > { %530 = vst [vmem:[%s989_s28 + $0x30] sm:$0xff] %v514_v9  ;;  %538 = vst [vmem:[%s989_s28 + $0x70] sm:$0xff] %v522_v11 }
 0x13c PF: > { %s13_s14 = sadd.s32 1, %s847_s14   ;;  %s1040_s12 = smov %s843_s13 }
 0x13d   : > { %p10_p5 = scmp.ge.s32.totalorder %s13_s14, 4   ;;  %s1041_s13 = smov %s1043_s15 }
 0x13f   :  { %12 = sbr.rel (!%p10_p5) target bundleno = 2 (0x2), region = 68 }

// kernel: mha_knn_forward.3
= control target key start
LH: loop header
LB: loop body
LE: loop exit
PB: predicated region body
PF: predicated region fallthrough
CT: control target
= control target key end

     0   :  { %12 = vsyncpa [#allocation4], 0  ;;  %s10508_s0 = inlined_call_operand.vmem [shape: f32[256,128], index: 0, kind: input, shape index: {}]   ;;  %s10509_s1 = inlined_call_operand.vmem [shape: bf16[6,256,128], index: 1, kind: input, shape index: {}]   ;;  %s10510_s2 = inlined_call_operand.vmem [shape: bf16[128,128], index: 2, kind: input, shape index: {}]   ;;  %s10511_s3 = inlined_call_operand.vmem [shape: bf16[128,128], index: 3, kind: input, shape index: {}]   ;;  %s10512_s4 = inlined_call_operand.vmem [shape: bf16[128,128], index: 4, kind: input, shape index: {}]   ;;  %s10513_s5 = inlined_call_operand.vmem [shape: bf16[128,128], index: 5, kind: input, shape index: {}]   ;;  %s10514_s6 = inlined_call_operand.vmem [shape: f32[128,128], index: 6, kind: input, shape index: {}]   ;;  %s10515_s7 = inlined_call_operand.hbm [shape: f32[256,128], index: 7, kind: output, shape index: {}]  }
   0x1   :  { %14 = vsyncpa [#allocation4 + $0x1], 0  ;;  %s7194_s24 = smov 0   ;;  %s7196_s25 = smov 0  }
   0x2   :  { %s7198_s26 = smov 0   ;;  %s7200_s27 = smov 0  }
   0x3 LB: > { %s7215_s28 = sadd.s32 4294967295, %s7149_s27   ;;  %s5059_s29 = sadd.s32 4294967294, %s7149_s27   ;;  %s7149_s27 = sphi %s7200_s27, %s11452_s27   ;;  %s7145_s26 = sphi %s7198_s26, %s11451_s26   ;;  %s7141_s25 = sphi %s7196_s25, %s11450_s25   ;;  %s7137_s24 = sphi %s7194_s24, %s11449_s24  }
   0x4   : > { %s7219_s30 = sadd.s32 1, %s7149_s27   ;;  %s53_s8 = sadd.s32 1, %s7145_s26 }
   0x5   : > { %s50_s9 = ssub.s32 %s7149_s27, %s7219_s30  ;;  %p60_p0 = scmp.ne.s32.totalorder %s7145_s26, %s7141_s25 }
   0x6   : > { %p51_p1 = scmp.eq.s32.totalorder %s50_s9, 0  ;;  %p61_p2 = scmp.eq.s32.totalorder %s7149_s27, 0 }
   0x7   : > { %p195_p3 = scmp.eq.s32.totalorder %s7215_s28, 1  ;;  %p200_p4 = scmp.ne.s32.totalorder %s7141_s25, %s7137_s24 }
   0x8   : > { %s7231_s10 = scalar_select %p51_p1, %s7145_s26, %s53_s8  }
   0x9   : > { %p62_p5 = por %p61_p2, %p60_p0  ;;  %p7233_p6 = por %p195_p3, %p60_p0 }
   0xa   : > { %p201_p7 = scmp.eq.s32.totalorder %s5059_s29, 1  ;;  %p5061_p9 = scmp.ge.s32.totalorder %s7149_s27, 2 }
   0xc   : > { %p7237_p8 = por %p201_p7, %p200_p4  ;;  %232 = sbr.rel (%p5061_p9) target bundleno = 48 (0x30), region = 36 }
  0x13   : > { %244 = sbr.rel (!%p62_p5) target bundleno = 48 (0x30), region = 44  ;;  %s246_s13 = sand.u32 (%p62_p5), 1, %s7145_s26  }
  0x14   : > { %s5297_s14 = sshll.u32 (%p62_p5), %s7149_s27, 6  ;;  %s6707_s15 = smul.u32 (%p62_p5), 384, %s246_s13 }
  0x15   : > { %s7249_s18 = scalar_lea.vmem (%p62_p5), %s10509_s1, %s5297_s14 }
  0x16   : > { %v267_v0 = vld [vmem:[%s7249_s18] sm:$0xff] (%p62_p5)   ;;  %v271_v1 = vld [vmem:[%s7249_s18 + $0x8] sm:$0xff] (%p62_p5)   ;;  %v275_v2 = vld [vmem:[%s7249_s18 + $0x10] sm:$0xff] (%p62_p5)   ;;  %s7257_s19 = scalar_lea.vmem (%p62_p5), [#allocation2], %s6707_s15 }
  0x17   : > { %v279_v3 = vld [vmem:[%s7249_s18 + $0x18] sm:$0xff] (%p62_p5)   ;;  %v283_v4 = vld [vmem:[%s7249_s18 + $0x20] sm:$0xff] (%p62_p5)   ;;  %v287_v5 = vld [vmem:[%s7249_s18 + $0x28] sm:$0xff] (%p62_p5)   ;;  %268 = vst [vmem:[%s7257_s19] sm:$0xff] (%p62_p5), %v267_v0  }
  0x18   : > { %272 = vst [vmem:[%s7257_s19 + $0x8] sm:$0xff] (%p62_p5), %v271_v1   ;;  %276 = vst [vmem:[%s7257_s19 + $0x10] sm:$0xff] (%p62_p5), %v275_v2   ;;  %v291_v6 = vld [vmem:[%s7249_s18 + $0x30] sm:$0xff] (%p62_p5)   ;;  %v295_v7 = vld [vmem:[%s7249_s18 + $0x38] sm:$0xff] (%p62_p5)  }
  0x19   : > { %280 = vst [vmem:[%s7257_s19 + $0x18] sm:$0xff] (%p62_p5), %v279_v3   ;;  %284 = vst [vmem:[%s7257_s19 + $0x20] sm:$0xff] (%p62_p5), %v283_v4   ;;  %v299_v8 = vld [vmem:[%s7249_s18 + $0x80] sm:$0xff] (%p62_p5)   ;;  %v303_v9 = vld [vmem:[%s7249_s18 + $0x88] sm:$0xff] (%p62_p5)  }
  0x1a   : > { %288 = vst [vmem:[%s7257_s19 + $0x28] sm:$0xff] %v287_v5   ;;  %292 = vst [vmem:[%s7257_s19 + $0x30] sm:$0xff] %v291_v6   ;;  %v307_v10 = vld [vmem:[%s7249_s18 + $0x90] sm:$0xff]   ;;  %v311_v11 = vld [vmem:[%s7249_s18 + $0x98] sm:$0xff]  }
  0x1b   : > { %296 = vst [vmem:[%s7257_s19 + $0x38] sm:$0xff] %v295_v7   ;;  %300 = vst [vmem:[%s7257_s19 + $0x40] sm:$0xff] %v299_v8   ;;  %v315_v12 = vld [vmem:[%s7249_s18 + $0xa0] sm:$0xff]   ;;  %v319_v13 = vld [vmem:[%s7249_s18 + $0xa8] sm:$0xff]  }
  0x1c   : > { %304 = vst [vmem:[%s7257_s19 + $0x48] sm:$0xff] %v303_v9   ;;  %308 = vst [vmem:[%s7257_s19 + $0x50] sm:$0xff] %v307_v10   ;;  %v323_v14 = vld [vmem:[%s7249_s18 + $0xb0] sm:$0xff]   ;;  %v327_v15 = vld [vmem:[%s7249_s18 + $0xb8] sm:$0xff]  }
  0x1d   : > { %312 = vst [vmem:[%s7257_s19 + $0x58] sm:$0xff] %v311_v11   ;;  %316 = vst [vmem:[%s7257_s19 + $0x60] sm:$0xff] %v315_v12   ;;  %v331_v16 = vld [vmem:[%s7249_s18 + $0x100] sm:$0xff]   ;;  %v335_v17 = vld [vmem:[%s7249_s18 + $0x108] sm:$0xff]  }
  0x1e   : > { %320 = vst [vmem:[%s7257_s19 + $0x68] sm:$0xff] %v319_v13   ;;  %324 = vst [vmem:[%s7257_s19 + $0x70] sm:$0xff] %v323_v14   ;;  %v339_v18 = vld [vmem:[%s7249_s18 + $0x110] sm:$0xff]   ;;  %v343_v19 = vld [vmem:[%s7249_s18 + $0x118] sm:$0xff]  }
  0x1f   : > { %328 = vst [vmem:[%s7257_s19 + $0x78] sm:$0xff] %v327_v15   ;;  %332 = vst [vmem:[%s7257_s19 + $0x80] sm:$0xff] %v331_v16   ;;  %v347_v20 = vld [vmem:[%s7249_s18 + $0x120] sm:$0xff]   ;;  %v351_v21 = vld [vmem:[%s7249_s18 + $0x128] sm:$0xff]  }
  0x20   : > { %336 = vst [vmem:[%s7257_s19 + $0x88] sm:$0xff] %v335_v17   ;;  %340 = vst [vmem:[%s7257_s19 + $0x90] sm:$0xff] %v339_v18   ;;  %v355_v22 = vld [vmem:[%s7249_s18 + $0x130] sm:$0xff]   ;;  %v359_v23 = vld [vmem:[%s7249_s18 + $0x138] sm:$0xff]  }
  0x21   : > { %344 = vst [vmem:[%s7257_s19 + $0x98] sm:$0xff] %v343_v19   ;;  %348 = vst [vmem:[%s7257_s19 + $0xa0] sm:$0xff] %v347_v20   ;;  %v363_v24 = vld [vmem:[%s7249_s18 + $0x180] sm:$0xff]   ;;  %v367_v25 = vld [vmem:[%s7249_s18 + $0x188] sm:$0xff]  }
  0x22   : > { %352 = vst [vmem:[%s7257_s19 + $0xa8] sm:$0xff] %v351_v21   ;;  %356 = vst [vmem:[%s7257_s19 + $0xb0] sm:$0xff] %v355_v22   ;;  %v371_v26 = vld [vmem:[%s7249_s18 + $0x190] sm:$0xff]   ;;  %v375_v27 = vld [vmem:[%s7249_s18 + $0x198] sm:$0xff]  }
  0x23   : > { %360 = vst [vmem:[%s7257_s19 + $0xb8] sm:$0xff] %v359_v23   ;;  %364 = vst [vmem:[%s7257_s19 + $0xc0] sm:$0xff] %v363_v24   ;;  %v379_v28 = vld [vmem:[%s7249_s18 + $0x1a0] sm:$0xff]   ;;  %v383_v29 = vld [vmem:[%s7249_s18 + $0x1a8] sm:$0xff]  }
  0x24   : > { %368 = vst [vmem:[%s7257_s19 + $0xc8] sm:$0xff] %v367_v25   ;;  %372 = vst [vmem:[%s7257_s19 + $0xd0] sm:$0xff] %v371_v26   ;;  %v387_v30 = vld [vmem:[%s7249_s18 + $0x1b0] sm:$0xff]   ;;  %v391_v31 = vld [vmem:[%s7249_s18 + $0x1b8] sm:$0xff]  }
  0x25   : > { %376 = vst [vmem:[%s7257_s19 + $0xd8] sm:$0xff] %v375_v27   ;;  %380 = vst [vmem:[%s7257_s19 + $0xe0] sm:$0xff] %v379_v28   ;;  %v395_v32 = vld [vmem:[%s7249_s18 + $0x200] sm:$0xff]   ;;  %v399_v33 = vld [vmem:[%s7249_s18 + $0x208] sm:$0xff]  }
  0x26   : > { %384 = vst [vmem:[%s7257_s19 + $0xe8] sm:$0xff] %v383_v29   ;;  %388 = vst [vmem:[%s7257_s19 + $0xf0] sm:$0xff] %v387_v30   ;;  %v403_v34 = vld [vmem:[%s7249_s18 + $0x210] sm:$0xff]   ;;  %v407_v35 = vld [vmem:[%s7249_s18 + $0x218] sm:$0xff]  }
  0x27   : > { %392 = vst [vmem:[%s7257_s19 + $0xf8] sm:$0xff] %v391_v31   ;;  %396 = vst [vmem:[%s7257_s19 + $0x100] sm:$0xff] %v395_v32   ;;  %v411_v36 = vld [vmem:[%s7249_s18 + $0x220] sm:$0xff]   ;;  %v415_v37 = vld [vmem:[%s7249_s18 + $0x228] sm:$0xff]  }
  0x28   : > { %400 = vst [vmem:[%s7257_s19 + $0x108] sm:$0xff] %v399_v33   ;;  %404 = vst [vmem:[%s7257_s19 + $0x110] sm:$0xff] %v403_v34   ;;  %v419_v38 = vld [vmem:[%s7249_s18 + $0x230] sm:$0xff]   ;;  %v423_v39 = vld [vmem:[%s7249_s18 + $0x238] sm:$0xff]  }
  0x29   : > { %408 = vst [vmem:[%s7257_s19 + $0x118] sm:$0xff] %v407_v35   ;;  %412 = vst [vmem:[%s7257_s19 + $0x120] sm:$0xff] %v411_v36   ;;  %v427_v40 = vld [vmem:[%s7249_s18 + $0x280] sm:$0xff]   ;;  %v431_v41 = vld [vmem:[%s7249_s18 + $0x288] sm:$0xff]  }
  0x2a   : > { %416 = vst [vmem:[%s7257_s19 + $0x128] sm:$0xff] %v415_v37   ;;  %420 = vst [vmem:[%s7257_s19 + $0x130] sm:$0xff] %v419_v38   ;;  %v435_v42 = vld [vmem:[%s7249_s18 + $0x290] sm:$0xff]   ;;  %v439_v43 = vld [vmem:[%s7249_s18 + $0x298] sm:$0xff]  }
  0x2b   : > { %424 = vst [vmem:[%s7257_s19 + $0x138] sm:$0xff] %v423_v39   ;;  %428 = vst [vmem:[%s7257_s19 + $0x140] sm:$0xff] %v427_v40   ;;  %v443_v44 = vld [vmem:[%s7249_s18 + $0x2a0] sm:$0xff]   ;;  %v447_v45 = vld [vmem:[%s7249_s18 + $0x2a8] sm:$0xff]  }
  0x2c   : > { %432 = vst [vmem:[%s7257_s19 + $0x148] sm:$0xff] %v431_v41   ;;  %436 = vst [vmem:[%s7257_s19 + $0x150] sm:$0xff] %v435_v42   ;;  %v451_v46 = vld [vmem:[%s7249_s18 + $0x2b0] sm:$0xff]   ;;  %v455_v47 = vld [vmem:[%s7249_s18 + $0x2b8] sm:$0xff]  }
  0x2d   : > { %440 = vst [vmem:[%s7257_s19 + $0x158] sm:$0xff] %v439_v43   ;;  %444 = vst [vmem:[%s7257_s19 + $0x160] sm:$0xff] %v443_v44  }
  0x2e   : > { %448 = vst [vmem:[%s7257_s19 + $0x168] sm:$0xff] %v447_v45   ;;  %452 = vst [vmem:[%s7257_s19 + $0x170] sm:$0xff] %v451_v46  }
  0x2f   : > { %456 = vst [vmem:[%s7257_s19 + $0x178] sm:$0xff] %v455_v47  }
  0x30 PF: > { %p5064_p10 = scmp.ge.s32.totalorder %s7149_s27, 1  ;;  %p672_p11 = scmp.lt.s32.totalorder %s7149_s27, 3 }
  0x32   : > { %p673_p12 = pnand %p5064_p10, %p672_p11 }
  0x34   : > { %676 = sbr.rel (%p673_p12) target bundleno = 1567 (0x61f), region = 85 }
  0x3b   : > { %v6750_v48 = vld [vmem:[%s10510_s2] sm:$0xff]   ;;  %s5066_s22 = sshll.u32 %s7215_s28, 4  ;;  %v6752_v50 = vld [vmem:[%s10510_s2 + $0x8] sm:$0xff]   ;;  %v6754_v52 = vld [vmem:[%s10510_s2 + $0x10] sm:$0xff]   ;;  %s7384_s21 = sand.u32 1, %s7141_s25  }
  0x3c   : > { %v7358_v49 = vld [vmem:[%s10511_s3] sm:$0xff]   ;;  %5731 = vmatprep.subr.bf16.mxu0 %v6750_v48  ;;  %p716_p13 = scmp.lt.s32.totalorder %s5066_s22, 31  ;;  %v7367_v51 = vld [vmem:[%s10511_s3 + $0x8] sm:$0xff]   ;;  %v7377_v53 = vld [vmem:[%s10511_s3 + $0x10] sm:$0xff]   ;;  %s6708_s9 = smul.u32 384, %s7384_s21 }
  0x3d   : > { %5732 = vmatpush3.bf16.msra.mxu0 %v6750_v48  ;;  %5763 = vmatprep.subr.bf16.mxu1 %v7358_v49  ;;  %v6756_v54 = vld [vmem:[%s10510_s2 + $0x18] sm:$0xff]   ;;  %v6758_v56 = vld [vmem:[%s10510_s2 + $0x20] sm:$0xff]   ;;  %v6760_v58 = vld [vmem:[%s10510_s2 + $0x28] sm:$0xff]   ;;  %s5065_s17 = sshll.u32 %s7384_s21, 7  ;;  %s5314_s19 = sshll.u32 %s7215_s28, 11 }
  0x3e   : > { %5764 = vmatpush3.bf16.msra.mxu1 %v7358_v49  ;;  %5733 = vmatprep.subr.bf16.mxu0 %v6752_v50  ;;  %s11454_s22 = smov (!%p716_p13, %s5066_s22), 31  ;;  %v7390_v55 = vld [vmem:[%s10511_s3 + $0x18] sm:$0xff]   ;;  %v7401_v57 = vld [vmem:[%s10511_s3 + $0x20] sm:$0xff]   ;;  %v7422_v61 = vld [vmem:[%s10511_s3 + $0x28] sm:$0xff]   ;;  %s10425_s18 = scalar_lea.vmem [#allocation3], %s5065_s17 }
  0x3f   : > { %5765 = vmatprep.subr.bf16.mxu1 %v7367_v51  ;;  %s5067_s8 = sshll.u32 %s11454_s22, 3  ;;  %v6762_v2 = vld [vmem:[%s10510_s2 + $0x30] sm:$0xff]   ;;  %v6764_v4 = vld [vmem:[%s10510_s2 + $0x38] sm:$0xff]   ;;  %v7465_v8 = vld [vmem:[%s10512_s4] sm:$0xff]   ;;  %s4979_s20 = sshll.u32 %s10425_s18, 4  ;;  %s10460_s20 = int_to_ptr.vmem [resolvable:$true] %s4979_s20 }
  0x40   : > { %s7406_s22 = scalar_lea.vmem %s10508_s0, %s5067_s8  ;;  %s7426_s8 = scalar_lea.vmem [#allocation2], %s6708_s9  ;;  %v7444_v3 = vld [vmem:[%s10511_s3 + $0x30] sm:$0xff]   ;;  %v7454_v5 = vld [vmem:[%s10511_s3 + $0x38] sm:$0xff]   ;;  %10804 = vst [vmem:[#allocation7_spill] sm:$0xff] %v7465_v8  ;;  %v7496_v17 = vld [vmem:[%s10512_s4 + $0x8] sm:$0xff]  }
  0x41   : > { %5734 = vmatpush3.bf16.msra.mxu0 %v6752_v50  ;;  %v7413_v59 = vld [vmem:[%s7406_s22] sm:$0xff]  ;;  %v7416_v60 = vld [vmem:[%s7406_s22 + $0x8] sm:$0xff]  ;;  %10803 = vst [vmem:[#allocation6_spill] sm:$0xff] %v7454_v5  ;;  %v7457_v6 = vld [vmem:[%s7406_s22 + $0x10] sm:$0xff]  ;;  %s4966_s28 = scalar_lea.sflag [#allocation4], %s7384_s21  ;;  %s7087_s13 = scalar_lea.vmem %s10460_s20, 2048 }
  0x42   : > { %5766 = vmatpush3.bf16.msra.mxu1 %v7367_v51  ;;  %5735 = vmatprep.subr.bf16.mxu0 %v6754_v52  ;;  %v740_v62 = vpack.c.bf16 %v7416_v60, %v7413_v59  ;;  %v7429_v63 = vld [vmem:[%s7426_s8] sm:$0xf]  ;;  %v7432_v0 = vld [vmem:[%s7426_s8 + $0x4] sm:$0xf]  ;;  %v7460_v7 = vld [vmem:[%s7406_s22 + $0x18] sm:$0xff]  ;;  %p7088_p0 = scmp.ne.s32.totalorder %s10460_s20, %s7087_s13  ;;  %s7151_s14 = smov [#allocation3]  }
  0x43   : > { %5767 = vmatprep.subr.bf16.mxu1 %v7377_v53  ;;  %v5092_v1 = vcombine.low %v7429_v63, %v7432_v0  ;;  %v7469_v9 = vld [vmem:[%s7426_s8 + $0x8] sm:$0xf]  ;;  %v7472_v10 = vld [vmem:[%s7426_s8 + $0xc] sm:$0xf]  ;;  %v7475_v11 = vld [vmem:[%s7406_s22 + $0x20] sm:$0xff]  ;;  %v741_v13 = vpack.c.bf16 %v7460_v7, %v7457_v6  ;;  %s7091_s9 = sshll.u32 %s7151_s14, 4  ;;  %s7092_s9 = int_to_ptr.vmem [resolvable:$false] %s7091_s9 }
  0x44   : > { %5747 = vmatprep.mubr.bf16.mxu0 %v740_v62  ;;  %v7479_v12 = vld [vmem:[%s7406_s22 + $0x28] sm:$0xff]  ;;  %v7484_v14 = vld [vmem:[%s7426_s8 + $0x10] sm:$0xf]  ;;  %v7487_v15 = vld [vmem:[%s7426_s8 + $0x14] sm:$0xf]  ;;  %v5093_v16 = vcombine.low %v7469_v9, %v7472_v10  ;;  %p7089_p1 = pnand %p7088_p0, %p7233_p6  ;;  %s7093_s15 = scalar_lea.vmem %s7092_s9, 4096 }
  0x45   : > { %5736 = vmatpush3.bf16.msra.mxu0 %v6754_v52  ;;  %5779 = vmatprep.mubr.bf16.mxu1 %v5092_v1  ;;  %v742_v18 = vpack.c.bf16 %v7479_v12, %v7475_v11  ;;  %v5094_v19 = vcombine.low %v7484_v14, %v7487_v15  ;;  %v7504_v20 = vld [vmem:[%s7406_s22 + $0x30] sm:$0xff]  ;;  %v7507_v21 = vld [vmem:[%s7406_s22 + $0x38] sm:$0xff]  ;;  %v7522_v25 = vld [vmem:[%s7406_s22 + $0x40] sm:$0xff]  ;;  %p7094_p3 = scmp.lt.s32.totalorder %s10460_s20, %s7092_s9  ;;  %p7095_p4 = scmp.lt.s32.totalorder %s7093_s15, %s7087_s13 }
  0x46   : > { %5768 = vmatpush3.bf16.msra.mxu1 %v7377_v53  ;;  %5737 = vmatprep.subr.bf16.mxu0 %v6756_v54  ;;  %v7513_v22 = vld [vmem:[%s10512_s4 + $0x10] sm:$0xff]   ;;  %v7516_v23 = vld [vmem:[%s7426_s8 + $0x18] sm:$0xf]  ;;  %v7519_v24 = vld [vmem:[%s7426_s8 + $0x1c] sm:$0xf]  ;;  %v743_v27 = vpack.c.bf16 %v7507_v21, %v7504_v20  ;;  %p7090_p2 = pneg %p7089_p1 }
  0x47   : > { %5769 = vmatprep.subr.bf16.mxu1 %v7390_v55  ;;  %v7525_v26 = vld [vmem:[%s7406_s22 + $0x48] sm:$0xff]  ;;  %v7530_v28 = vld [vmem:[%s7426_s8 + $0x20] sm:$0xf]  ;;  %v7533_v29 = vld [vmem:[%s7426_s8 + $0x24] sm:$0xf]  ;;  %v5095_v30 = vcombine.low %v7516_v23, %v7519_v24  ;;  %p7096_p5 = por %p7095_p4, %p7094_p3 }
  0x48   : > { %v7541_v31 = vld [vmem:[%s10512_s4 + $0x18] sm:$0xff]   ;;  %v744_v32 = vpack.c.bf16 %v7525_v26, %v7522_v25  ;;  %v748_v33 = vld [vmem:[%s10514_s6] sm:$0xff]  ;;  %v749_v34 = vld [vmem:[%s10514_s6 + $0x8] sm:$0xff]  ;;  %v5096_v37 = vcombine.low %v7530_v28, %v7533_v29 }
  0x49   : > { %5738 = vmatpush3.bf16.msra.mxu0 %v6756_v54  ;;  %v750_v35 = vld [vmem:[%s10514_s6 + $0x10] sm:$0xff]  ;;  %v7560_v38 = vpack.c.bf16 %v749_v34, %v748_v33  ;;  %v751_v39 = vld [vmem:[%s10514_s6 + $0x18] sm:$0xff]  ;;  %v7571_v41 = vld [vmem:[%s10512_s4 + $0x20] sm:$0xff]   ;;  %p7097_p7 = pnand %p7096_p5, %p7090_p2 }
  0x4a   : > { %5770 = vmatpush3.bf16.msra.mxu1 %v7390_v55  ;;  %5739 = vmatprep.subr.bf16.mxu0 %v6758_v56  ;;  %v7556_v36 = vld [vmem:[%s7406_s22 + $0x50] sm:$0xff]  ;;  %v7566_v40 = vld [vmem:[%s7406_s22 + $0x58] sm:$0xff]  ;;  %v7574_v42 = vld [vmem:[%s7426_s8 + $0x28] sm:$0xf]  ;;  %v7586_v46 = vpack.c.bf16 %v751_v39, %v750_v35 }
  0x4b   : > { %5771 = vmatprep.subr.bf16.mxu1 %v7401_v57  ;;  %10805 = vst [vmem:[#allocation8_spill] sm:$0xff] %v7560_v38  ;;  %v7578_v43 = vld [vmem:[%s7426_s8 + $0x2c] sm:$0xf]  ;;  %v7581_v44 = vld [vmem:[%s7406_s22 + $0x60] sm:$0xff]  ;;  %v7590_v47 = vld [vmem:[%s7426_s8 + $0x30] sm:$0xf]  ;;  %v745_v54 = vpack.c.bf16 %v7566_v40, %v7556_v36 }
  0x4c   : > { %v7584_v45 = vld [vmem:[%s7406_s22 + $0x68] sm:$0xff]  ;;  %10806 = vst [vmem:[#allocation9_spill] sm:$0xff] %v7586_v46  ;;  %v7593_v48 = vld [vmem:[%s7426_s8 + $0x34] sm:$0xf]  ;;  %v752_v50 = vld [vmem:[%s10514_s6 + $0x20] sm:$0xff]  ;;  %v5097_v1 = vcombine.low %v7574_v42, %v7578_v43 }
  0x4d   : > { %5740 = vmatpush3.bf16.msra.mxu0 %v6758_v56  ;;  %v753_v52 = vld [vmem:[%s10514_s6 + $0x28] sm:$0xff]  ;;  %v755_v62 = vld [vmem:[%s10514_s6 + $0x38] sm:$0xff] }
  0x4e   : > { %5772 = vmatpush3.bf16.msra.mxu1 %v7401_v57  ;;  %5741 = vmatprep.subr.bf16.mxu0 %v6760_v58  ;;  %v7607_v56 = vld [vmem:[%s10512_s4 + $0x28] sm:$0xff]   ;;  %v7656_v33 = vld [vmem:[%s7426_s8 + $0x38] sm:$0xf]  ;;  %v7659_v34 = vld [vmem:[%s7426_s8 + $0x3c] sm:$0xf] }
  0x4f   : > { %5773 = vmatprep.subr.bf16.mxu1 %v7422_v61  ;;  %v757_v39 = vld [vmem:[%s10514_s6 + $0x48] sm:$0xff] }
  0x51   : > { %5742 = vmatpush3.bf16.msra.mxu0 %v6760_v58  ;;  %v754_v58 = vld [vmem:[%s10514_s6 + $0x30] sm:$0xff] }
  0x52   : > { %5774 = vmatpush3.bf16.msra.mxu1 %v7422_v61  ;;  %5743 = vmatprep.subr.bf16.mxu0 %v6762_v2 }
  0x53   : > { %5775 = vmatprep.subr.bf16.mxu1 %v7444_v3 }
  0x55   : > { %5744 = vmatpush3.bf16.msra.mxu0 %v6762_v2  ;;  %v7622_v2 = vpack.c.bf16 %v7413_v59, %v7413_v59  ;;  %v7638_v59 = vld [vmem:[%s7406_s22 + $0x70] sm:$0xff] }
  0x56   : > { %5776 = vmatpush3.bf16.msra.mxu1 %v7444_v3  ;;  %5745 = vmatprep.subr.bf16.mxu0 %v6764_v4 }
  0x57   : > { %5777 = vmatprep.subr.bf16.mxu1 %v7454_v5  ;;  %10807 = vst [vmem:[#allocation10_spill] sm:$0xff] %v7622_v2 }
  0x59   : > { %5746 = vmatpush3.bf16.msra.mxu0 %v6764_v4  ;;  %v7626_v4 = vpack.c.bf16 %v7416_v60, %v7416_v60  ;;  %v7641_v60 = vld [vmem:[%s7406_s22 + $0x78] sm:$0xff] }
  0x5a   : > { %5778 = vmatpush3.bf16.msra.mxu1 %v7454_v5  ;;  %5795 = vmatprep.subr.bf16.mxu0 %v7465_v8  ;;  %v747_v35 = vpack.c.bf16 %v7641_v60, %v7638_v59 }
  0x5b   : > { %6516 = vmatprep.subr.bf16.mxu1 %v7560_v38 }
  0x5c   : > { %5748 = vmatmul.mubr.bf16.vlgmr.msra.gmra.mrb[0].mxu0 %v741_v13  ;;  %v746_v13 = vpack.c.bf16 %v7584_v45, %v7581_v44 }
  0x5d   : > { %5796 = vmatpush3.bf16.msra.mxu0 %v7465_v8  ;;  %5780 = vmatmul.mubr.bf16.vlgmr.msra.gmra.mrb[0].mxu1 %v5093_v16  ;;  %v5098_v16 = vcombine.low %v7590_v47, %v7593_v48 }
  0x5e   : > { %5797 = vmatprep.subr.bf16.mxu0 %v7496_v17  ;;  %5751 = vmatprep.mubr.bf16.mxu0 %v742_v18  ;;  %v7633_v18 = vpack.c.bf16 %v753_v52, %v752_v50  ;;  %v5099_v50 = vcombine.low %v7656_v33, %v7659_v34  ;;  %v7695_v52 = vld [vmem:[%s10512_s4 + $0x38] sm:$0xff]  }
  0x5f   : > { %5783 = vmatprep.mubr.bf16.mxu1 %v5094_v19  ;;  %6518 = vmatpush3.bf16.msra.mxu1 %v7560_v38  ;;  %v7643_v19 = vpack.c.bf16 %v755_v62, %v754_v58 }
  0x60   : > { %6520 = vmatprep.subr.bf16.mxu1 %v7586_v46  ;;  %10808 = vst [vmem:[#allocation11_spill] sm:$0xff] %v7633_v18 }
  0x61   : > { %5798 = vmatpush3.bf16.msra.mxu0 %v7496_v17  ;;  %10809 = vst [vmem:[#allocation12_spill] sm:$0xff] %v7643_v19 }
  0x62   : > { %5799 = vmatprep.subr.bf16.mxu0 %v7513_v22 }
  0x63   : > { %6522 = vmatpush3.bf16.msra.mxu1 %v7586_v46 }
  0x64   : > { %5752 = vmatmul.mubr.bf16.gmra.mrb[4].mxu0 %v743_v27  ;;  %v1013_v27 = vsub.bf16 %v7429_v63, %v7622_v2  ;;  %6524 = vmatprep.subr.bf16.mxu1 %v7633_v18  ;;  %v7664_v63 = vpack.c.bf16 %v7457_v6, %v7457_v6  ;;  %v7681_v6 = vpack.c.bf16 %v7475_v11, %v7475_v11 }
  0x65   : > { %5800 = vmatpush3.bf16.msra.mxu0 %v7513_v22  ;;  %5784 = vmatmul.mubr.bf16.gmra.mrb[4].mxu1 %v5095_v30  ;;  %v1014_v30 = vsub.bf16 %v7432_v0, %v7626_v4  ;;  %v7668_v0 = vpack.c.bf16 %v7460_v7, %v7460_v7  ;;  %v7685_v7 = vpack.c.bf16 %v7479_v12, %v7479_v12  ;;  %v758_v12 = vld [vmem:[%s10514_s6 + $0x50] sm:$0xff] }
  0x66   : > { %5801 = vmatprep.subr.bf16.mxu0 %v7541_v31  ;;  %5755 = vmatprep.mubr.bf16.mxu0 %v744_v32  ;;  %v7653_v32 = vld [vmem:[%s10512_s4 + $0x30] sm:$0xff]   ;;  %v1015_v62 = vsub.bf16 %v7469_v9, %v7664_v63 }
  0x67   : > { %5787 = vmatprep.mubr.bf16.mxu1 %v5096_v37  ;;  %6526 = vmatpush3.bf16.msra.mxu1 %v7633_v18  ;;  %v756_v37 = vld [vmem:[%s10514_s6 + $0x40] sm:$0xff]  ;;  %v5108_v11 = vcombine.low %v1013_v27, %v1014_v30  ;;  %v7725_v30 = vpack.c.bf16 %v7507_v21, %v7507_v21 }
  0x68   : > { %6528 = vmatprep.subr.bf16.mxu1 %v7643_v19  ;;  %v7703_v58 = vpack.c.bf16 %v757_v39, %v756_v37  ;;  %v7752_v37 = vpack.c.bf16 %v7556_v36, %v7556_v36  ;;  %v7760_v39 = vpack.c.bf16 %v7581_v44, %v7581_v44 }
  0x69   : > { %5802 = vmatpush3.bf16.msra.mxu0 %v7541_v31  ;;  %v1020_v21 = vsub.bf16 %v7519_v24, %v7725_v30 }
  0x6a   : > { %5803 = vmatprep.subr.bf16.mxu0 %v7571_v41  ;;  %10810 = vst [vmem:[#allocation13_spill] sm:$0xff] %v7703_v58  ;;  %10812 = vst [vmem:[#allocation15_spill] sm:$0xff] %v7752_v37  ;;  %v1023_v36 = vsub.bf16 %v7574_v42, %v7752_v37  ;;  %v1025_v44 = vsub.bf16 %v7590_v47, %v7760_v39  ;;  %v7784_v42 = vpack.c.bf16 %v7641_v60, %v7641_v60  ;;  %v7798_v60 = vld [vmem:[%s7426_s8 + $0x44] sm:$0xf] }
  0x6b   : > { %6530 = vmatpush3.bf16.msra.mxu1 %v7643_v19  ;;  %10814 = vst [vmem:[#allocation17_spill] sm:$0xff] %v7760_v39 }
  0x6c   : > { %5756 = vmatmul.mubr.bf16.gmra.mrb[8].mxu0 %v745_v54  ;;  %v759_v54 = vld [vmem:[%s10514_s6 + $0x58] sm:$0xff]  ;;  %6532 = vmatprep.subr.bf16.mxu1 %v7703_v58  ;;  %10817 = vst [vmem:[#allocation20_spill] sm:$0xff] %v7784_v42 }
  0x6d   : > { %5804 = vmatpush3.bf16.msra.mxu0 %v7571_v41  ;;  %5788 = vmatmul.mubr.bf16.gmra.mrb[8].mxu1 %v5097_v1  ;;  %v1016_v1 = vsub.bf16 %v7472_v10, %v7668_v0  ;;  %v7715_v27 = vpack.c.bf16 %v759_v54, %v758_v12  ;;  %v7721_v10 = vpack.c.bf16 %v7504_v20, %v7504_v20  ;;  %v7809_v54 = vld [vmem:[%s7426_s8 + $0x4c] sm:$0xf] }
  0x6e   : > { %5805 = vmatprep.subr.bf16.mxu0 %v7607_v56  ;;  %5759 = vmatprep.mubr.bf16.mxu0 %v746_v13  ;;  %v1017_v13 = vsub.bf16 %v7484_v14, %v7681_v6  ;;  %v7730_v14 = vpack.c.bf16 %v7522_v25, %v7522_v25 }
  0x6f   : > { %5791 = vmatprep.mubr.bf16.mxu1 %v5098_v16  ;;  %v1018_v16 = vsub.bf16 %v7487_v15, %v7685_v7  ;;  %10811 = vst [vmem:[#allocation14_spill] sm:$0xff] %v7715_v27  ;;  %v5109_v9 = vcombine.low %v1015_v62, %v1016_v1  ;;  %6534 = vmatpush3.bf16.msra.mxu1 %v7703_v58  ;;  %v7813_v62 = vld [vmem:[%s7426_s8 + $0x50] sm:$0xf]  ;;  %v7816_v1 = vld [vmem:[%s7426_s8 + $0x54] sm:$0xf] }
  0x70   : > { %v7734_v15 = vpack.c.bf16 %v7525_v26, %v7525_v26  ;;  %6536 = vmatprep.subr.bf16.mxu1 %v7715_v27  ;;  %v1019_v20 = vsub.bf16 %v7516_v23, %v7721_v10  ;;  %v1021_v25 = vsub.bf16 %v7530_v28, %v7730_v14  ;;  %v7756_v23 = vpack.c.bf16 %v7566_v40, %v7566_v40 }
  0x71   : > { %5806 = vmatpush3.bf16.msra.mxu0 %v7607_v56  ;;  %v7764_v28 = vpack.c.bf16 %v7584_v45, %v7584_v45 }
  0x72   : > { %5807 = vmatprep.subr.bf16.mxu0 %v7653_v32  ;;  %v1022_v26 = vsub.bf16 %v7533_v29, %v7734_v15  ;;  %10813 = vst [vmem:[#allocation16_spill] sm:$0xff] %v7756_v23  ;;  %v5111_v24 = vcombine.low %v1019_v20, %v1020_v21  ;;  %v1024_v40 = vsub.bf16 %v7578_v43, %v7756_v23  ;;  %v7832_v20 = vld [vmem:[%s7426_s8 + $0x60] sm:$0xf]  ;;  %v7835_v21 = vld [vmem:[%s7426_s8 + $0x64] sm:$0xf] }
  0x73   : > { %6538 = vmatpush3.bf16.msra.mxu1 %v7715_v27  ;;  %10815 = vst [vmem:[#allocation18_spill] sm:$0xff] %v7764_v28  ;;  %v1026_v45 = vsub.bf16 %v7593_v48, %v7764_v28  ;;  %v1028_v48 = vsub.bf16 %v7659_v34, %v7784_v42  ;;  %v7806_v34 = vld [vmem:[%s7426_s8 + $0x48] sm:$0xf] }
  0x74   : > { %5760 = vmatmul.mubr.bf16.gmra.mrb[12].mxu0 %v747_v35  ;;  %v5110_v35 = vcombine.low %v1017_v13, %v1018_v16  ;;  %v5112_v29 = vcombine.low %v1021_v25, %v1022_v26  ;;  %v5113_v43 = vcombine.low %v1023_v36, %v1024_v40  ;;  %v5141_v13 = vcombine.low %v7806_v34, %v7809_v54  ;;  %v7852_v36 = vld [vmem:[%s7426_s8 + $0x70] sm:$0xf]  ;;  %v7855_v40 = vld [vmem:[%s7426_s8 + $0x74] sm:$0xf] }
  0x75   : > { %5808 = vmatpush3.bf16.msra.mxu0 %v7653_v32  ;;  %5792 = vmatmul.mubr.bf16.gmra.mrb[12].mxu1 %v5099_v50  ;;  %v7780_v50 = vpack.c.bf16 %v7638_v59, %v7638_v59  ;;  %v7795_v59 = vld [vmem:[%s7426_s8 + $0x40] sm:$0xf]  ;;  %v5142_v16 = vcombine.low %v7813_v62, %v7816_v1  ;;  %v5144_v26 = vcombine.low %v7832_v20, %v7835_v21 }
  0x76   : > { %5809 = vmatprep.subr.bf16.mxu0 %v7695_v52  ;;  %5811 = vmatprep.mubr.bf16.mxu0 %v5108_v11  ;;  %v5114_v11 = vcombine.low %v1025_v44, %v1026_v45  ;;  %v5146_v45 = vcombine.low %v7852_v36, %v7855_v40 }
  0x77   : > { %10816 = vst [vmem:[#allocation19_spill] sm:$0xff] %v7780_v50  ;;  %v1027_v47 = vsub.bf16 %v7656_v33, %v7780_v50  ;;  %v5140_v33 = vcombine.low %v7795_v59, %v7798_v60 }
  0x79   : > { %5810 = vmatpush3.bf16.msra.mxu0 %v7695_v52  ;;  %v5115_v12 = vcombine.low %v1027_v47, %v1028_v48  ;;  %v7871_v47 = vld [vmem:[%s7426_s8 + $0x78] sm:$0xf]  ;;  %v7874_v48 = vld [vmem:[%s7426_s8 + $0x7c] sm:$0xf] }
  0x7a   : > { %5883 = vmatprep.subr.bf16.mxu0 %v7358_v49 }
  0x7c   : > { %5812 = vmatmul.mubr.bf16.vlgmr.msra.gmra.mrb[16].mxu0 %v5109_v9  ;;  %v7825_v9 = vld [vmem:[%s7426_s8 + $0x58] sm:$0xf] }
  0x7d   : > { %5884 = vmatpush3.bf16.msra.mxu0 %v7358_v49  ;;  %5815 = vmatprep.mubr.bf16.mxu0 %v5110_v35  ;;  %v7828_v35 = vld [vmem:[%s7426_s8 + $0x5c] sm:$0xf] }
  0x7e   : > { %5885 = vmatprep.subr.bf16.mxu0 %v7367_v51  ;;  %v5143_v25 = vcombine.low %v7825_v9, %v7828_v35 }
  0x81   : > { %5886 = vmatpush3.bf16.msra.mxu0 %v7367_v51 }
  0x82   : > { %5887 = vmatprep.subr.bf16.mxu0 %v7377_v53 }
  0x84   : > { %5816 = vmatmul.mubr.bf16.gmra.mrb[20].mxu0 %v5111_v24  ;;  %v7845_v24 = vld [vmem:[%s7426_s8 + $0x68] sm:$0xf] }
  0x85   : > { %5888 = vmatpush3.bf16.msra.mxu0 %v7377_v53  ;;  %5819 = vmatprep.mubr.bf16.mxu0 %v5112_v29  ;;  %v7848_v29 = vld [vmem:[%s7426_s8 + $0x6c] sm:$0xf] }
  0x86   : > { %5889 = vmatprep.subr.bf16.mxu0 %v7390_v55  ;;  %v5145_v44 = vcombine.low %v7845_v24, %v7848_v29 }
  0x89   : > { %5890 = vmatpush3.bf16.msra.mxu0 %v7390_v55 }
  0x8a   : > { %5891 = vmatprep.subr.bf16.mxu0 %v7401_v57 }
  0x8c   : > { %5820 = vmatmul.mubr.bf16.gmra.mrb[24].mxu0 %v5113_v43  ;;  %v760_v43 = vld [vmem:[%s10514_s6 + $0x60] sm:$0xff] }
  0x8d   : > { %5892 = vmatpush3.bf16.msra.mxu0 %v7401_v57  ;;  %5823 = vmatprep.mubr.bf16.mxu0 %v5114_v11  ;;  %v761_v11 = vld [vmem:[%s10514_s6 + $0x68] sm:$0xff] }
  0x8e   : > { %5893 = vmatprep.subr.bf16.mxu0 %v7422_v61 }
  0x91   : > { %5894 = vmatpush3.bf16.msra.mxu0 %v7422_v61 }
  0x92   : > { %5895 = vmatprep.subr.bf16.mxu0 %v7444_v3 }
  0x94   : > { %5824 = vmatmul.mubr.bf16.gmra.mrb[28].mxu0 %v5115_v12  ;;  %v7876_v12 = vpack.c.bf16 %v761_v11, %v760_v43 }
  0x95   : > { %5896 = vmatpush3.bf16.msra.mxu0 %v7444_v3  ;;  %5899 = vmatprep.mubr.bf16.mxu0 %v5140_v33  ;;  %v5147_v33 = vcombine.low %v7871_v47, %v7874_v48 }
  0x96   : > { %5897 = vmatprep.subr.bf16.mxu0 %v7454_v5  ;;  %10818 = vst [vmem:[#allocation21_spill] sm:$0xff] %v7876_v12  ;;  %6540 = vmatprep.subr.bf16.mxu1 %v7876_v12 }
  0x97   : > { %6542 = vmatpush3.bf16.msra.mxu1 %v7876_v12 }
  0x99   : > { %5898 = vmatpush3.bf16.msra.mxu0 %v7454_v5 }
  0x9a   : > { %6548 = vmatprep.subr.bf16.mxu0 %v7560_v38 }
  0x9c   : > { %5900 = vmatmul.mubr.bf16.vlgmr.msra.gmra.mrb[32].mxu0 %v5141_v13  ;;  %v762_v13 = vld [vmem:[%s10514_s6 + $0x70] sm:$0xff] }
  0x9d   : > { %5903 = vmatprep.mubr.bf16.mxu0 %v5142_v16  ;;  %6550 = vmatpush3.bf16.msra.mxu0 %v7560_v38  ;;  %v763_v16 = vld [vmem:[%s10514_s6 + $0x78] sm:$0xff] }
  0x9e   : > { %6552 = vmatprep.subr.bf16.mxu0 %v7586_v46 }
  0xa1   : > { %6554 = vmatpush3.bf16.msra.mxu0 %v7586_v46 }
  0xa2   : > { %6556 = vmatprep.subr.bf16.mxu0 %v7633_v18 }
  0xa4   : > { %5904 = vmatmul.mubr.bf16.gmra.mrb[36].mxu0 %v5143_v25  ;;  %v7890_v25 = vpack.c.bf16 %v763_v16, %v762_v13 }
  0xa5   : > { %5907 = vmatprep.mubr.bf16.mxu0 %v5144_v26  ;;  %6558 = vmatpush3.bf16.msra.mxu0 %v7633_v18 }
  0xa6   : > { %6560 = vmatprep.subr.bf16.mxu0 %v7643_v19  ;;  %10819 = vst [vmem:[#allocation22_spill] sm:$0xff] %v7890_v25  ;;  %6544 = vmatprep.subr.bf16.mxu1 %v7890_v25 }
  0xa7   : > { %6546 = vmatpush3.bf16.msra.mxu1 %v7890_v25 }
  0xa8   : > { %5915 = vmatprep.subr.bf16.mxu1 %v7465_v8 }
  0xa9   : > { %6562 = vmatpush3.bf16.msra.mxu0 %v7643_v19 }
  0xaa   : > { %6564 = vmatprep.subr.bf16.mxu0 %v7703_v58 }
  0xac   : > { %5908 = vmatmul.mubr.bf16.gmra.mrb[40].mxu0 %v5145_v44 }
  0xad   : > { %5911 = vmatprep.mubr.bf16.mxu0 %v5146_v45  ;;  %6566 = vmatpush3.bf16.msra.mxu0 %v7703_v58 }
  0xae   : > { %6568 = vmatprep.subr.bf16.mxu0 %v7715_v27 }
  0xb1   : > { %6570 = vmatpush3.bf16.msra.mxu0 %v7715_v27 }
  0xb2   : > { %6572 = vmatprep.subr.bf16.mxu0 %v7876_v12 }
  0xb4   : > { %5912 = vmatmul.mubr.bf16.gmra.mrb[44].mxu0 %v5147_v33 }
  0xb5   : > { %6574 = vmatpush3.bf16.msra.mxu0 %v7876_v12 }
  0xb6   : > { %6576 = vmatprep.subr.bf16.mxu0 %v7890_v25 }
  0xb9   : > { %6578 = vmatpush3.bf16.msra.mxu0 %v7890_v25 }
  0xba   : > { %6035 = vmatprep.subr.bf16.mxu0 %v7465_v8 }
 0x12f   : > { %v5749_v26 = vpop.f32.mrb[0].mxu0 }
 0x130   : > { %v862_v44 = vpop.f32.mrb[1].mxu0  ;;  %v5781_v45 = vpop.f32.mrb[0].mxu1  ;;  %v7903_v33 = vmul.f32 0.17677669, %v5749_v26 }
 0x131   : > { %v7901_v43 = vmul.f32 0.17677669, %v862_v44  ;;  %v5750_v11 = vpop.f32.mrb[2].mxu0  ;;  %v1175_v13 = vpop.f32.mrb[1].mxu1 }
 0x132   : > { %10821 = vst [vmem:[#allocation24_spill] sm:$0xff] %v7903_v33  ;;  %v865_v16 = vpop.f32.mrb[3].mxu0  ;;  %v5782_v27 = vpop.f32.mrb[2].mxu1  ;;  %v7908_v18 = vmul.f32 0.17677669, %v5750_v11  ;;  %v1449_v46 = vmul.f32 %v5781_v45, %v7903_v33 }
 0x133   : > { %10820 = vst [vmem:[#allocation23_spill] sm:$0xff] %v7901_v43  ;;  %v7905_v58 = vmul.f32 0.17677669, %v865_v16  ;;  %v1447_v12 = vmul.f32 %v1175_v13, %v7901_v43  ;;  %v1178_v19 = vpop.f32.mrb[3].mxu1 }
 0x134   : > { %10823 = vst [vmem:[#allocation26_spill] sm:$0xff] %v7908_v18  ;;  %v1450_v16 = vmul.f32 %v5782_v27, %v7908_v18 }
 0x135   : > { %10822 = vst [vmem:[#allocation25_spill] sm:$0xff] %v7905_v58  ;;  %v1448_v25 = vmul.f32 %v1178_v19, %v7905_v58  ;;  %5859 = vmatprep.mubr.f32.mxu1 %v1447_v12 }
 0x137   : > { %v5753_v44 = vpop.f32.mrb[4].mxu0  ;;  %5860 = vmatmul.mubr.f32.vlgmr.msra.gmra.mrb[16].mxu1 %v1448_v25 }
 0x138   : > { %v878_v38 = vpop.f32.mrb[5].mxu0  ;;  %5862 = vmatprep.mubr.f32.mxu1 %v1449_v46  ;;  %5916 = vmatpush3.bf16.msra.mxu1 %v7465_v8  ;;  %v5785_v26 = vpop.f32.mrb[4].mxu1  ;;  %v7917_v11 = vmul.f32 0.17677669, %v5753_v44 }
 0x139   : > { %v7914_v5 = vmul.f32 0.17677669, %v878_v38  ;;  %v5754_v13 = vpop.f32.mrb[6].mxu0  ;;  %v1191_v43 = vpop.f32.mrb[5].mxu1  ;;  %5917 = vmatprep.subr.bf16.mxu1 %v7496_v17 }
 0x13a   : > { %10825 = vst [vmem:[#allocation28_spill] sm:$0xff] %v7917_v11  ;;  %v881_v19 = vpop.f32.mrb[7].mxu0  ;;  %v5786_v12 = vpop.f32.mrb[6].mxu1  ;;  %v7923_v8 = vmul.f32 0.17677669, %v5754_v13  ;;  %v1453_v27 = vmul.f32 %v5785_v26, %v7917_v11 }
 0x13b   : > { %10824 = vst [vmem:[#allocation27_spill] sm:$0xff] %v7914_v5  ;;  %v7919_v45 = vmul.f32 0.17677669, %v881_v19  ;;  %v1451_v25 = vmul.f32 %v1191_v43, %v7914_v5  ;;  %5863 = vmatmul.mubr.f32.gmra.mrb[18].mxu1 %v1450_v16  ;;  %v1194_v46 = vpop.f32.mrb[7].mxu1 }
 0x13c   : > { %5918 = vmatpush3.bf16.msra.mxu1 %v7496_v17  ;;  %10827 = vst [vmem:[#allocation30_spill] sm:$0xff] %v7923_v8  ;;  %v1454_v16 = vmul.f32 %v5786_v12, %v7923_v8 }
 0x13d   : > { %10826 = vst [vmem:[#allocation29_spill] sm:$0xff] %v7919_v45  ;;  %v1452_v38 = vmul.f32 %v1194_v46, %v7919_v45  ;;  %5865 = vmatprep.mubr.f32.mxu1 %v1451_v25  ;;  %5919 = vmatprep.subr.bf16.mxu1 %v7513_v22 }
 0x13f   : > { %v5757_v44 = vpop.f32.mrb[8].mxu0  ;;  %5866 = vmatmul.mubr.f32.gmra.mrb[20].mxu1 %v1452_v38 }
 0x140   : > { %v894_v18 = vpop.f32.mrb[9].mxu0  ;;  %5868 = vmatprep.mubr.f32.mxu1 %v1453_v27  ;;  %5920 = vmatpush3.bf16.msra.mxu1 %v7513_v22  ;;  %v5789_v43 = vpop.f32.mrb[8].mxu1  ;;  %v7933_v25 = vmul.f32 0.17677669, %v5757_v44 }
 0x141   : > { %v7930_v19 = vmul.f32 0.17677669, %v894_v18  ;;  %v5758_v13 = vpop.f32.mrb[10].mxu0  ;;  %v1207_v5 = vpop.f32.mrb[9].mxu1  ;;  %5921 = vmatprep.subr.bf16.mxu1 %v7541_v31 }
 0x142   : > { %10829 = vst [vmem:[#allocation32_spill] sm:$0xff] %v7933_v25  ;;  %v897_v46 = vpop.f32.mrb[11].mxu0  ;;  %v5790_v45 = vpop.f32.mrb[10].mxu1  ;;  %v7939_v11 = vmul.f32 0.17677669, %v5758_v13  ;;  %v1457_v12 = vmul.f32 %v5789_v43, %v7933_v25 }
 0x143   : > { %10828 = vst [vmem:[#allocation31_spill] sm:$0xff] %v7930_v19  ;;  %v7935_v26 = vmul.f32 0.17677669, %v897_v46  ;;  %v1455_v38 = vmul.f32 %v1207_v5, %v7930_v19  ;;  %5869 = vmatmul.mubr.f32.gmra.mrb[22].mxu1 %v1454_v16  ;;  %v1210_v27 = vpop.f32.mrb[11].mxu1 }
 0x144   : > { %5922 = vmatpush3.bf16.msra.mxu1 %v7541_v31  ;;  %10831 = vst [vmem:[#allocation34_spill] sm:$0xff] %v7939_v11  ;;  %v1458_v16 = vmul.f32 %v5790_v45, %v7939_v11  ;;  %v1626_v45 = vsub.bf16 %v7798_v60, %v7626_v4 }
 0x145   : > { %10830 = vst [vmem:[#allocation33_spill] sm:$0xff] %v7935_v26  ;;  %v1456_v18 = vmul.f32 %v1210_v27, %v7935_v26  ;;  %5871 = vmatprep.mubr.f32.mxu1 %v1455_v38  ;;  %5923 = vmatprep.subr.bf16.mxu1 %v7571_v41 }
 0x147   : > { %v5761_v44 = vpop.f32.mrb[12].mxu0  ;;  %5872 = vmatmul.mubr.f32.gmra.mrb[24].mxu1 %v1456_v18 }
 0x148   : > { %v910_v8 = vpop.f32.mrb[13].mxu0  ;;  %5874 = vmatprep.mubr.f32.mxu1 %v1457_v12  ;;  %5924 = vmatpush3.bf16.msra.mxu1 %v7571_v41  ;;  %v5793_v5 = vpop.f32.mrb[12].mxu1  ;;  %v7949_v38 = vmul.f32 0.17677669, %v5761_v44 }
 0x149   : > { %v7946_v46 = vmul.f32 0.17677669, %v910_v8  ;;  %v5762_v13 = vpop.f32.mrb[14].mxu0  ;;  %v1223_v19 = vpop.f32.mrb[13].mxu1  ;;  %5925 = vmatprep.subr.bf16.mxu1 %v7607_v56  ;;  %v1625_v8 = vsub.bf16 %v7795_v59, %v7622_v2  ;;  %v1628_v59 = vsub.bf16 %v7809_v54, %v7668_v0 }
 0x14a   : > { %v913_v27 = vpop.f32.mrb[15].mxu0  ;;  %v5794_v26 = vpop.f32.mrb[14].mxu1  ;;  %v7959_v11 = vmul.f32 0.17677669, %v5762_v13  ;;  %v1629_v13 = vsub.bf16 %v7813_v62, %v7681_v6 }
 0x14b   : > { %10832 = vst [vmem:[#allocation35_spill] sm:$0xff] %v7946_v46  ;;  %v7951_v43 = vmul.f32 0.17677669, %v913_v27  ;;  %v1459_v18 = vmul.f32 %v1223_v19, %v7946_v46  ;;  %5875 = vmatmul.mubr.f32.gmra.mrb[26].mxu1 %v1458_v16  ;;  %v1226_v12 = vpop.f32.mrb[15].mxu1  ;;  %v1461_v27 = vmul.f32 %v5793_v5, %v7949_v38  ;;  %v1627_v16 = vsub.bf16 %v7806_v34, %v7664_v63 }
 0x14c   : > { %5926 = vmatpush3.bf16.msra.mxu1 %v7607_v56  ;;  %v5148_v60 = vcombine.low %v1625_v8, %v1626_v45  ;;  %v1630_v5 = vsub.bf16 %v7816_v1, %v7685_v7  ;;  %v1631_v1 = vsub.bf16 %v7825_v9, %v7721_v10 }
 0x14d   : > { %v1460_v44 = vmul.f32 %v1226_v12, %v7951_v43  ;;  %5877 = vmatprep.mubr.f32.mxu1 %v1459_v18  ;;  %5927 = vmatprep.subr.bf16.mxu1 %v7653_v32  ;;  %v1462_v18 = vmul.f32 %v5794_v26, %v7959_v11  ;;  %v5149_v54 = vcombine.low %v1627_v16, %v1628_v59 }
 0x14e   : > { %v5150_v8 = vcombine.low %v1629_v13, %v1630_v5  ;;  %v1632_v26 = vsub.bf16 %v7828_v35, %v7725_v30  ;;  %v1638_v13 = vsub.bf16 %v7855_v40, %v7764_v28  ;;  %v1640_v40 = vsub.bf16 %v7874_v48, %v7784_v42 }
 0x14f   : > { %v7964_v19 = vpop.f32.mrb[16].mxu0  ;;  %5878 = vmatmul.mubr.f32.gmra.mrb[28].mxu1 %v1460_v44  ;;  %v1633_v44 = vsub.bf16 %v7832_v20, %v7730_v14  ;;  %v1635_v20 = vsub.bf16 %v7845_v24, %v7752_v37 }
 0x150   : > { %10833 = vst [vmem:[#allocation36_spill] sm:$0xff] %v7964_v19  ;;  %v7970_v2 = vpop.f32.mrb[17].mxu0  ;;  %5880 = vmatprep.mubr.f32.mxu1 %v1461_v27  ;;  %5928 = vmatpush3.bf16.msra.mxu1 %v7653_v32  ;;  %v1634_v27 = vsub.bf16 %v7835_v21, %v7734_v15  ;;  %v5151_v9 = vcombine.low %v1631_v1, %v1632_v26  ;;  %v8041_v1 = vld [vmem:[%s7426_s8 + $0x84] sm:$0xf]  ;;  %v8135_v19 = vld [vmem:[%s7426_s8 + $0xbc] sm:$0xf] }
 0x151   : > { %10834 = vst [vmem:[#allocation37_spill] sm:$0xff] %v7970_v2  ;;  %v7978_v12 = vpop.f32.mrb[18].mxu0  ;;  %5929 = vmatprep.subr.bf16.mxu1 %v7695_v52  ;;  %v1636_v21 = vsub.bf16 %v7848_v29, %v7756_v23 }
 0x152   : > { %10835 = vst [vmem:[#allocation38_spill] sm:$0xff] %v7978_v12  ;;  %v7981_v34 = vpop.f32.mrb[19].mxu0  ;;  %v5152_v35 = vcombine.low %v1633_v44, %v1634_v27  ;;  %v8051_v27 = vld [vmem:[%s7426_s8 + $0x88] sm:$0xf]  ;;  %v10863_v12 = vld [vmem:[#allocation13_spill] sm:$0xff] }
 0x153   : > { %10836 = vst [vmem:[#allocation39_spill] sm:$0xff] %v7981_v34  ;;  %5881 = vmatmul.mubr.f32.gmra.mrb[30].mxu1 %v1462_v18  ;;  %v5153_v29 = vcombine.low %v1635_v20, %v1636_v21 }
 0x154   : > { %5930 = vmatpush3.bf16.msra.mxu1 %v7695_v52  ;;  %5931 = vmatprep.mubr.bf16.mxu1 %v5148_v60 }
 0x155   : > { %6003 = vmatprep.subr.bf16.mxu1 %v7358_v49 }
 0x157   : > { %v7985_v62 = vpop.f32.mrb[20].mxu0  ;;  %5932 = vmatmul.mubr.bf16.vlgmr.msra.gmra.mrb[32].mxu1 %v5149_v54 }
 0x158   : > { %10837 = vst [vmem:[#allocation40_spill] sm:$0xff] %v7985_v62  ;;  %v7991_v45 = vpop.f32.mrb[21].mxu0  ;;  %6004 = vmatpush3.bf16.msra.mxu1 %v7358_v49  ;;  %5935 = vmatprep.mubr.bf16.mxu1 %v5150_v8  ;;  %v8038_v8 = vld [vmem:[%s7426_s8 + $0x80] sm:$0xf] }
 0x159   : > { %10838 = vst [vmem:[#allocation41_spill] sm:$0xff] %v7991_v45  ;;  %v7998_v16 = vpop.f32.mrb[22].mxu0  ;;  %6005 = vmatprep.subr.bf16.mxu1 %v7367_v51 }
 0x15a   : > { %10839 = vst [vmem:[#allocation42_spill] sm:$0xff] %v7998_v16  ;;  %v8001_v59 = vpop.f32.mrb[23].mxu0 }
 0x15b   : > { %10840 = vst [vmem:[#allocation43_spill] sm:$0xff] %v8001_v59  ;;  %v8107_v59 = vld [vmem:[%s7426_s8 + $0xac] sm:$0xf] }
 0x15c   : > { %6006 = vmatpush3.bf16.msra.mxu1 %v7367_v51  ;;  %v1637_v51 = vsub.bf16 %v7852_v36, %v7760_v39  ;;  %v1639_v36 = vsub.bf16 %v7871_v47, %v7780_v50 }
 0x15d   : > { %6007 = vmatprep.subr.bf16.mxu1 %v7377_v53 }
 0x15e   : > { %v5154_v18 = vcombine.low %v1637_v51, %v1638_v13  ;;  %v5155_v48 = vcombine.low %v1639_v36, %v1640_v40  ;;  %v10850_v51 = vld [vmem:[#allocation6_spill] sm:$0xff]  ;;  %v8062_v13 = vld [vmem:[%s7426_s8 + $0x94] sm:$0xf] }
 0x15f   : > { %v8005_v49 = vpop.f32.mrb[24].mxu0  ;;  %5936 = vmatmul.mubr.bf16.gmra.mrb[36].mxu1 %v5151_v9  ;;  %v8054_v9 = vld [vmem:[%s7426_s8 + $0x8c] sm:$0xf] }
 0x160   : > { %10841 = vst [vmem:[#allocation44_spill] sm:$0xff] %v8005_v49  ;;  %v8011_v60 = vpop.f32.mrb[25].mxu0  ;;  %6008 = vmatpush3.bf16.msra.mxu1 %v7377_v53  ;;  %5939 = vmatprep.mubr.bf16.mxu1 %v5152_v35  ;;  %v10849_v35 = vld [vmem:[#allocation23_spill] sm:$0xff] }
 0x161   : > { %10842 = vst [vmem:[#allocation45_spill] sm:$0xff] %v8011_v60  ;;  %v8018_v5 = vpop.f32.mrb[26].mxu0  ;;  %6009 = vmatprep.subr.bf16.mxu1 %v7390_v55  ;;  %v10858_v60 = vld [vmem:[#allocation11_spill] sm:$0xff] }
 0x162   : > { %10843 = vst [vmem:[#allocation46_spill] sm:$0xff] %v8018_v5  ;;  %v8021_v24 = vpop.f32.mrb[27].mxu0  ;;  %v8104_v49 = vld [vmem:[%s7426_s8 + $0xa8] sm:$0xf] }
 0x163   : > { %10844 = vst [vmem:[#allocation47_spill] sm:$0xff] %v8021_v24 }
 0x164   : > { %6010 = vmatpush3.bf16.msra.mxu1 %v7390_v55 }
 0x165   : > { %6011 = vmatprep.subr.bf16.mxu1 %v7401_v57 }
 0x167   : > { %v8025_v53 = vpop.f32.mrb[28].mxu0  ;;  %5940 = vmatmul.mubr.bf16.gmra.mrb[40].mxu1 %v5153_v29 }
 0x168   : > { %10845 = vst [vmem:[#allocation48_spill] sm:$0xff] %v8025_v53  ;;  %v8031_v54 = vpop.f32.mrb[29].mxu0  ;;  %6012 = vmatpush3.bf16.msra.mxu1 %v7401_v57  ;;  %5943 = vmatprep.mubr.bf16.mxu1 %v5154_v18  ;;  %v5172_v57 = vcombine.low %v8038_v8, %v8041_v1 }
 0x169   : > { %10846 = vst [vmem:[#allocation49_spill] sm:$0xff] %v8031_v54  ;;  %v8034_v55 = vpop.f32.mrb[30].mxu0  ;;  %6013 = vmatprep.subr.bf16.mxu1 %v7422_v61 }
 0x16a   : > { %10847 = vst [vmem:[#allocation50_spill] sm:$0xff] %v8034_v55  ;;  %v8043_v47 = vpop.f32.mrb[31].mxu0 }
 0x16b   : > { %10848 = vst [vmem:[#allocation51_spill] sm:$0xff] %v8043_v47  ;;  %v8079_v47 = vld [vmem:[%s7426_s8 + $0x9c] sm:$0xf] }
 0x16c   : > { %6014 = vmatpush3.bf16.msra.mxu1 %v7422_v61  ;;  %v8059_v61 = vld [vmem:[%s7426_s8 + $0x90] sm:$0xf] }
 0x16d   : > { %6015 = vmatprep.subr.bf16.mxu1 %v7444_v3  ;;  %v5174_v40 = vcombine.low %v8059_v61, %v8062_v13 }
 0x16f   : > { %v5901_v26 = vpop.f32.mrb[32].mxu0  ;;  %5944 = vmatmul.mubr.bf16.gmra.mrb[44].mxu1 %v5155_v48  ;;  %v10851_v48 = vld [vmem:[#allocation8_spill] sm:$0xff] }
 0x170   : > { %v1723_v44 = vpop.f32.mrb[33].mxu0  ;;  %6016 = vmatpush3.bf16.msra.mxu1 %v7444_v3  ;;  %6019 = vmatprep.mubr.bf16.mxu1 %v5172_v57  ;;  %v5173_v3 = vcombine.low %v8051_v27, %v8054_v9  ;;  %v1933_v36 = vmul.f32 %v5901_v26, %v7903_v33  ;;  %v10852_v57 = vld [vmem:[#allocation7_spill] sm:$0xff] }
 0x171   : > { %v1931_v20 = vmul.f32 %v1723_v44, %v10849_v35  ;;  %v5902_v21 = vpop.f32.mrb[34].mxu0  ;;  %6017 = vmatprep.subr.bf16.mxu1 %v10850_v51  ;;  %v10853_v44 = vld [vmem:[#allocation26_spill] sm:$0xff] }
 0x172   : > { %v1726_v29 = vpop.f32.mrb[35].mxu0 }
 0x173   : > { %v1932_v18 = vmul.f32 %v1726_v29, %v7905_v58  ;;  %5979 = vmatprep.mubr.f32.mxu0 %v1931_v20  ;;  %v1934_v20 = vmul.f32 %v5902_v21, %v10853_v44  ;;  %v10855_v21 = vld [vmem:[#allocation9_spill] sm:$0xff] }
 0x174   : > { %6018 = vmatpush3.bf16.msra.mxu1 %v10850_v51  ;;  %v8076_v51 = vld [vmem:[%s7426_s8 + $0x98] sm:$0xf] }
 0x175   : > { %5980 = vmatmul.mubr.f32.vlgmr.msra.gmra.mrb[48].mxu0 %v1932_v18  ;;  %6580 = vmatprep.subr.bf16.mxu1 %v10851_v48  ;;  %v10854_v18 = vld [vmem:[#allocation27_spill] sm:$0xff] }
 0x176   : > { %5982 = vmatprep.mubr.f32.mxu0 %v1933_v36  ;;  %6036 = vmatpush3.bf16.msra.mxu0 %v10852_v57  ;;  %v8084_v36 = vld [vmem:[%s7426_s8 + $0xa0] sm:$0xf]  ;;  %v8087_v57 = vld [vmem:[%s7426_s8 + $0xa4] sm:$0xf] }
 0x177   : > { %v5905_v29 = vpop.f32.mrb[36].mxu0  ;;  %6020 = vmatmul.mubr.bf16.vlgmr.msra.gmra.mrb[48].mxu1 %v5173_v3  ;;  %6037 = vmatprep.subr.bf16.mxu0 %v7496_v17  ;;  %v5176_v5 = vcombine.low %v8084_v36, %v8087_v57 }
 0x178   : > { %v1739_v26 = vpop.f32.mrb[37].mxu0  ;;  %6023 = vmatprep.mubr.bf16.mxu1 %v5174_v40  ;;  %6582 = vmatpush3.bf16.msra.mxu1 %v10851_v48  ;;  %v10856_v40 = vld [vmem:[#allocation29_spill] sm:$0xff] }
 0x179   : > { %v1935_v55 = vmul.f32 %v1739_v26, %v10854_v18  ;;  %v5906_v54 = vpop.f32.mrb[38].mxu0  ;;  %5983 = vmatmul.mubr.f32.gmra.mrb[50].mxu0 %v1934_v20  ;;  %6584 = vmatprep.subr.bf16.mxu1 %v10855_v21  ;;  %v5175_v26 = vcombine.low %v8076_v51, %v8079_v47  ;;  %v10857_v20 = vld [vmem:[#allocation28_spill] sm:$0xff] }
 0x17a   : > { %v1742_v3 = vpop.f32.mrb[39].mxu0  ;;  %6038 = vmatpush3.bf16.msra.mxu0 %v7496_v17  ;;  %v1937_v24 = vmul.f32 %v5905_v29, %v10857_v20  ;;  %v10859_v17 = vld [vmem:[#allocation30_spill] sm:$0xff] }
 0x17b   : > { %v1936_v53 = vmul.f32 %v1742_v3, %v10856_v40  ;;  %5985 = vmatprep.mubr.f32.mxu0 %v1935_v55  ;;  %6039 = vmatprep.subr.bf16.mxu0 %v7513_v22  ;;  %v1938_v55 = vmul.f32 %v5906_v54, %v10859_v17  ;;  %v10861_v54 = vld [vmem:[#allocation12_spill] sm:$0xff] }
 0x17c   : > { %6586 = vmatpush3.bf16.msra.mxu1 %v10855_v21 }
 0x17d   : > { %5986 = vmatmul.mubr.f32.gmra.mrb[52].mxu0 %v1936_v53  ;;  %6588 = vmatprep.subr.bf16.mxu1 %v10858_v60  ;;  %v10860_v53 = vld [vmem:[#allocation31_spill] sm:$0xff] }
 0x17e   : > { %5988 = vmatprep.mubr.f32.mxu0 %v1937_v24  ;;  %6040 = vmatpush3.bf16.msra.mxu0 %v7513_v22  ;;  %v8112_v24 = vld [vmem:[%s7426_s8 + $0xb0] sm:$0xf]  ;;  %v8115_v22 = vld [vmem:[%s7426_s8 + $0xb4] sm:$0xf] }
 0x17f   : > { %v5909_v3 = vpop.f32.mrb[40].mxu0  ;;  %6024 = vmatmul.mubr.bf16.gmra.mrb[52].mxu1 %v5175_v26  ;;  %6041 = vmatprep.subr.bf16.mxu0 %v7541_v31  ;;  %v5178_v34 = vcombine.low %v8112_v24, %v8115_v22 }
 0x180   : > { %v1755_v29 = vpop.f32.mrb[41].mxu0  ;;  %6027 = vmatprep.mubr.bf16.mxu1 %v5176_v5  ;;  %6590 = vmatpush3.bf16.msra.mxu1 %v10858_v60  ;;  %v10862_v5 = vld [vmem:[#allocation33_spill] sm:$0xff] }
 0x181   : > { %v1939_v16 = vmul.f32 %v1755_v29, %v10860_v53  ;;  %v5910_v45 = vpop.f32.mrb[42].mxu0  ;;  %5989 = vmatmul.mubr.f32.gmra.mrb[54].mxu0 %v1938_v55  ;;  %6592 = vmatprep.subr.bf16.mxu1 %v10861_v54  ;;  %v5177_v29 = vcombine.low %v8104_v49, %v8107_v59  ;;  %v1941_v55 = vmul.f32 %v5909_v3, %v7933_v25  ;;  %v8132_v3 = vld [vmem:[%s7426_s8 + $0xb8] sm:$0xf] }
 0x182   : > { %v1758_v26 = vpop.f32.mrb[43].mxu0  ;;  %6042 = vmatpush3.bf16.msra.mxu0 %v7541_v31  ;;  %v10864_v31 = vld [vmem:[#allocation34_spill] sm:$0xff] }
 0x183   : > { %v1940_v62 = vmul.f32 %v1758_v26, %v10862_v5  ;;  %5991 = vmatprep.mubr.f32.mxu0 %v1939_v16  ;;  %6043 = vmatprep.subr.bf16.mxu0 %v7571_v41  ;;  %v1942_v16 = vmul.f32 %v5910_v45, %v10864_v31  ;;  %v10866_v45 = vld [vmem:[#allocation10_spill] sm:$0xff] }
 0x184   : > { %6594 = vmatpush3.bf16.msra.mxu1 %v10861_v54 }
 0x185   : > { %5992 = vmatmul.mubr.f32.gmra.mrb[56].mxu0 %v1940_v62  ;;  %6596 = vmatprep.subr.bf16.mxu1 %v10863_v12 }
 0x186   : > { %5994 = vmatprep.mubr.f32.mxu0 %v1941_v55  ;;  %6044 = vmatpush3.bf16.msra.mxu0 %v7571_v41  ;;  %v10865_v55 = vld [vmem:[#allocation14_spill] sm:$0xff] }
 0x187   : > { %v5913_v26 = vpop.f32.mrb[44].mxu0  ;;  %6028 = vmatmul.mubr.bf16.gmra.mrb[56].mxu1 %v5177_v29  ;;  %6045 = vmatprep.subr.bf16.mxu0 %v7607_v56  ;;  %v2109_v29 = vsub.bf16 %v8038_v8, %v10866_v45  ;;  %v2112_v8 = vsub.bf16 %v8054_v9, %v7668_v0  ;;  %v10868_v9 = vld [vmem:[#allocation22_spill] sm:$0xff] }
 0x188   : > { %v1771_v2 = vpop.f32.mrb[45].mxu0  ;;  %6031 = vmatprep.mubr.bf16.mxu1 %v5178_v34  ;;  %6598 = vmatpush3.bf16.msra.mxu1 %v10863_v12  ;;  %v2110_v34 = vsub.bf16 %v8041_v1, %v7626_v4  ;;  %v10867_v1 = vld [vmem:[#allocation21_spill] sm:$0xff] }
 0x189   : > { %v1943_v62 = vmul.f32 %v1771_v2, %v7946_v46  ;;  %v5914_v25 = vpop.f32.mrb[46].mxu0  ;;  %5995 = vmatmul.mubr.f32.gmra.mrb[58].mxu0 %v1942_v16  ;;  %6600 = vmatprep.subr.bf16.mxu1 %v10865_v55  ;;  %v5179_v2 = vcombine.low %v8132_v3, %v8135_v19  ;;  %v1945_v16 = vmul.f32 %v5913_v26, %v7949_v38 }
 0x18a   : > { %v1774_v41 = vpop.f32.mrb[47].mxu0  ;;  %6046 = vmatpush3.bf16.msra.mxu0 %v7607_v56  ;;  %v2111_v56 = vsub.bf16 %v8051_v27, %v7664_v63  ;;  %v2114_v26 = vsub.bf16 %v8062_v13, %v7685_v7  ;;  %v2116_v13 = vsub.bf16 %v8079_v47, %v7725_v30  ;;  %v8191_v47 = vld [vmem:[%s10511_s3 + $0x8] sm:$0xff]  }
 0x18b   : > { %v1944_v31 = vmul.f32 %v1774_v41, %v7951_v43  ;;  %5997 = vmatprep.mubr.f32.mxu0 %v1943_v62  ;;  %6047 = vmatprep.subr.bf16.mxu0 %v7653_v32  ;;  %v5180_v62 = vcombine.low %v2109_v29, %v2110_v34  ;;  %v2113_v41 = vsub.bf16 %v8059_v61, %v7681_v6  ;;  %v8169_v61 = vld [vmem:[%s10511_s3] sm:$0xff]  }
 0x18c   : > { %6602 = vmatpush3.bf16.msra.mxu1 %v10865_v55  ;;  %v5181_v27 = vcombine.low %v2111_v56, %v2112_v8  ;;  %v2117_v29 = vsub.bf16 %v8084_v36, %v7730_v14  ;;  %v2118_v34 = vsub.bf16 %v8087_v57, %v7734_v15  ;;  %10869 = vst [vmem:[#allocation6_spill] sm:$0xff] %v8191_v47 }
 0x18d   : > { %5998 = vmatmul.mubr.f32.gmra.mrb[60].mxu0 %v1944_v31  ;;  %6604 = vmatprep.subr.bf16.mxu1 %v10867_v1  ;;  %v1946_v31 = vmul.f32 %v5914_v25, %v7959_v11  ;;  %v2115_v25 = vsub.bf16 %v8076_v51, %v7721_v10  ;;  %v2119_v36 = vsub.bf16 %v8104_v49, %v7752_v37 }
 0x18e   : > { %6000 = vmatprep.mubr.f32.mxu0 %v1945_v16  ;;  %6048 = vmatpush3.bf16.msra.mxu0 %v7653_v32  ;;  %v5182_v32 = vcombine.low %v2113_v41, %v2114_v26  ;;  %v8198_v16 = vld [vmem:[%s10511_s3 + $0x10] sm:$0xff]   ;;  %v2120_v57 = vsub.bf16 %v8107_v59, %v7756_v23  ;;  %v2121_v56 = vsub.bf16 %v8112_v24, %v7760_v39  ;;  %v8220_v24 = vld [vmem:[%s10511_s3 + $0x20] sm:$0xff]   ;;  %v8231_v26 = vld [vmem:[%s10511_s3 + $0x28] sm:$0xff]  }
 0x18f   : > { %6032 = vmatmul.mubr.bf16.gmra.mrb[60].mxu1 %v5179_v2  ;;  %6049 = vmatprep.subr.bf16.mxu0 %v7695_v52  ;;  %v5183_v51 = vcombine.low %v2115_v25, %v2116_v13  ;;  %v5184_v2 = vcombine.low %v2117_v29, %v2118_v34  ;;  %10870 = vst [vmem:[#allocation7_spill] sm:$0xff] %v8198_v16  ;;  %10872 = vst [vmem:[#allocation52_spill] sm:$0xff] %v8220_v24  ;;  %v8251_v25 = vld [vmem:[%s7426_s8 + $0xc8] sm:$0xf]  ;;  %v8254_v13 = vld [vmem:[%s7426_s8 + $0xcc] sm:$0xf] }
 0x190   : > { %6606 = vmatpush3.bf16.msra.mxu1 %v10867_v1  ;;  %v2122_v8 = vsub.bf16 %v8115_v22, %v7764_v28  ;;  %v5185_v49 = vcombine.low %v2119_v36, %v2120_v57  ;;  %v2123_v22 = vsub.bf16 %v8132_v3, %v7780_v50  ;;  %v2124_v41 = vsub.bf16 %v8135_v19, %v7784_v42  ;;  %v8238_v3 = vld [vmem:[%s7426_s8 + $0xc4] sm:$0xf]  ;;  %v8259_v29 = vld [vmem:[%s10511_s3 + $0x38] sm:$0xff]   ;;  %v8263_v34 = vld [vmem:[%s7426_s8 + $0xd0] sm:$0xf] }
 0x191   : > { %6001 = vmatmul.mubr.f32.gmra.mrb[62].mxu0 %v1946_v31  ;;  %6608 = vmatprep.subr.bf16.mxu1 %v10868_v9  ;;  %10873 = vst [vmem:[#allocation53_spill] sm:$0xff] %v8231_v26  ;;  %v8235_v31 = vld [vmem:[%s7426_s8 + $0xc0] sm:$0xf]  ;;  %10875 = vst [vmem:[#allocation55_spill] sm:$0xff] %v8259_v29  ;;  %v8275_v57 = vld [vmem:[%s7426_s8 + $0xd8] sm:$0xf] }
 0x192   : > { %6050 = vmatpush3.bf16.msra.mxu0 %v7695_v52  ;;  %6051 = vmatprep.mubr.bf16.mxu0 %v5180_v62  ;;  %v8180_v52 = vld [vmem:[%s10512_s4] sm:$0xff]   ;;  %v8213_v62 = vld [vmem:[%s10511_s3 + $0x18] sm:$0xff]   ;;  %v5186_v59 = vcombine.low %v2121_v56, %v2122_v8  ;;  %v5204_v19 = vcombine.low %v8235_v31, %v8238_v3 }
 0x193   : > { %6123 = vmatprep.subr.bf16.mxu0 %v8169_v61  ;;  %10871 = vst [vmem:[#allocation10_spill] sm:$0xff] %v8213_v62  ;;  %v8278_v56 = vld [vmem:[%s7426_s8 + $0xdc] sm:$0xf]  ;;  %v8282_v8 = vld [vmem:[%s7426_s8 + $0xe0] sm:$0xf] }
 0x194   : > { %6610 = vmatpush3.bf16.msra.mxu1 %v10868_v9 }
 0x195   : > { %6052 = vmatmul.mubr.bf16.vlgmr.msra.gmra.mrb[64].mxu0 %v5181_v27  ;;  %6155 = vmatprep.subr.bf16.mxu1 %v8180_v52  ;;  %v5187_v27 = vcombine.low %v2123_v22, %v2124_v41  ;;  %v8295_v41 = vld [vmem:[%s7426_s8 + $0xe8] sm:$0xf] }
 0x196   : > { %6124 = vmatpush3.bf16.msra.mxu0 %v8169_v61  ;;  %6055 = vmatprep.mubr.bf16.mxu0 %v5182_v32  ;;  %v8246_v32 = vld [vmem:[%s10511_s3 + $0x30] sm:$0xff]   ;;  %10876 = vst [vmem:[#allocation56_spill] sm:$0xff] %v8295_v41 }
 0x197   : > { %6125 = vmatprep.subr.bf16.mxu0 %v8191_v47  ;;  %10874 = vst [vmem:[#allocation54_spill] sm:$0xff] %v8246_v32 }
 0x19a   : > { %6126 = vmatpush3.bf16.msra.mxu0 %v8191_v47 }
 0x19b   : > { %6127 = vmatprep.subr.bf16.mxu0 %v8198_v16 }
 0x19d   : > { %6056 = vmatmul.mubr.bf16.gmra.mrb[68].mxu0 %v5183_v51  ;;  %v8266_v51 = vld [vmem:[%s7426_s8 + $0xd4] sm:$0xf] }
 0x19e   : > { %6128 = vmatpush3.bf16.msra.mxu0 %v8198_v16  ;;  %6059 = vmatprep.mubr.bf16.mxu0 %v5184_v2  ;;  %v5205_v2 = vcombine.low %v8251_v25, %v8254_v13  ;;  %v5206_v36 = vcombine.low %v8263_v34, %v8266_v51 }
 0x19f   : > { %6129 = vmatprep.subr.bf16.mxu0 %v8213_v62 }
 0x1a2   : > { %6130 = vmatpush3.bf16.msra.mxu0 %v8213_v62 }
 0x1a3   : > { %6131 = vmatprep.subr.bf16.mxu0 %v8220_v24 }
 0x1a5   : > { %6060 = vmatmul.mubr.bf16.gmra.mrb[72].mxu0 %v5185_v49  ;;  %v8285_v49 = vld [vmem:[%s7426_s8 + $0xe4] sm:$0xf] }
 0x1a6   : > { %6132 = vmatpush3.bf16.msra.mxu0 %v8220_v24  ;;  %6063 = vmatprep.mubr.bf16.mxu0 %v5186_v59  ;;  %v5207_v59 = vcombine.low %v8275_v57, %v8278_v56  ;;  %v5208_v22 = vcombine.low %v8282_v8, %v8285_v49 }
 0x1a7   : > { %6133 = vmatprep.subr.bf16.mxu0 %v8231_v26 }
 0x1aa   : > { %6134 = vmatpush3.bf16.msra.mxu0 %v8231_v26 }
 0x1ab   : > { %6135 = vmatprep.subr.bf16.mxu0 %v8246_v32 }
 0x1ad   : > { %6064 = vmatmul.mubr.bf16.gmra.mrb[76].mxu0 %v5187_v27  ;;  %v8298_v27 = vld [vmem:[%s7426_s8 + $0xec] sm:$0xf] }
 0x1ae   : > { %6136 = vmatpush3.bf16.msra.mxu0 %v8246_v32  ;;  %6139 = vmatprep.mubr.bf16.mxu0 %v5204_v19  ;;  %10877 = vst [vmem:[#allocation57_spill] sm:$0xff] %v8298_v27  ;;  %v8302_v19 = vld [vmem:[%s7426_s8 + $0xf0] sm:$0xf] }
 0x1af   : > { %6137 = vmatprep.subr.bf16.mxu0 %v8259_v29  ;;  %10878 = vst [vmem:[#allocation58_spill] sm:$0xff] %v8302_v19 }
 0x1b2   : > { %6138 = vmatpush3.bf16.msra.mxu0 %v8259_v29 }
 0x1b3   : > { %6612 = vmatprep.subr.bf16.mxu0 %v10851_v48 }
 0x1b5   : > { %6140 = vmatmul.mubr.bf16.vlgmr.msra.gmra.mrb[80].mxu0 %v5205_v2  ;;  %v8305_v2 = vld [vmem:[%s7426_s8 + $0xf4] sm:$0xf] }
 0x1b6   : > { %6143 = vmatprep.mubr.bf16.mxu0 %v5206_v36  ;;  %6614 = vmatpush3.bf16.msra.mxu0 %v10851_v48  ;;  %10879 = vst [vmem:[#allocation59_spill] sm:$0xff] %v8305_v2  ;;  %v5209_v36 = vcombine.low %v8295_v41, %v8298_v27 }
 0x1b7   : > { %6616 = vmatprep.subr.bf16.mxu0 %v10855_v21 }
 0x1ba   : > { %6618 = vmatpush3.bf16.msra.mxu0 %v10855_v21  ;;  %v5210_v21 = vcombine.low %v8302_v19, %v8305_v2 }
 0x1bb   : > { %6620 = vmatprep.subr.bf16.mxu0 %v10858_v60 }
 0x1bd   : > { %6144 = vmatmul.mubr.bf16.gmra.mrb[84].mxu0 %v5207_v59  ;;  %v8315_v59 = vld [vmem:[%s7426_s8 + $0xf8] sm:$0xf] }
 0x1be   : > { %6147 = vmatprep.mubr.bf16.mxu0 %v5208_v22  ;;  %6622 = vmatpush3.bf16.msra.mxu0 %v10858_v60  ;;  %10880 = vst [vmem:[#allocation60_spill] sm:$0xff] %v8315_v59  ;;  %v8318_v22 = vld [vmem:[%s7426_s8 + $0xfc] sm:$0xf] }
 0x1bf   : > { %6624 = vmatprep.subr.bf16.mxu0 %v10861_v54  ;;  %10881 = vst [vmem:[#allocation61_spill] sm:$0xff] %v8318_v22  ;;  %v5211_v60 = vcombine.low %v8315_v59, %v8318_v22 }
 0x1c2   : > { %6626 = vmatpush3.bf16.msra.mxu0 %v10861_v54 }
 0x1c3   : > { %6628 = vmatprep.subr.bf16.mxu0 %v10863_v12 }
 0x1c5   : > { %6148 = vmatmul.mubr.bf16.gmra.mrb[88].mxu0 %v5209_v36 }
 0x1c6   : > { %6151 = vmatprep.mubr.bf16.mxu0 %v5210_v21  ;;  %6630 = vmatpush3.bf16.msra.mxu0 %v10863_v12 }
 0x1c7   : > { %6632 = vmatprep.subr.bf16.mxu0 %v10865_v55 }
 0x1ca   : > { %6634 = vmatpush3.bf16.msra.mxu0 %v10865_v55 }
 0x1cb   : > { %6636 = vmatprep.subr.bf16.mxu0 %v10867_v1 }
 0x1cd   : > { %6152 = vmatmul.mubr.bf16.gmra.mrb[92].mxu0 %v5211_v60 }
 0x1ce   : > { %6638 = vmatpush3.bf16.msra.mxu0 %v10867_v1 }
 0x1cf   : > { %6640 = vmatprep.subr.bf16.mxu0 %v10868_v9 }
 0x1d2   : > { %6642 = vmatpush3.bf16.msra.mxu0 %v10868_v9 }
 0x1d3   : > { %6275 = vmatprep.subr.bf16.mxu0 %v8180_v52 }
 0x20a   : > { %v8330_v21 = vpop.f32.mrb[16].mxu1 }
 0x20b   : > { %10882 = vst [vmem:[#allocation62_spill] sm:$0xff] %v8330_v21  ;;  %v8332_v36 = vpop.f32.mrb[17].mxu1  ;;  %v8647_v21 = vld [vmem:[%s7426_s8 + $0x124] sm:$0xf] }
 0x20c   : > { %10883 = vst [vmem:[#allocation63_spill] sm:$0xff] %v8332_v36 }
 0x20e   : > { %v8334_v12 = vpop.f32.mrb[18].mxu1 }
 0x20f   : > { %10884 = vst [vmem:[#allocation64_spill] sm:$0xff] %v8334_v12  ;;  %v8336_v54 = vpop.f32.mrb[19].mxu1 }
 0x210   : > { %10885 = vst [vmem:[#allocation65_spill] sm:$0xff] %v8336_v54 }
 0x212   : > { %v8338_v55 = vpop.f32.mrb[20].mxu1 }
 0x213   : > { %10886 = vst [vmem:[#allocation66_spill] sm:$0xff] %v8338_v55  ;;  %v8340_v48 = vpop.f32.mrb[21].mxu1  ;;  %v8619_v55 = vld [vmem:[%s7426_s8 + $0x110] sm:$0xf] }
 0x214   : > { %10887 = vst [vmem:[#allocation67_spill] sm:$0xff] %v8340_v48 }
 0x216   : > { %v8342_v60 = vpop.f32.mrb[22].mxu1 }
 0x217   : > { %10888 = vst [vmem:[#allocation68_spill] sm:$0xff] %v8342_v60  ;;  %v8344_v1 = vpop.f32.mrb[23].mxu1 }
 0x218   : > { %10889 = vst [vmem:[#allocation69_spill] sm:$0xff] %v8344_v1 }
 0x21a   : > { %v8346_v29 = vpop.f32.mrb[24].mxu1 }
 0x21b   : > { %10890 = vst [vmem:[#allocation70_spill] sm:$0xff] %v8346_v29  ;;  %v8348_v9 = vpop.f32.mrb[25].mxu1 }
 0x21c   : > { %10891 = vst [vmem:[#allocation71_spill] sm:$0xff] %v8348_v9 }
 0x21e   : > { %v8350_v32 = vpop.f32.mrb[26].mxu1 }
 0x21f   : > { %10892 = vst [vmem:[#allocation72_spill] sm:$0xff] %v8350_v32  ;;  %v8352_v26 = vpop.f32.mrb[27].mxu1 }
 0x220   : > { %10893 = vst [vmem:[#allocation73_spill] sm:$0xff] %v8352_v26 }
 0x222   : > { %v8354_v22 = vpop.f32.mrb[28].mxu1 }
 0x223   : > { %10894 = vst [vmem:[#allocation74_spill] sm:$0xff] %v8354_v22  ;;  %v8356_v42 = vpop.f32.mrb[29].mxu1 }
 0x224   : > { %10895 = vst [vmem:[#allocation75_spill] sm:$0xff] %v8356_v42  ;;  %v2594_v42 = vsub.bf16 %v8238_v3, %v7626_v4  ;;  %v2596_v3 = vsub.bf16 %v8254_v13, %v7668_v0 }
 0x226   : > { %v8358_v59 = vpop.f32.mrb[30].mxu1 }
 0x227   : > { %10896 = vst [vmem:[#allocation76_spill] sm:$0xff] %v8358_v59  ;;  %v8360_v50 = vpop.f32.mrb[31].mxu1 }
 0x228   : > { %10897 = vst [vmem:[#allocation77_spill] sm:$0xff] %v8360_v50  ;;  %v10963_v50 = vld [vmem:[#allocation20_spill] sm:$0xff] }
 0x22a   : > { %v8362_v24 = vpop.f32.mrb[32].mxu1 }
 0x22b   : > { %10898 = vst [vmem:[#allocation78_spill] sm:$0xff] %v8362_v24  ;;  %v8364_v62 = vpop.f32.mrb[33].mxu1 }
 0x22c   : > { %10899 = vst [vmem:[#allocation79_spill] sm:$0xff] %v8364_v62  ;;  %v8366_v2 = vpop.f32.mrb[34].mxu1 }
 0x22d   : > { %10900 = vst [vmem:[#allocation80_spill] sm:$0xff] %v8366_v2  ;;  %v8368_v28 = vpop.f32.mrb[35].mxu1 }
 0x22e   : > { %10901 = vst [vmem:[#allocation81_spill] sm:$0xff] %v8368_v28 }
 0x232   : > { %v8370_v19 = vpop.f32.mrb[36].mxu1 }
 0x233   : > { %10902 = vst [vmem:[#allocation82_spill] sm:$0xff] %v8370_v19  ;;  %v8372_v39 = vpop.f32.mrb[37].mxu1 }
 0x234   : > { %10903 = vst [vmem:[#allocation83_spill] sm:$0xff] %v8372_v39  ;;  %v8374_v27 = vpop.f32.mrb[38].mxu1 }
 0x235   : > { %10904 = vst [vmem:[#allocation84_spill] sm:$0xff] %v8374_v27  ;;  %v8376_v23 = vpop.f32.mrb[39].mxu1 }
 0x236   : > { %10905 = vst [vmem:[#allocation85_spill] sm:$0xff] %v8376_v23 }
 0x23a   : > { %v8378_v41 = vpop.f32.mrb[40].mxu1 }
 0x23b   : > { %10906 = vst [vmem:[#allocation86_spill] sm:$0xff] %v8378_v41  ;;  %v8380_v37 = vpop.f32.mrb[41].mxu1 }
 0x23c   : > { %10907 = vst [vmem:[#allocation87_spill] sm:$0xff] %v8380_v37  ;;  %v8382_v16 = vpop.f32.mrb[42].mxu1 }
 0x23d   : > { %10908 = vst [vmem:[#allocation88_spill] sm:$0xff] %v8382_v16  ;;  %v8384_v24 = vpop.f32.mrb[43].mxu1 }
 0x23e   : > { %10909 = vst [vmem:[#allocation89_spill] sm:$0xff] %v8384_v24 }
 0x242   : > { %v8386_v62 = vpop.f32.mrb[44].mxu1 }
 0x243   : > { %10910 = vst [vmem:[#allocation90_spill] sm:$0xff] %v8386_v62  ;;  %v8388_v2 = vpop.f32.mrb[45].mxu1 }
 0x244   : > { %10911 = vst [vmem:[#allocation91_spill] sm:$0xff] %v8388_v2  ;;  %v8390_v28 = vpop.f32.mrb[46].mxu1 }
 0x245   : > { %10912 = vst [vmem:[#allocation92_spill] sm:$0xff] %v8390_v28  ;;  %v8392_v19 = vpop.f32.mrb[47].mxu1 }
 0x246   : > { %10913 = vst [vmem:[#allocation93_spill] sm:$0xff] %v8392_v19 }
 0x248   : > { %v8394_v39 = vpop.f32.mrb[48].mxu0 }
 0x249   : > { %10914 = vst [vmem:[#allocation94_spill] sm:$0xff] %v8394_v39  ;;  %v8398_v41 = vpop.f32.mrb[49].mxu0 }
 0x24a   : > { %10915 = vst [vmem:[#allocation95_spill] sm:$0xff] %v8398_v41  ;;  %v6021_v37 = vpop.f32.mrb[48].mxu1 }
 0x24b   : > { %v2207_v24 = vpop.f32.mrb[49].mxu1  ;;  %v2417_v16 = vmul.f32 %v6021_v37, %v7903_v33  ;;  %v8426_v37 = vld [vmem:[%s10512_s4 + $0x8] sm:$0xff]  }
 0x24c   : > { %v2415_v62 = vmul.f32 %v2207_v24, %v10849_v35  ;;  %v8403_v27 = vpop.f32.mrb[50].mxu0  ;;  %v6022_v2 = vpop.f32.mrb[50].mxu1  ;;  %10920 = vst [vmem:[#allocation100_spill] sm:$0xff] %v8426_v37 }
 0x24d   : > { %10916 = vst [vmem:[#allocation96_spill] sm:$0xff] %v8403_v27  ;;  %v8407_v28 = vpop.f32.mrb[51].mxu0  ;;  %v2210_v47 = vpop.f32.mrb[51].mxu1  ;;  %v2418_v19 = vmul.f32 %v6022_v2, %v10853_v44 }
 0x24e   : > { %10917 = vst [vmem:[#allocation97_spill] sm:$0xff] %v8407_v28  ;;  %v2416_v39 = vmul.f32 %v2210_v47, %v7905_v58  ;;  %6099 = vmatprep.mubr.f32.mxu1 %v2415_v62  ;;  %v8622_v28 = vld [vmem:[%s7426_s8 + $0x114] sm:$0xf] }
 0x250   : > { %v8413_v41 = vpop.f32.mrb[52].mxu0  ;;  %6100 = vmatmul.mubr.f32.vlgmr.msra.gmra.mrb[64].mxu1 %v2416_v39 }
 0x251   : > { %10918 = vst [vmem:[#allocation98_spill] sm:$0xff] %v8413_v41  ;;  %v8417_v36 = vpop.f32.mrb[53].mxu0  ;;  %6102 = vmatprep.mubr.f32.mxu1 %v2417_v16  ;;  %6156 = vmatpush3.bf16.msra.mxu1 %v8180_v52 }
 0x252   : > { %10919 = vst [vmem:[#allocation99_spill] sm:$0xff] %v8417_v36  ;;  %v6025_v47 = vpop.f32.mrb[52].mxu1  ;;  %6157 = vmatprep.subr.bf16.mxu1 %v8426_v37 }
 0x253   : > { %v2223_v39 = vpop.f32.mrb[53].mxu1 }
 0x254   : > { %v2419_v62 = vmul.f32 %v2223_v39, %v10854_v18  ;;  %v8430_v24 = vpop.f32.mrb[54].mxu0  ;;  %v6026_v16 = vpop.f32.mrb[54].mxu1  ;;  %6103 = vmatmul.mubr.f32.gmra.mrb[66].mxu1 %v2418_v19  ;;  %v8443_v39 = vld [vmem:[%s10512_s4 + $0x10] sm:$0xff]   ;;  %v2421_v19 = vmul.f32 %v6025_v47, %v10857_v20  ;;  %v8460_v47 = vld [vmem:[%s10512_s4 + $0x18] sm:$0xff]  }
 0x255   : > { %10921 = vst [vmem:[#allocation101_spill] sm:$0xff] %v8430_v24  ;;  %v8434_v41 = vpop.f32.mrb[55].mxu0  ;;  %v2226_v23 = vpop.f32.mrb[55].mxu1  ;;  %6158 = vmatpush3.bf16.msra.mxu1 %v8426_v37  ;;  %10923 = vst [vmem:[#allocation103_spill] sm:$0xff] %v8443_v39 }
 0x256   : > { %10922 = vst [vmem:[#allocation102_spill] sm:$0xff] %v8434_v41  ;;  %v2420_v48 = vmul.f32 %v2226_v23, %v10856_v40  ;;  %6105 = vmatprep.mubr.f32.mxu1 %v2419_v62  ;;  %6159 = vmatprep.subr.bf16.mxu1 %v8443_v39  ;;  %v2422_v23 = vmul.f32 %v6026_v16, %v10859_v17  ;;  %10926 = vst [vmem:[#allocation106_spill] sm:$0xff] %v8460_v47 }
 0x258   : > { %v8447_v2 = vpop.f32.mrb[56].mxu0  ;;  %6106 = vmatmul.mubr.f32.gmra.mrb[68].mxu1 %v2420_v48 }
 0x259   : > { %10924 = vst [vmem:[#allocation104_spill] sm:$0xff] %v8447_v2  ;;  %v8451_v60 = vpop.f32.mrb[57].mxu0  ;;  %6108 = vmatprep.mubr.f32.mxu1 %v2421_v19  ;;  %6160 = vmatpush3.bf16.msra.mxu1 %v8443_v39 }
 0x25a   : > { %10925 = vst [vmem:[#allocation105_spill] sm:$0xff] %v8451_v60  ;;  %v6029_v36 = vpop.f32.mrb[56].mxu1  ;;  %6161 = vmatprep.subr.bf16.mxu1 %v8460_v47 }
 0x25b   : > { %v2239_v48 = vpop.f32.mrb[57].mxu1 }
 0x25c   : > { %v2423_v24 = vmul.f32 %v2239_v48, %v10860_v53  ;;  %v8464_v2 = vpop.f32.mrb[58].mxu0  ;;  %v6030_v19 = vpop.f32.mrb[58].mxu1  ;;  %6109 = vmatmul.mubr.f32.gmra.mrb[70].mxu1 %v2422_v23  ;;  %v8477_v48 = vld [vmem:[%s10512_s4 + $0x20] sm:$0xff]   ;;  %v10930_v23 = vld [vmem:[#allocation32_spill] sm:$0xff] }
 0x25d   : > { %10927 = vst [vmem:[#allocation107_spill] sm:$0xff] %v8464_v2  ;;  %v8468_v29 = vpop.f32.mrb[59].mxu0  ;;  %v2242_v62 = vpop.f32.mrb[59].mxu1  ;;  %6162 = vmatpush3.bf16.msra.mxu1 %v8460_v47  ;;  %10929 = vst [vmem:[#allocation109_spill] sm:$0xff] %v8477_v48  ;;  %v2425_v16 = vmul.f32 %v6029_v36, %v10930_v23  ;;  %v8494_v36 = vld [vmem:[%s10512_s4 + $0x28] sm:$0xff]  }
 0x25e   : > { %10928 = vst [vmem:[#allocation108_spill] sm:$0xff] %v8468_v29  ;;  %v2424_v9 = vmul.f32 %v2242_v62, %v10862_v5  ;;  %6111 = vmatprep.mubr.f32.mxu1 %v2423_v24  ;;  %6163 = vmatprep.subr.bf16.mxu1 %v8477_v48  ;;  %v10933_v24 = vld [vmem:[#allocation34_spill] sm:$0xff] }
 0x25f   : > { %v2426_v62 = vmul.f32 %v6030_v19, %v10933_v24 }
 0x260   : > { %v8481_v2 = vpop.f32.mrb[60].mxu0  ;;  %6112 = vmatmul.mubr.f32.gmra.mrb[72].mxu1 %v2424_v9 }
 0x261   : > { %10931 = vst [vmem:[#allocation110_spill] sm:$0xff] %v8481_v2  ;;  %v8485_v41 = vpop.f32.mrb[61].mxu0  ;;  %6114 = vmatprep.mubr.f32.mxu1 %v2425_v16  ;;  %6164 = vmatpush3.bf16.msra.mxu1 %v8477_v48 }
 0x262   : > { %10932 = vst [vmem:[#allocation111_spill] sm:$0xff] %v8485_v41  ;;  %v6033_v29 = vpop.f32.mrb[60].mxu1  ;;  %6165 = vmatprep.subr.bf16.mxu1 %v8494_v36  ;;  %v2593_v41 = vsub.bf16 %v8235_v31, %v10866_v45  ;;  %v2595_v31 = vsub.bf16 %v8251_v25, %v7664_v63  ;;  %v8538_v25 = vld [vmem:[%s10512_s4 + $0x38] sm:$0xff]  }
 0x263   : > { %v2255_v9 = vpop.f32.mrb[61].mxu1  ;;  %v2429_v19 = vmul.f32 %v6033_v29, %v7949_v38  ;;  %v2598_v29 = vsub.bf16 %v8266_v51, %v7685_v7 }
 0x264   : > { %v2427_v32 = vmul.f32 %v2255_v9, %v7946_v46  ;;  %v8498_v2 = vpop.f32.mrb[62].mxu0  ;;  %v6034_v16 = vpop.f32.mrb[62].mxu1  ;;  %6115 = vmatmul.mubr.f32.gmra.mrb[74].mxu1 %v2426_v62  ;;  %v8515_v62 = vld [vmem:[%s10512_s4 + $0x30] sm:$0xff]   ;;  %v2597_v9 = vsub.bf16 %v8263_v34, %v7681_v6 }
 0x265   : > { %10934 = vst [vmem:[#allocation34_spill] sm:$0xff] %v8498_v2  ;;  %v8502_v22 = vpop.f32.mrb[63].mxu0  ;;  %v2258_v60 = vpop.f32.mrb[63].mxu1  ;;  %6166 = vmatpush3.bf16.msra.mxu1 %v8494_v36 }
 0x266   : > { %10935 = vst [vmem:[#allocation112_spill] sm:$0xff] %v8502_v22  ;;  %v2428_v26 = vmul.f32 %v2258_v60, %v7951_v43  ;;  %6117 = vmatprep.mubr.f32.mxu1 %v2427_v32  ;;  %6167 = vmatprep.subr.bf16.mxu1 %v8515_v62  ;;  %v5212_v32 = vcombine.low %v2593_v41, %v2594_v42  ;;  %v10962_v22 = vld [vmem:[#allocation60_spill] sm:$0xff] }
 0x267   : > { %v5213_v42 = vcombine.low %v2595_v31, %v2596_v3  ;;  %v5214_v34 = vcombine.low %v2597_v9, %v2598_v29  ;;  %v2599_v41 = vsub.bf16 %v8275_v57, %v7721_v10  ;;  %v2601_v31 = vsub.bf16 %v8282_v8, %v7730_v14  ;;  %v10948_v8 = vld [vmem:[#allocation56_spill] sm:$0xff] }
 0x268   : > { %v8519_v2 = vpop.f32.mrb[64].mxu0  ;;  %6118 = vmatmul.mubr.f32.gmra.mrb[76].mxu1 %v2428_v26  ;;  %v2430_v26 = vmul.f32 %v6034_v16, %v7959_v11  ;;  %v2600_v16 = vsub.bf16 %v8278_v56, %v7725_v30  ;;  %v2602_v9 = vsub.bf16 %v8285_v49, %v7734_v15  ;;  %v10950_v49 = vld [vmem:[#allocation57_spill] sm:$0xff] }
 0x269   : > { %10936 = vst [vmem:[#allocation113_spill] sm:$0xff] %v8519_v2  ;;  %v8525_v60 = vpop.f32.mrb[65].mxu0  ;;  %6120 = vmatprep.mubr.f32.mxu1 %v2429_v19  ;;  %6168 = vmatpush3.bf16.msra.mxu1 %v8515_v62 }
 0x26a   : > { %10937 = vst [vmem:[#allocation114_spill] sm:$0xff] %v8525_v60  ;;  %v8533_v2 = vpop.f32.mrb[66].mxu0  ;;  %6169 = vmatprep.subr.bf16.mxu1 %v8538_v25  ;;  %v5215_v57 = vcombine.low %v2599_v41, %v2600_v16  ;;  %v5216_v56 = vcombine.low %v2601_v31, %v2602_v9  ;;  %v10952_v41 = vld [vmem:[#allocation17_spill] sm:$0xff]  ;;  %v10953_v16 = vld [vmem:[#allocation58_spill] sm:$0xff]  ;;  %v10955_v9 = vld [vmem:[#allocation59_spill] sm:$0xff] }
 0x26b   : > { %10938 = vst [vmem:[#allocation115_spill] sm:$0xff] %v8533_v2  ;;  %v8541_v13 = vpop.f32.mrb[67].mxu0  ;;  %v10954_v31 = vld [vmem:[#allocation18_spill] sm:$0xff] }
 0x26c   : > { %10939 = vst [vmem:[#allocation116_spill] sm:$0xff] %v8541_v13  ;;  %6121 = vmatmul.mubr.f32.gmra.mrb[78].mxu1 %v2430_v26  ;;  %v10945_v26 = vld [vmem:[#allocation7_spill] sm:$0xff]  ;;  %v2606_v2 = vsub.bf16 %v10955_v9, %v10954_v31 }
 0x26d   : > { %6170 = vmatpush3.bf16.msra.mxu1 %v8538_v25  ;;  %6171 = vmatprep.mubr.bf16.mxu1 %v5212_v32  ;;  %v10943_v32 = vld [vmem:[#allocation6_spill] sm:$0xff] }
 0x26e   : > { %6243 = vmatprep.subr.bf16.mxu1 %v8169_v61 }
 0x270   : > { %v8545_v51 = vpop.f32.mrb[68].mxu0  ;;  %6172 = vmatmul.mubr.bf16.vlgmr.msra.gmra.mrb[80].mxu1 %v5213_v42 }
 0x271   : > { %10940 = vst [vmem:[#allocation117_spill] sm:$0xff] %v8545_v51  ;;  %v8551_v19 = vpop.f32.mrb[69].mxu0  ;;  %6244 = vmatpush3.bf16.msra.mxu1 %v8169_v61  ;;  %6175 = vmatprep.mubr.bf16.mxu1 %v5214_v34  ;;  %v10947_v34 = vld [vmem:[#allocation15_spill] sm:$0xff]  ;;  %v10949_v51 = vld [vmem:[#allocation16_spill] sm:$0xff] }
 0x272   : > { %10941 = vst [vmem:[#allocation118_spill] sm:$0xff] %v8551_v19  ;;  %v8558_v3 = vpop.f32.mrb[70].mxu0  ;;  %6245 = vmatprep.subr.bf16.mxu1 %v10943_v32  ;;  %v2603_v19 = vsub.bf16 %v10948_v8, %v10947_v34  ;;  %v2604_v13 = vsub.bf16 %v10950_v49, %v10949_v51 }
 0x273   : > { %10942 = vst [vmem:[#allocation119_spill] sm:$0xff] %v8558_v3  ;;  %v8561_v29 = vpop.f32.mrb[71].mxu0 }
 0x274   : > { %10944 = vst [vmem:[#allocation6_spill] sm:$0xff] %v8561_v29  ;;  %v2605_v29 = vsub.bf16 %v10953_v16, %v10952_v41  ;;  %v5217_v49 = vcombine.low %v2603_v19, %v2604_v13  ;;  %v10961_v16 = vld [vmem:[#allocation19_spill] sm:$0xff]  ;;  %v8598_v19 = vld [vmem:[%s7426_s8 + $0x100] sm:$0xf] }
 0x275   : > { %6246 = vmatpush3.bf16.msra.mxu1 %v10943_v32  ;;  %v2607_v9 = vsub.bf16 %v10962_v22, %v10961_v16 }
 0x276   : > { %6247 = vmatprep.subr.bf16.mxu1 %v10945_v26 }
 0x278   : > { %v8565_v42 = vpop.f32.mrb[72].mxu0  ;;  %6176 = vmatmul.mubr.bf16.gmra.mrb[84].mxu1 %v5215_v57  ;;  %v10957_v57 = vld [vmem:[#allocation10_spill] sm:$0xff] }
 0x279   : > { %10946 = vst [vmem:[#allocation7_spill] sm:$0xff] %v8565_v42  ;;  %v8571_v3 = vpop.f32.mrb[73].mxu0  ;;  %6248 = vmatpush3.bf16.msra.mxu1 %v10945_v26  ;;  %6179 = vmatprep.mubr.bf16.mxu1 %v5216_v56  ;;  %v10959_v42 = vld [vmem:[#allocation52_spill] sm:$0xff] }
 0x27a   : > { %10951 = vst [vmem:[#allocation15_spill] sm:$0xff] %v8571_v3  ;;  %v8578_v60 = vpop.f32.mrb[74].mxu0  ;;  %6249 = vmatprep.subr.bf16.mxu1 %v10957_v57  ;;  %v5218_v3 = vcombine.low %v2605_v29, %v2606_v2  ;;  %v10967_v2 = vld [vmem:[#allocation53_spill] sm:$0xff]  ;;  %v8601_v29 = vld [vmem:[%s7426_s8 + $0x104] sm:$0xf] }
 0x27b   : > { %10956 = vst [vmem:[#allocation56_spill] sm:$0xff] %v8578_v60  ;;  %v8581_v8 = vpop.f32.mrb[75].mxu0  ;;  %v10964_v60 = vld [vmem:[#allocation61_spill] sm:$0xff] }
 0x27c   : > { %10958 = vst [vmem:[#allocation16_spill] sm:$0xff] %v8581_v8  ;;  %v2608_v59 = vsub.bf16 %v10964_v60, %v10963_v50  ;;  %v8614_v8 = vld [vmem:[%s7426_s8 + $0x10c] sm:$0xf] }
 0x27d   : > { %6250 = vmatpush3.bf16.msra.mxu1 %v10957_v57 }
 0x27e   : > { %6251 = vmatprep.subr.bf16.mxu1 %v10959_v42  ;;  %v5219_v60 = vcombine.low %v2607_v9, %v2608_v59  ;;  %v10970_v9 = vld [vmem:[#allocation55_spill] sm:$0xff] }
 0x280   : > { %v8585_v56 = vpop.f32.mrb[76].mxu0  ;;  %6180 = vmatmul.mubr.bf16.gmra.mrb[88].mxu1 %v5217_v49  ;;  %v5236_v49 = vcombine.low %v8598_v19, %v8601_v29 }
 0x281   : > { %10960 = vst [vmem:[#allocation57_spill] sm:$0xff] %v8585_v56  ;;  %v8591_v1 = vpop.f32.mrb[77].mxu0  ;;  %6252 = vmatpush3.bf16.msra.mxu1 %v10959_v42  ;;  %6183 = vmatprep.mubr.bf16.mxu1 %v5218_v3  ;;  %v10969_v3 = vld [vmem:[#allocation54_spill] sm:$0xff]  ;;  %v8611_v56 = vld [vmem:[%s7426_s8 + $0x108] sm:$0xf] }
 0x282   : > { %10965 = vst [vmem:[#allocation17_spill] sm:$0xff] %v8591_v1  ;;  %v8594_v13 = vpop.f32.mrb[78].mxu0  ;;  %6253 = vmatprep.subr.bf16.mxu1 %v10967_v2 }
 0x283   : > { %10966 = vst [vmem:[#allocation58_spill] sm:$0xff] %v8594_v13  ;;  %v8603_v22 = vpop.f32.mrb[79].mxu0 }
 0x284   : > { %10968 = vst [vmem:[#allocation18_spill] sm:$0xff] %v8603_v22 }
 0x285   : > { %6254 = vmatpush3.bf16.msra.mxu1 %v10967_v2 }
 0x286   : > { %6255 = vmatprep.subr.bf16.mxu1 %v10969_v3 }
 0x288   : > { %v6141_v1 = vpop.f32.mrb[80].mxu0  ;;  %6184 = vmatmul.mubr.bf16.gmra.mrb[92].mxu1 %v5219_v60 }
 0x289   : > { %v2691_v13 = vpop.f32.mrb[81].mxu0  ;;  %6256 = vmatpush3.bf16.msra.mxu1 %v10969_v3  ;;  %6259 = vmatprep.mubr.bf16.mxu1 %v5236_v49  ;;  %v5237_v49 = vcombine.low %v8611_v56, %v8614_v8  ;;  %v2901_v27 = vmul.f32 %v6141_v1, %v7903_v33  ;;  %v8636_v33 = vld [vmem:[%s7426_s8 + $0x118] sm:$0xf] }
 0x28a   : > { %v2899_v22 = vmul.f32 %v2691_v13, %v10849_v35  ;;  %v6142_v59 = vpop.f32.mrb[82].mxu0  ;;  %6257 = vmatprep.subr.bf16.mxu1 %v10970_v9  ;;  %v5238_v13 = vcombine.low %v8619_v55, %v8622_v28  ;;  %v10971_v35 = vld [vmem:[#allocation8_spill] sm:$0xff] }
 0x28b   : > { %v2694_v54 = vpop.f32.mrb[83].mxu0 }
 0x28c   : > { %v2900_v60 = vmul.f32 %v2694_v54, %v7905_v58  ;;  %6219 = vmatprep.mubr.f32.mxu0 %v2899_v22  ;;  %v2902_v54 = vmul.f32 %v6142_v59, %v10853_v44  ;;  %v8639_v58 = vld [vmem:[%s7426_s8 + $0x11c] sm:$0xf]  ;;  %v10973_v44 = vld [vmem:[#allocation11_spill] sm:$0xff] }
 0x28d   : > { %6258 = vmatpush3.bf16.msra.mxu1 %v10970_v9  ;;  %v10972_v59 = vld [vmem:[#allocation9_spill] sm:$0xff] }
 0x28e   : > { %6220 = vmatmul.mubr.f32.vlgmr.msra.gmra.mrb[96].mxu0 %v2900_v60  ;;  %6644 = vmatprep.subr.bf16.mxu1 %v10971_v35 }
 0x28f   : > { %6222 = vmatprep.mubr.f32.mxu0 %v2901_v27  ;;  %6276 = vmatpush3.bf16.msra.mxu0 %v8180_v52  ;;  %v8644_v27 = vld [vmem:[%s7426_s8 + $0x120] sm:$0xf] }
 0x290   : > { %v6145_v22 = vpop.f32.mrb[84].mxu0  ;;  %6260 = vmatmul.mubr.bf16.vlgmr.msra.gmra.mrb[96].mxu1 %v5237_v49  ;;  %6277 = vmatprep.subr.bf16.mxu0 %v8426_v37 }
 0x291   : > { %v2707_v1 = vpop.f32.mrb[85].mxu0  ;;  %6263 = vmatprep.mubr.bf16.mxu1 %v5238_v13  ;;  %6646 = vmatpush3.bf16.msra.mxu1 %v10971_v35 }
 0x292   : > { %v2903_v60 = vmul.f32 %v2707_v1, %v10854_v18  ;;  %v6146_v12 = vpop.f32.mrb[86].mxu0  ;;  %6223 = vmatmul.mubr.f32.gmra.mrb[98].mxu0 %v2902_v54  ;;  %6648 = vmatprep.subr.bf16.mxu1 %v10972_v59  ;;  %v5239_v1 = vcombine.low %v8636_v33, %v8639_v58  ;;  %v2905_v54 = vmul.f32 %v6145_v22, %v10857_v20  ;;  %v8664_v20 = vld [vmem:[%s7426_s8 + $0x128] sm:$0xf] }
 0x293   : > { %v2710_v49 = vpop.f32.mrb[87].mxu0  ;;  %6278 = vmatpush3.bf16.msra.mxu0 %v8426_v37  ;;  %v5240_v18 = vcombine.low %v8644_v27, %v8647_v21 }
 0x294   : > { %v2904_v13 = vmul.f32 %v2710_v49, %v10856_v40  ;;  %6225 = vmatprep.mubr.f32.mxu0 %v2903_v60  ;;  %6279 = vmatprep.subr.bf16.mxu0 %v8443_v39  ;;  %v2906_v60 = vmul.f32 %v6146_v12, %v10859_v17  ;;  %v8667_v40 = vld [vmem:[%s7426_s8 + $0x12c] sm:$0xf]  ;;  %v10974_v12 = vld [vmem:[#allocation12_spill] sm:$0xff]  ;;  %v10975_v17 = vld [vmem:[#allocation13_spill] sm:$0xff] }
 0x295   : > { %6650 = vmatpush3.bf16.msra.mxu1 %v10972_v59 }
 0x296   : > { %6226 = vmatmul.mubr.f32.gmra.mrb[100].mxu0 %v2904_v13  ;;  %6652 = vmatprep.subr.bf16.mxu1 %v10973_v44 }
 0x297   : > { %6228 = vmatprep.mubr.f32.mxu0 %v2905_v54  ;;  %6280 = vmatpush3.bf16.msra.mxu0 %v8443_v39  ;;  %v8672_v54 = vld [vmem:[%s7426_s8 + $0x130] sm:$0xf]  ;;  %v8675_v39 = vld [vmem:[%s7426_s8 + $0x134] sm:$0xf] }
 0x298   : > { %v6149_v49 = vpop.f32.mrb[88].mxu0  ;;  %6264 = vmatmul.mubr.bf16.gmra.mrb[100].mxu1 %v5239_v1  ;;  %6281 = vmatprep.subr.bf16.mxu0 %v8460_v47 }
 0x299   : > { %v2723_v22 = vpop.f32.mrb[89].mxu0  ;;  %6267 = vmatprep.mubr.bf16.mxu1 %v5240_v18  ;;  %6654 = vmatpush3.bf16.msra.mxu1 %v10973_v44 }
 0x29a   : > { %v2907_v13 = vmul.f32 %v2723_v22, %v10860_v53  ;;  %v6150_v37 = vpop.f32.mrb[90].mxu0  ;;  %6229 = vmatmul.mubr.f32.gmra.mrb[102].mxu0 %v2906_v60  ;;  %6656 = vmatprep.subr.bf16.mxu1 %v10974_v12  ;;  %v5241_v22 = vcombine.low %v8664_v20, %v8667_v40  ;;  %v2909_v60 = vmul.f32 %v6149_v49, %v10930_v23  ;;  %v8692_v49 = vld [vmem:[%s7426_s8 + $0x138] sm:$0xf]  ;;  %v8695_v23 = vld [vmem:[%s7426_s8 + $0x13c] sm:$0xf] }
 0x29b   : > { %v2726_v1 = vpop.f32.mrb[91].mxu0  ;;  %6282 = vmatpush3.bf16.msra.mxu0 %v8460_v47  ;;  %v5242_v53 = vcombine.low %v8672_v54, %v8675_v39 }
 0x29c   : > { %v2908_v18 = vmul.f32 %v2726_v1, %v10862_v5  ;;  %6231 = vmatprep.mubr.f32.mxu0 %v2907_v13  ;;  %6283 = vmatprep.subr.bf16.mxu0 %v8477_v48  ;;  %v2910_v13 = vmul.f32 %v6150_v37, %v10933_v24  ;;  %v3077_v37 = vsub.bf16 %v8598_v19, %v10866_v45 }
 0x29d   : > { %6658 = vmatpush3.bf16.msra.mxu1 %v10974_v12  ;;  %v3080_v19 = vsub.bf16 %v8614_v8, %v7668_v0 }
 0x29e   : > { %6232 = vmatmul.mubr.f32.gmra.mrb[104].mxu0 %v2908_v18  ;;  %6660 = vmatprep.subr.bf16.mxu1 %v10975_v17 }
 0x29f   : > { %6234 = vmatprep.mubr.f32.mxu0 %v2909_v60  ;;  %6284 = vmatpush3.bf16.msra.mxu0 %v8477_v48  ;;  %v10976_v60 = vld [vmem:[#allocation14_spill] sm:$0xff] }
 0x2a0   : > { %v6153_v1 = vpop.f32.mrb[92].mxu0  ;;  %6268 = vmatmul.mubr.bf16.gmra.mrb[104].mxu1 %v5241_v22  ;;  %6285 = vmatprep.subr.bf16.mxu0 %v8494_v36 }
 0x2a1   : > { %v2739_v5 = vpop.f32.mrb[93].mxu0  ;;  %6271 = vmatprep.mubr.bf16.mxu1 %v5242_v53  ;;  %6662 = vmatpush3.bf16.msra.mxu1 %v10975_v17  ;;  %v3078_v53 = vsub.bf16 %v8601_v29, %v7626_v4  ;;  %v10977_v29 = vld [vmem:[#allocation21_spill] sm:$0xff] }
 0x2a2   : > { %v2911_v18 = vmul.f32 %v2739_v5, %v7946_v46  ;;  %v6154_v47 = vpop.f32.mrb[94].mxu0  ;;  %6235 = vmatmul.mubr.f32.gmra.mrb[106].mxu0 %v2910_v13  ;;  %6664 = vmatprep.subr.bf16.mxu1 %v10976_v60  ;;  %v5243_v5 = vcombine.low %v8692_v49, %v8695_v23  ;;  %v2913_v13 = vmul.f32 %v6153_v1, %v7949_v38 }
 0x2a3   : > { %v2742_v48 = vpop.f32.mrb[95].mxu0  ;;  %6286 = vmatpush3.bf16.msra.mxu0 %v8494_v36  ;;  %v3079_v46 = vsub.bf16 %v8611_v56, %v7664_v63  ;;  %v3082_v1 = vsub.bf16 %v8622_v28, %v7685_v7  ;;  %v10978_v56 = vld [vmem:[#allocation22_spill] sm:$0xff]  ;;  %v3083_v28 = vsub.bf16 %v8636_v33, %v7721_v10 }
 0x2a4   : > { %v2912_v22 = vmul.f32 %v2742_v48, %v7951_v43  ;;  %6237 = vmatprep.mubr.f32.mxu0 %v2911_v18  ;;  %6287 = vmatprep.subr.bf16.mxu0 %v8515_v62  ;;  %v5244_v48 = vcombine.low %v3077_v37, %v3078_v53  ;;  %v3081_v18 = vsub.bf16 %v8619_v55, %v7681_v6 }
 0x2a5   : > { %6666 = vmatpush3.bf16.msra.mxu1 %v10976_v60  ;;  %v5245_v8 = vcombine.low %v3079_v46, %v3080_v19  ;;  %v3084_v55 = vsub.bf16 %v8639_v58, %v7725_v30  ;;  %v3085_v46 = vsub.bf16 %v8644_v27, %v7730_v14  ;;  %v3087_v58 = vsub.bf16 %v8664_v20, %v10947_v34  ;;  %v8793_v19 = vld [vmem:[%s7426_s8 + $0x15c] sm:$0xf] }
 0x2a6   : > { %6238 = vmatmul.mubr.f32.gmra.mrb[108].mxu0 %v2912_v22  ;;  %6668 = vmatprep.subr.bf16.mxu1 %v10977_v29  ;;  %v2914_v22 = vmul.f32 %v6154_v47, %v7959_v11  ;;  %v5246_v37 = vcombine.low %v3081_v18, %v3082_v1  ;;  %v3086_v47 = vsub.bf16 %v8647_v21, %v7734_v15 }
 0x2a7   : > { %6240 = vmatprep.mubr.f32.mxu0 %v2913_v13  ;;  %6288 = vmatpush3.bf16.msra.mxu0 %v8515_v62  ;;  %v5247_v53 = vcombine.low %v3083_v28, %v3084_v55  ;;  %v3090_v21 = vsub.bf16 %v8675_v39, %v10954_v31  ;;  %v8760_v39 = vld [vmem:[%s7426_s8 + $0x140] sm:$0xf]  ;;  %v8790_v13 = vld [vmem:[%s7426_s8 + $0x158] sm:$0xf] }
 0x2a8   : > { %6272 = vmatmul.mubr.bf16.gmra.mrb[108].mxu1 %v5243_v5  ;;  %6289 = vmatprep.subr.bf16.mxu0 %v8538_v25  ;;  %v5248_v33 = vcombine.low %v3085_v46, %v3086_v47  ;;  %v5271_v18 = vcombine.low %v8790_v13, %v8793_v19  ;;  %v8830_v55 = vld [vmem:[%s7426_s8 + $0x178] sm:$0xf]  ;;  %v10983_v47 = vld [vmem:[#allocation94_spill] sm:$0xff] }
 0x2a9   : > { %6670 = vmatpush3.bf16.msra.mxu1 %v10977_v29  ;;  %10979 = vst [vmem:[#allocation59_spill] sm:$0xff] %v8830_v55 }
 0x2aa   : > { %6241 = vmatmul.mubr.f32.gmra.mrb[110].mxu0 %v2914_v22  ;;  %6672 = vmatprep.subr.bf16.mxu1 %v10978_v56  ;;  %v8813_v22 = vld [vmem:[%s7426_s8 + $0x16c] sm:$0xf] }
 0x2ab   : > { %6290 = vmatpush3.bf16.msra.mxu0 %v8538_v25  ;;  %6291 = vmatprep.mubr.bf16.mxu0 %v5244_v48  ;;  %v8797_v48 = vld [vmem:[%s7426_s8 + $0x160] sm:$0xf] }
 0x2ac   : > { %6363 = vmatprep.subr.bf16.mxu0 %v8169_v61 }
 0x2ad   : > { %6674 = vmatpush3.bf16.msra.mxu1 %v10978_v56 }
 0x2ae   : > { %6292 = vmatmul.mubr.bf16.vlgmr.msra.gmra.mrb[112].mxu0 %v5245_v8  ;;  %6395 = vmatprep.subr.bf16.mxu1 %v8180_v52  ;;  %v3089_v52 = vsub.bf16 %v8672_v54, %v10952_v41  ;;  %v8817_v8 = vld [vmem:[%s7426_s8 + $0x170] sm:$0xf] }
 0x2af   : > { %6364 = vmatpush3.bf16.msra.mxu0 %v8169_v61  ;;  %6295 = vmatprep.mubr.bf16.mxu0 %v5246_v37  ;;  %v3088_v61 = vsub.bf16 %v8667_v40, %v10949_v51  ;;  %v3091_v40 = vsub.bf16 %v8692_v49, %v10961_v16  ;;  %v8781_v49 = vld [vmem:[%s7426_s8 + $0x154] sm:$0xf] }
 0x2b0   : > { %6365 = vmatprep.subr.bf16.mxu0 %v10943_v32  ;;  %v5250_v20 = vcombine.low %v3089_v52, %v3090_v21  ;;  %v8820_v37 = vld [vmem:[%s7426_s8 + $0x174] sm:$0xf] }
 0x2b1   : > { %v5274_v28 = vcombine.low %v8817_v8, %v8820_v37 }
 0x2b3   : > { %6366 = vmatpush3.bf16.msra.mxu0 %v10943_v32  ;;  %v5249_v32 = vcombine.low %v3087_v58, %v3088_v61  ;;  %v10988_v61 = vld [vmem:[#allocation95_spill] sm:$0xff] }
 0x2b4   : > { %6367 = vmatprep.subr.bf16.mxu0 %v10945_v26 }
 0x2b6   : > { %6296 = vmatmul.mubr.bf16.gmra.mrb[116].mxu0 %v5247_v53 }
 0x2b7   : > { %6368 = vmatpush3.bf16.msra.mxu0 %v10945_v26  ;;  %6299 = vmatprep.mubr.bf16.mxu0 %v5248_v33  ;;  %v3092_v26 = vsub.bf16 %v8695_v23, %v10963_v50  ;;  %v8771_v23 = vld [vmem:[%s7426_s8 + $0x148] sm:$0xf] }
 0x2b8   : > { %6369 = vmatprep.subr.bf16.mxu0 %v10957_v57 }
 0x2b9   : > { %v5251_v27 = vcombine.low %v3091_v40, %v3092_v26 }
 0x2bb   : > { %6370 = vmatpush3.bf16.msra.mxu0 %v10957_v57  ;;  %v8763_v57 = vld [vmem:[%s7426_s8 + $0x144] sm:$0xf] }
 0x2bc   : > { %6371 = vmatprep.subr.bf16.mxu0 %v10959_v42  ;;  %v5268_v54 = vcombine.low %v8760_v39, %v8763_v57 }
 0x2be   : > { %6300 = vmatmul.mubr.bf16.gmra.mrb[120].mxu0 %v5249_v32  ;;  %v10993_v32 = vld [vmem:[#allocation96_spill] sm:$0xff] }
 0x2bf   : > { %6372 = vmatpush3.bf16.msra.mxu0 %v10959_v42  ;;  %6303 = vmatprep.mubr.bf16.mxu0 %v5250_v20  ;;  %v8774_v42 = vld [vmem:[%s7426_s8 + $0x14c] sm:$0xf] }
 0x2c0   : > { %6373 = vmatprep.subr.bf16.mxu0 %v10967_v2  ;;  %v5269_v5 = vcombine.low %v8771_v23, %v8774_v42 }
 0x2c3   : > { %6374 = vmatpush3.bf16.msra.mxu0 %v10967_v2  ;;  %v8778_v2 = vld [vmem:[%s7426_s8 + $0x150] sm:$0xf] }
 0x2c4   : > { %6375 = vmatprep.subr.bf16.mxu0 %v10969_v3 }
 0x2c6   : > { %6304 = vmatmul.mubr.bf16.gmra.mrb[124].mxu0 %v5251_v27  ;;  %v10997_v27 = vld [vmem:[#allocation65_spill] sm:$0xff] }
 0x2c7   : > { %6376 = vmatpush3.bf16.msra.mxu0 %v10969_v3  ;;  %6379 = vmatprep.mubr.bf16.mxu0 %v5268_v54  ;;  %v5270_v3 = vcombine.low %v8778_v2, %v8781_v49  ;;  %v10998_v54 = vld [vmem:[#allocation97_spill] sm:$0xff] }
 0x2c8   : > { %6377 = vmatprep.subr.bf16.mxu0 %v10970_v9 }
 0x2cb   : > { %6378 = vmatpush3.bf16.msra.mxu0 %v10970_v9  ;;  %v8800_v9 = vld [vmem:[%s7426_s8 + $0x164] sm:$0xf] }
 0x2cc   : > { %6676 = vmatprep.subr.bf16.mxu0 %v10971_v35  ;;  %v5272_v1 = vcombine.low %v8797_v48, %v8800_v9 }
 0x2ce   : > { %6380 = vmatmul.mubr.bf16.vlgmr.msra.gmra.mrb[128].mxu0 %v5269_v5  ;;  %v10999_v5 = vmax.f32 %v10997_v27, %v10998_v54 }
 0x2cf   : > { %6383 = vmatprep.mubr.bf16.mxu0 %v5270_v3  ;;  %6678 = vmatpush3.bf16.msra.mxu0 %v10971_v35  ;;  %v8810_v35 = vld [vmem:[%s7426_s8 + $0x168] sm:$0xf] }
 0x2d0   : > { %6680 = vmatprep.subr.bf16.mxu0 %v10972_v59 }
 0x2d3   : > { %6682 = vmatpush3.bf16.msra.mxu0 %v10972_v59  ;;  %v5273_v59 = vcombine.low %v8810_v35, %v8813_v22 }
 0x2d4   : > { %6684 = vmatprep.subr.bf16.mxu0 %v10973_v44 }
 0x2d6   : > { %6384 = vmatmul.mubr.bf16.gmra.mrb[132].mxu0 %v5271_v18 }
 0x2d7   : > { %6387 = vmatprep.mubr.bf16.mxu0 %v5272_v1  ;;  %6686 = vmatpush3.bf16.msra.mxu0 %v10973_v44  ;;  %v8833_v44 = vld [vmem:[%s7426_s8 + $0x17c] sm:$0xf]  ;;  %v11002_v1 = vld [vmem:[#allocation66_spill] sm:$0xff]  ;;  %s10458_s8 = scalar_lea.hbm %s10515_s7, %s5314_s19 }
 0x2d8   : > { %6688 = vmatprep.subr.bf16.mxu0 %v10974_v12  ;;  %10980 = vst [vmem:[#allocation10_spill] sm:$0xff] %v8833_v44  ;;  %v5275_v46 = vcombine.low %v8830_v55, %v8833_v44 }
 0x2db   : > { %6690 = vmatpush3.bf16.msra.mxu0 %v10974_v12 }
 0x2dc   : > { %6692 = vmatprep.subr.bf16.mxu0 %v10975_v17 }
 0x2de   : > { %6388 = vmatmul.mubr.bf16.gmra.mrb[136].mxu0 %v5273_v59  ;;  %v11003_v59 = vld [vmem:[#allocation98_spill] sm:$0xff] }
 0x2df   : > { %6391 = vmatprep.mubr.bf16.mxu0 %v5274_v28  ;;  %6694 = vmatpush3.bf16.msra.mxu0 %v10975_v17  ;;  %v10982_v17 = vld [vmem:[#allocation62_spill] sm:$0xff]  ;;  %v11004_v28 = vmax.f32 %v11002_v1, %v11003_v59 }
 0x2e0   : > { %6696 = vmatprep.subr.bf16.mxu0 %v10976_v60  ;;  %v10984_v53 = vmax.f32 %v10982_v17, %v10983_v47 }
 0x2e3   : > { %6698 = vmatpush3.bf16.msra.mxu0 %v10976_v60  ;;  %v10987_v60 = vld [vmem:[#allocation63_spill] sm:$0xff] }
 0x2e4   : > { %6700 = vmatprep.subr.bf16.mxu0 %v10977_v29  ;;  %v10989_v52 = vmax.f32 %v10987_v60, %v10988_v61 }
 0x2e6   : > { %6392 = vmatmul.mubr.bf16.gmra.mrb[140].mxu0 %v5275_v46 }
 0x2e7   : > { %6702 = vmatpush3.bf16.msra.mxu0 %v10977_v29 }
 0x2e8   : > { %6704 = vmatprep.subr.bf16.mxu0 %v10978_v56 }
 0x2eb   : > { %6706 = vmatpush3.bf16.msra.mxu0 %v10978_v56  ;;  %v10992_v56 = vld [vmem:[#allocation64_spill] sm:$0xff] }
 0x2ec   : > { %v10994_v20 = vmax.f32 %v10992_v56, %v10993_v32 }
 0x323   : > { %v8844_v12 = vpop.f32.mrb[64].mxu1 }
 0x324   : > { %10981 = vst [vmem:[#allocation52_spill] sm:$0xff] %v8844_v12  ;;  %v8850_v33 = vmax.f32 %v10984_v53, %v8844_v12  ;;  %v8852_v58 = vpop.f32.mrb[65].mxu1 }
 0x325   : > { %10986 = vst [vmem:[#allocation61_spill] sm:$0xff] %v8852_v58  ;;  %v8858_v21 = vmax.f32 %v10989_v52, %v8852_v58  ;;  %v11007_v52 = vld [vmem:[#allocation67_spill] sm:$0xff] }
 0x326   : > { %10985 = vst [vmem:[#allocation60_spill] sm:$0xff] %v8850_v33 }
 0x327   : > { %10990 = vst [vmem:[#allocation53_spill] sm:$0xff] %v8858_v21  ;;  %v8860_v29 = vpop.f32.mrb[66].mxu1 }
 0x328   : > { %10991 = vst [vmem:[#allocation54_spill] sm:$0xff] %v8860_v29  ;;  %v8866_v40 = vmax.f32 %v10994_v20, %v8860_v29  ;;  %v8868_v26 = vpop.f32.mrb[67].mxu1  ;;  %v11008_v20 = vld [vmem:[#allocation99_spill] sm:$0xff] }
 0x329   : > { %10996 = vst [vmem:[#allocation8_spill] sm:$0xff] %v8868_v26  ;;  %v8874_v3 = vmax.f32 %v10999_v5, %v8868_v26  ;;  %v11009_v29 = vmax.f32 %v11007_v52, %v11008_v20  ;;  %v11012_v5 = vld [vmem:[#allocation68_spill] sm:$0xff]  ;;  %v11013_v26 = vld [vmem:[#allocation101_spill] sm:$0xff] }
 0x32a   : > { %10995 = vst [vmem:[#allocation55_spill] sm:$0xff] %v8866_v40  ;;  %v11014_v54 = vmax.f32 %v11012_v5, %v11013_v26 }
 0x32b   : > { %11000 = vst [vmem:[#allocation9_spill] sm:$0xff] %v8874_v3  ;;  %v8876_v18 = vpop.f32.mrb[68].mxu1  ;;  %v11083_v3 = vld [vmem:[#allocation27_spill] sm:$0xff] }
 0x32c   : > { %11001 = vst [vmem:[#allocation11_spill] sm:$0xff] %v8876_v18  ;;  %v8882_v46 = vmax.f32 %v11004_v28, %v8876_v18  ;;  %v8884_v53 = vpop.f32.mrb[69].mxu1  ;;  %v11017_v28 = vld [vmem:[#allocation69_spill] sm:$0xff]  ;;  %v11018_v18 = vld [vmem:[#allocation102_spill] sm:$0xff] }
 0x32d   : > { %11006 = vst [vmem:[#allocation13_spill] sm:$0xff] %v8884_v53  ;;  %v8890_v32 = vmax.f32 %v11009_v29, %v8884_v53  ;;  %v11019_v59 = vmax.f32 %v11017_v28, %v11018_v18  ;;  %v11022_v29 = vld [vmem:[#allocation70_spill] sm:$0xff]  ;;  %v11023_v53 = vld [vmem:[#allocation104_spill] sm:$0xff] }
 0x32e   : > { %11005 = vst [vmem:[#allocation12_spill] sm:$0xff] %v8882_v46  ;;  %v11024_v20 = vmax.f32 %v11022_v29, %v11023_v53 }
 0x32f   : > { %11010 = vst [vmem:[#allocation14_spill] sm:$0xff] %v8890_v32  ;;  %v8892_v56 = vpop.f32.mrb[70].mxu1  ;;  %v11087_v32 = vld [vmem:[#allocation103_spill] sm:$0xff] }
 0x330   : > { %11011 = vst [vmem:[#allocation21_spill] sm:$0xff] %v8892_v56  ;;  %v8898_v27 = vmax.f32 %v11014_v54, %v8892_v56  ;;  %v8900_v58 = vpop.f32.mrb[71].mxu1  ;;  %v11027_v54 = vld [vmem:[#allocation71_spill] sm:$0xff]  ;;  %v11028_v56 = vld [vmem:[#allocation105_spill] sm:$0xff] }
 0x331   : > { %11016 = vst [vmem:[#allocation120_spill] sm:$0xff] %v8900_v58  ;;  %v8906_v1 = vmax.f32 %v11019_v59, %v8900_v58  ;;  %v11029_v26 = vmax.f32 %v11027_v54, %v11028_v56  ;;  %v11032_v59 = vld [vmem:[#allocation72_spill] sm:$0xff]  ;;  %v11033_v58 = vld [vmem:[#allocation107_spill] sm:$0xff] }
 0x332   : > { %11015 = vst [vmem:[#allocation22_spill] sm:$0xff] %v8898_v27  ;;  %v11034_v18 = vmax.f32 %v11032_v59, %v11033_v58 }
 0x333   : > { %11020 = vst [vmem:[#allocation121_spill] sm:$0xff] %v8906_v1  ;;  %v8908_v61 = vpop.f32.mrb[72].mxu1  ;;  %v11093_v1 = vld [vmem:[#allocation31_spill] sm:$0xff] }
 0x334   : > { %11021 = vst [vmem:[#allocation122_spill] sm:$0xff] %v8908_v61  ;;  %v8914_v52 = vmax.f32 %v11024_v20, %v8908_v61  ;;  %v8916_v60 = vpop.f32.mrb[73].mxu1  ;;  %v11036_v20 = vld [vmem:[#allocation73_spill] sm:$0xff]  ;;  %v11037_v61 = vld [vmem:[#allocation108_spill] sm:$0xff] }
 0x335   : > { %11026 = vst [vmem:[#allocation124_spill] sm:$0xff] %v8916_v60  ;;  %v8922_v5 = vmax.f32 %v11029_v26, %v8916_v60  ;;  %v11038_v53 = vmax.f32 %v11036_v20, %v11037_v61  ;;  %v11041_v26 = vld [vmem:[#allocation74_spill] sm:$0xff] }
 0x336   : > { %11025 = vst [vmem:[#allocation123_spill] sm:$0xff] %v8914_v52  ;;  %v11042_v60 = vld [vmem:[#allocation110_spill] sm:$0xff] }
 0x337   : > { %11030 = vst [vmem:[#allocation125_spill] sm:$0xff] %v8922_v5  ;;  %v8924_v12 = vpop.f32.mrb[74].mxu1  ;;  %v11043_v56 = vmax.f32 %v11041_v26, %v11042_v60  ;;  %v11096_v5 = vld [vmem:[#allocation109_spill] sm:$0xff] }
 0x338   : > { %11031 = vst [vmem:[#allocation126_spill] sm:$0xff] %v8924_v12  ;;  %v8930_v28 = vmax.f32 %v11034_v18, %v8924_v12  ;;  %v8932_v47 = vpop.f32.mrb[75].mxu1  ;;  %v11045_v18 = vld [vmem:[#allocation75_spill] sm:$0xff] }
 0x339   : > { %11035 = vst [vmem:[#allocation127_spill] sm:$0xff] %v8932_v47  ;;  %v8938_v29 = vmax.f32 %v11038_v53, %v8932_v47  ;;  %v11046_v12 = vld [vmem:[#allocation111_spill] sm:$0xff]  ;;  %v11049_v53 = vld [vmem:[#allocation76_spill] sm:$0xff]  ;;  %v11050_v47 = vld [vmem:[#allocation34_spill] sm:$0xff] }
 0x33a   : > { %v11047_v58 = vmax.f32 %v11045_v18, %v11046_v12  ;;  %v11051_v61 = vmax.f32 %v11049_v53, %v11050_v47 }
 0x33b   : > { %11039 = vst [vmem:[#allocation128_spill] sm:$0xff] %v8938_v29  ;;  %v8940_v17 = vpop.f32.mrb[76].mxu1 }
 0x33c   : > { %11040 = vst [vmem:[#allocation129_spill] sm:$0xff] %v8940_v17  ;;  %v8946_v54 = vmax.f32 %v11043_v56, %v8940_v17  ;;  %v8948_v44 = vpop.f32.mrb[77].mxu1  ;;  %v11053_v56 = vld [vmem:[#allocation77_spill] sm:$0xff]  ;;  %v11054_v17 = vld [vmem:[#allocation112_spill] sm:$0xff] }
 0x33d   : > { %11044 = vst [vmem:[#allocation130_spill] sm:$0xff] %v8948_v44  ;;  %v8954_v59 = vmax.f32 %v11047_v58, %v8948_v44  ;;  %v11055_v60 = vmax.f32 %v11053_v56, %v11054_v17 }
 0x33f   : > { %v8956_v50 = vpop.f32.mrb[78].mxu1 }
 0x340   : > { %11048 = vst [vmem:[#allocation131_spill] sm:$0xff] %v8956_v50  ;;  %v8962_v20 = vmax.f32 %v11051_v61, %v8956_v50  ;;  %v8964_v55 = vpop.f32.mrb[79].mxu1 }
 0x341   : > { %11052 = vst [vmem:[#allocation132_spill] sm:$0xff] %v8964_v55  ;;  %v8970_v26 = vmax.f32 %v11055_v60, %v8964_v55 }
 0x343   : > { %v8972_v16 = vpop.f32.mrb[80].mxu1 }
 0x344   : > { %11056 = vst [vmem:[#allocation133_spill] sm:$0xff] %v8972_v16  ;;  %v8974_v58 = vpop.f32.mrb[81].mxu1 }
 0x345   : > { %11057 = vst [vmem:[#allocation134_spill] sm:$0xff] %v8974_v58  ;;  %v8976_v44 = vpop.f32.mrb[82].mxu1 }
 0x346   : > { %11058 = vst [vmem:[#allocation135_spill] sm:$0xff] %v8976_v44  ;;  %v8978_v12 = vpop.f32.mrb[83].mxu1 }
 0x347   : > { %11059 = vst [vmem:[#allocation136_spill] sm:$0xff] %v8978_v12 }
 0x34b   : > { %v8980_v18 = vpop.f32.mrb[84].mxu1 }
 0x34c   : > { %11060 = vst [vmem:[#allocation137_spill] sm:$0xff] %v8980_v18  ;;  %v8982_v61 = vpop.f32.mrb[85].mxu1 }
 0x34d   : > { %11061 = vst [vmem:[#allocation138_spill] sm:$0xff] %v8982_v61  ;;  %v8984_v50 = vpop.f32.mrb[86].mxu1 }
 0x34e   : > { %11062 = vst [vmem:[#allocation139_spill] sm:$0xff] %v8984_v50  ;;  %v8986_v47 = vpop.f32.mrb[87].mxu1  ;;  %v11074_v50 = vld [vmem:[#allocation23_spill] sm:$0xff] }
 0x34f   : > { %11063 = vst [vmem:[#allocation140_spill] sm:$0xff] %v8986_v47  ;;  %v11081_v47 = vld [vmem:[#allocation26_spill] sm:$0xff] }
 0x353   : > { %v8988_v53 = vpop.f32.mrb[88].mxu1 }
 0x354   : > { %11064 = vst [vmem:[#allocation141_spill] sm:$0xff] %v8988_v53  ;;  %v8990_v60 = vpop.f32.mrb[89].mxu1 }
 0x355   : > { %11065 = vst [vmem:[#allocation142_spill] sm:$0xff] %v8990_v60  ;;  %v8992_v55 = vpop.f32.mrb[90].mxu1 }
 0x356   : > { %11066 = vst [vmem:[#allocation143_spill] sm:$0xff] %v8992_v55  ;;  %v8994_v16 = vpop.f32.mrb[91].mxu1  ;;  %v11078_v55 = vld [vmem:[#allocation24_spill] sm:$0xff] }
 0x357   : > { %11067 = vst [vmem:[#allocation144_spill] sm:$0xff] %v8994_v16 }
 0x35b   : > { %v8996_v58 = vpop.f32.mrb[92].mxu1 }
 0x35c   : > { %11068 = vst [vmem:[#allocation145_spill] sm:$0xff] %v8996_v58  ;;  %v8998_v44 = vpop.f32.mrb[93].mxu1 }
 0x35d   : > { %11069 = vst [vmem:[#allocation146_spill] sm:$0xff] %v8998_v44  ;;  %v9000_v12 = vpop.f32.mrb[94].mxu1 }
 0x35e   : > { %11070 = vst [vmem:[#allocation147_spill] sm:$0xff] %v9000_v12  ;;  %v9002_v18 = vpop.f32.mrb[95].mxu1 }
 0x35f   : > { %11071 = vst [vmem:[#allocation148_spill] sm:$0xff] %v9002_v18  ;;  %v7070_v18 = vld [vmem:[%s10512_s4] sm:$0xff]  }
 0x361   : > { %v9004_v61 = vpop.f32.mrb[96].mxu0 }
 0x362   : > { %11072 = vst [vmem:[#allocation149_spill] sm:$0xff] %v9004_v61  ;;  %v9008_v53 = vpop.f32.mrb[97].mxu0  ;;  %v11077_v61 = vld [vmem:[#allocation25_spill] sm:$0xff] }
 0x363   : > { %11073 = vst [vmem:[#allocation150_spill] sm:$0xff] %v9008_v53  ;;  %v6261_v60 = vpop.f32.mrb[96].mxu1 }
 0x364   : > { %v3175_v16 = vpop.f32.mrb[97].mxu1  ;;  %v3385_v53 = vmul.f32 %v6261_v60, %v11078_v55  ;;  %v11082_v60 = vld [vmem:[#allocation100_spill] sm:$0xff] }
 0x365   : > { %v3383_v58 = vmul.f32 %v3175_v16, %v11074_v50  ;;  %v9013_v17 = vpop.f32.mrb[98].mxu0  ;;  %v6262_v44 = vpop.f32.mrb[98].mxu1 }
 0x366   : > { %11075 = vst [vmem:[#allocation151_spill] sm:$0xff] %v9013_v17  ;;  %v9017_v12 = vpop.f32.mrb[99].mxu0  ;;  %v3178_v56 = vpop.f32.mrb[99].mxu1 }
 0x367   : > { %11076 = vst [vmem:[#allocation152_spill] sm:$0xff] %v9017_v12  ;;  %v3384_v33 = vmul.f32 %v3178_v56, %v11077_v61  ;;  %6339 = vmatprep.mubr.f32.mxu1 %v3383_v58  ;;  %v3386_v12 = vmul.f32 %v6262_v44, %v11081_v47  ;;  %v11086_v56 = vld [vmem:[#allocation29_spill] sm:$0xff] }
 0x369   : > { %v9023_v21 = vpop.f32.mrb[100].mxu0  ;;  %6340 = vmatmul.mubr.f32.vlgmr.msra.gmra.mrb[112].mxu1 %v3384_v33 }
 0x36a   : > { %11079 = vst [vmem:[#allocation25_spill] sm:$0xff] %v9023_v21  ;;  %v9027_v50 = vpop.f32.mrb[101].mxu0  ;;  %6342 = vmatprep.mubr.f32.mxu1 %v3385_v53  ;;  %6396 = vmatpush3.bf16.msra.mxu1 %v7070_v18 }
 0x36b   : > { %11080 = vst [vmem:[#allocation24_spill] sm:$0xff] %v9027_v50  ;;  %v6265_v58 = vpop.f32.mrb[100].mxu1  ;;  %6397 = vmatprep.subr.bf16.mxu1 %v11082_v60 }
 0x36c   : > { %v3191_v33 = vpop.f32.mrb[101].mxu1 }
 0x36d   : > { %v3387_v17 = vmul.f32 %v3191_v33, %v11083_v3  ;;  %v9037_v16 = vpop.f32.mrb[102].mxu0  ;;  %v6266_v21 = vpop.f32.mrb[102].mxu1  ;;  %6343 = vmatmul.mubr.f32.gmra.mrb[114].mxu1 %v3386_v12  ;;  %v11088_v33 = vld [vmem:[#allocation28_spill] sm:$0xff] }
 0x36e   : > { %11084 = vst [vmem:[#allocation26_spill] sm:$0xff] %v9037_v16  ;;  %v9041_v46 = vpop.f32.mrb[103].mxu0  ;;  %v3194_v18 = vpop.f32.mrb[103].mxu1  ;;  %6398 = vmatpush3.bf16.msra.mxu1 %v11082_v60  ;;  %v3389_v40 = vmul.f32 %v6265_v58, %v11088_v33  ;;  %v11091_v60 = vld [vmem:[#allocation30_spill] sm:$0xff] }
 0x36f   : > { %11085 = vst [vmem:[#allocation100_spill] sm:$0xff] %v9041_v46  ;;  %v3388_v50 = vmul.f32 %v3194_v18, %v11086_v56  ;;  %6345 = vmatprep.mubr.f32.mxu1 %v3387_v17  ;;  %6399 = vmatprep.subr.bf16.mxu1 %v11087_v32  ;;  %v3390_v44 = vmul.f32 %v6266_v21, %v11091_v60  ;;  %v11092_v46 = vld [vmem:[#allocation106_spill] sm:$0xff]  ;;  %v11095_v17 = vld [vmem:[#allocation33_spill] sm:$0xff]  ;;  %v11099_v21 = vld [vmem:[#allocation35_spill] sm:$0xff] }
 0x371   : > { %v9049_v3 = vpop.f32.mrb[104].mxu0  ;;  %6346 = vmatmul.mubr.f32.gmra.mrb[116].mxu1 %v3388_v50 }
 0x372   : > { %11089 = vst [vmem:[#allocation29_spill] sm:$0xff] %v9049_v3  ;;  %v9053_v53 = vpop.f32.mrb[105].mxu0  ;;  %6348 = vmatprep.mubr.f32.mxu1 %v3389_v40  ;;  %6400 = vmatpush3.bf16.msra.mxu1 %v11087_v32 }
 0x373   : > { %11090 = vst [vmem:[#allocation103_spill] sm:$0xff] %v9053_v53  ;;  %v6269_v18 = vpop.f32.mrb[104].mxu1  ;;  %6401 = vmatprep.subr.bf16.mxu1 %v11092_v46 }
 0x374   : > { %v3207_v58 = vpop.f32.mrb[105].mxu1 }
 0x375   : > { %v3391_v16 = vmul.f32 %v3207_v58, %v11093_v1  ;;  %v9061_v50 = vpop.f32.mrb[106].mxu0  ;;  %v6270_v27 = vpop.f32.mrb[106].mxu1  ;;  %6349 = vmatmul.mubr.f32.gmra.mrb[118].mxu1 %v3390_v44  ;;  %v11097_v58 = vld [vmem:[#allocation32_spill] sm:$0xff] }
 0x376   : > { %v9065_v12 = vpop.f32.mrb[107].mxu0  ;;  %v3210_v32 = vpop.f32.mrb[107].mxu1  ;;  %6402 = vmatpush3.bf16.msra.mxu1 %v11092_v46  ;;  %v3393_v3 = vmul.f32 %v6269_v18, %v11097_v58  ;;  %v3394_v46 = vmul.f32 %v6270_v27, %v10933_v24  ;;  %v3561_v27 = vsub.bf16 %v8760_v39, %v10866_v45  ;;  %v3564_v45 = vsub.bf16 %v8774_v42, %v7668_v0 }
 0x377   : > { %11094 = vst [vmem:[#allocation28_spill] sm:$0xff] %v9065_v12  ;;  %v3392_v53 = vmul.f32 %v3210_v32, %v11095_v17  ;;  %6351 = vmatprep.mubr.f32.mxu1 %v3391_v16  ;;  %6403 = vmatprep.subr.bf16.mxu1 %v11096_v5  ;;  %v3562_v16 = vsub.bf16 %v8763_v57, %v7626_v4 }
 0x378   : > { %v3565_v57 = vsub.bf16 %v8778_v2, %v7681_v6  ;;  %v3567_v6 = vsub.bf16 %v8790_v13, %v7721_v10  ;;  %v3569_v2 = vsub.bf16 %v8797_v48, %v7730_v14  ;;  %v3571_v10 = vsub.bf16 %v8810_v35, %v10947_v34  ;;  %v11115_v34 = vld [vmem:[#allocation19_spill] sm:$0xff] }
 0x379   : > { %v9073_v52 = vpop.f32.mrb[108].mxu0  ;;  %6352 = vmatmul.mubr.f32.gmra.mrb[120].mxu1 %v3392_v53  ;;  %v5276_v39 = vcombine.low %v3561_v27, %v3562_v16  ;;  %v3573_v14 = vsub.bf16 %v8817_v8, %v10952_v41 }
 0x37a   : > { %v9077_v40 = vpop.f32.mrb[109].mxu0  ;;  %6354 = vmatprep.mubr.f32.mxu1 %v3393_v3  ;;  %6404 = vmatpush3.bf16.msra.mxu1 %v11096_v5 }
 0x37b   : > { %11098 = vst [vmem:[#allocation30_spill] sm:$0xff] %v9077_v40  ;;  %v6273_v32 = vpop.f32.mrb[108].mxu1  ;;  %6405 = vmatprep.subr.bf16.mxu1 %v8494_v36 }
 0x37c   : > { %v3223_v18 = vpop.f32.mrb[109].mxu1 }
 0x37d   : > { %v3395_v12 = vmul.f32 %v3223_v18, %v11099_v21  ;;  %v9085_v53 = vpop.f32.mrb[110].mxu0  ;;  %v6274_v29 = vpop.f32.mrb[110].mxu1  ;;  %6355 = vmatmul.mubr.f32.gmra.mrb[122].mxu1 %v3394_v46  ;;  %v3397_v46 = vmul.f32 %v6273_v32, %v7949_v38 }
 0x37e   : > { %11100 = vst [vmem:[#allocation106_spill] sm:$0xff] %v9085_v53  ;;  %v9089_v44 = vpop.f32.mrb[111].mxu0  ;;  %v3226_v5 = vpop.f32.mrb[111].mxu1  ;;  %6406 = vmatpush3.bf16.msra.mxu1 %v8494_v36  ;;  %v3563_v36 = vsub.bf16 %v8771_v23, %v7664_v63 }
 0x37f   : > { %11101 = vst [vmem:[#allocation31_spill] sm:$0xff] %v9089_v44  ;;  %v3396_v40 = vmul.f32 %v3226_v5, %v7951_v43  ;;  %6357 = vmatprep.mubr.f32.mxu1 %v3395_v12  ;;  %6407 = vmatprep.subr.bf16.mxu1 %v8515_v62  ;;  %v3566_v12 = vsub.bf16 %v8781_v49, %v7685_v7 }
 0x380   : > { %v5277_v0 = vcombine.low %v3563_v36, %v3564_v45  ;;  %v3568_v7 = vsub.bf16 %v8793_v19, %v7725_v30  ;;  %v3572_v30 = vsub.bf16 %v8813_v22, %v10949_v51  ;;  %v11116_v51 = vld [vmem:[#allocation59_spill] sm:$0xff]  ;;  %v11117_v22 = vld [vmem:[#allocation20_spill] sm:$0xff]  ;;  %v11118_v45 = vld [vmem:[#allocation10_spill] sm:$0xff] }
 0x381   : > { %v9101_v3 = vpop.f32.mrb[112].mxu0  ;;  %6358 = vmatmul.mubr.f32.gmra.mrb[124].mxu1 %v3396_v40  ;;  %v3398_v40 = vmul.f32 %v6274_v29, %v7959_v11  ;;  %v3575_v35 = vsub.bf16 %v11116_v51, %v11115_v34 }
 0x382   : > { %11102 = vst [vmem:[#allocation33_spill] sm:$0xff] %v9101_v3  ;;  %v9107_v4 = vpop.f32.mrb[113].mxu0  ;;  %6360 = vmatprep.mubr.f32.mxu1 %v3397_v46  ;;  %6408 = vmatpush3.bf16.msra.mxu1 %v8515_v62  ;;  %v5278_v62 = vcombine.low %v3565_v57, %v3566_v12  ;;  %v5279_v16 = vcombine.low %v3567_v6, %v3568_v7 }
 0x383   : > { %11103 = vst [vmem:[#allocation109_spill] sm:$0xff] %v9107_v4  ;;  %v9115_v32 = vpop.f32.mrb[114].mxu0  ;;  %6409 = vmatprep.subr.bf16.mxu1 %v8538_v25  ;;  %v11177_v4 = vld [vmem:[#allocation52_spill] sm:$0xff] }
 0x384   : > { %11104 = vst [vmem:[#allocation32_spill] sm:$0xff] %v9115_v32  ;;  %v9118_v63 = vpop.f32.mrb[115].mxu0  ;;  %v11176_v32 = vld [vmem:[#allocation94_spill] sm:$0xff] }
 0x385   : > { %11105 = vst [vmem:[#allocation35_spill] sm:$0xff] %v9118_v63  ;;  %6361 = vmatmul.mubr.f32.gmra.mrb[126].mxu1 %v3398_v40  ;;  %v11122_v40 = vld [vmem:[#allocation23_spill] sm:$0xff] }
 0x386   : > { %6410 = vmatpush3.bf16.msra.mxu1 %v8538_v25  ;;  %6411 = vmatprep.mubr.bf16.mxu1 %v5276_v39  ;;  %v3570_v25 = vsub.bf16 %v8800_v9, %v7734_v15  ;;  %v3574_v15 = vsub.bf16 %v8820_v37, %v10954_v31  ;;  %v5281_v9 = vcombine.low %v3571_v10, %v3572_v30  ;;  %v11123_v10 = vld [vmem:[#allocation27_spill] sm:$0xff] }
 0x387   : > { %v3576_v39 = vsub.bf16 %v11118_v45, %v11117_v22 }
 0x388   : > { %v5280_v5 = vcombine.low %v3569_v2, %v3570_v25  ;;  %v5282_v46 = vcombine.low %v3573_v14, %v3574_v15 }
 0x389   : > { %v9121_v23 = vpop.f32.mrb[116].mxu0  ;;  %6412 = vmatmul.mubr.bf16.vlgmr.msra.gmra.mrb[128].mxu1 %v5277_v0  ;;  %v5283_v8 = vcombine.low %v3575_v35, %v3576_v39 }
 0x38a   : > { %11106 = vst [vmem:[#allocation153_spill] sm:$0xff] %v9121_v23  ;;  %v9127_v42 = vpop.f32.mrb[117].mxu0  ;;  %6415 = vmatprep.mubr.bf16.mxu1 %v5278_v62 }
 0x38b   : > { %11107 = vst [vmem:[#allocation154_spill] sm:$0xff] %v9127_v42  ;;  %v9133_v49 = vpop.f32.mrb[118].mxu0 }
 0x38c   : > { %11108 = vst [vmem:[#allocation155_spill] sm:$0xff] %v9133_v49  ;;  %v9135_v29 = vpop.f32.mrb[119].mxu0 }
 0x38d   : > { %11109 = vst [vmem:[#allocation156_spill] sm:$0xff] %v9135_v29 }
 0x391   : > { %v9137_v27 = vpop.f32.mrb[120].mxu0  ;;  %6416 = vmatmul.mubr.bf16.gmra.mrb[132].mxu1 %v5279_v16 }
 0x392   : > { %11110 = vst [vmem:[#allocation157_spill] sm:$0xff] %v9137_v27  ;;  %v9143_v13 = vpop.f32.mrb[121].mxu0  ;;  %6419 = vmatprep.mubr.bf16.mxu1 %v5280_v5 }
 0x393   : > { %11111 = vst [vmem:[#allocation158_spill] sm:$0xff] %v9143_v13  ;;  %v9149_v19 = vpop.f32.mrb[122].mxu0 }
 0x394   : > { %11112 = vst [vmem:[#allocation159_spill] sm:$0xff] %v9149_v19  ;;  %v9151_v48 = vpop.f32.mrb[123].mxu0 }
 0x395   : > { %11113 = vst [vmem:[#allocation160_spill] sm:$0xff] %v9151_v48 }
 0x399   : > { %v9153_v36 = vpop.f32.mrb[124].mxu0  ;;  %6420 = vmatmul.mubr.bf16.gmra.mrb[136].mxu1 %v5281_v9 }
 0x39a   : > { %11114 = vst [vmem:[#allocation161_spill] sm:$0xff] %v9153_v36  ;;  %v9159_v57 = vpop.f32.mrb[125].mxu0  ;;  %6423 = vmatprep.mubr.bf16.mxu1 %v5282_v46 }
 0x39b   : > { %11119 = vst [vmem:[#allocation19_spill] sm:$0xff] %v9159_v57  ;;  %v9161_v41 = vpop.f32.mrb[126].mxu0 }
 0x39c   : > { %11120 = vst [vmem:[#allocation59_spill] sm:$0xff] %v9161_v41  ;;  %v9163_v31 = vpop.f32.mrb[127].mxu0 }
 0x39d   : > { %11121 = vst [vmem:[#allocation20_spill] sm:$0xff] %v9163_v31 }
 0x3a1   : > { %v6381_v37 = vpop.f32.mrb[128].mxu0  ;;  %6424 = vmatmul.mubr.bf16.gmra.mrb[140].mxu1 %v5283_v8 }
 0x3a2   : > { %v3659_v12 = vpop.f32.mrb[129].mxu0  ;;  %v3869_v2 = vmul.f32 %v6381_v37, %v11078_v55 }
 0x3a3   : > { %v3867_v0 = vmul.f32 %v3659_v12, %v11122_v40  ;;  %v6382_v62 = vpop.f32.mrb[130].mxu0  ;;  %v11125_v40 = vld [vmem:[#allocation149_spill] sm:$0xff] }
 0x3a4   : > { %v3662_v6 = vpop.f32.mrb[131].mxu0  ;;  %v3870_v25 = vmul.f32 %v6382_v62, %v11081_v47 }
 0x3a5   : > { %v3868_v7 = vmul.f32 %v3662_v6, %v11077_v61  ;;  %6459 = vmatprep.mubr.f32.mxu0 %v3867_v0  ;;  %v11127_v6 = vld [vmem:[#allocation53_spill] sm:$0xff] }
 0x3a7   : > { %6460 = vmatmul.mubr.f32.vlgmr.msra.gmra.mrb[144].mxu0 %v3868_v7 }
 0x3a8   : > { %6462 = vmatprep.mubr.f32.mxu0 %v3869_v2 }
 0x3a9   : > { %v6385_v16 = vpop.f32.mrb[132].mxu0 }
 0x3aa   : > { %v3675_v5 = vpop.f32.mrb[133].mxu0  ;;  %v3873_v46 = vmul.f32 %v6385_v16, %v11088_v33 }
 0x3ab   : > { %v3871_v30 = vmul.f32 %v3675_v5, %v11123_v10  ;;  %v6386_v14 = vpop.f32.mrb[134].mxu0  ;;  %6463 = vmatmul.mubr.f32.gmra.mrb[146].mxu0 %v3870_v25  ;;  %v11130_v25 = vld [vmem:[#allocation55_spill] sm:$0xff] }
 0x3ac   : > { %v3678_v15 = vpop.f32.mrb[135].mxu0  ;;  %v3874_v55 = vmul.f32 %v6386_v14, %v11091_v60  ;;  %v11134_v14 = vld [vmem:[#allocation152_spill] sm:$0xff] }
 0x3ad   : > { %v3872_v9 = vmul.f32 %v3678_v15, %v11086_v56  ;;  %6465 = vmatprep.mubr.f32.mxu0 %v3871_v30  ;;  %v11133_v30 = vld [vmem:[#allocation9_spill] sm:$0xff] }
 0x3ae   : > { %v11135_v15 = vmax.f32 %v11133_v30, %v11134_v14 }
 0x3af   : > { %6466 = vmatmul.mubr.f32.gmra.mrb[148].mxu0 %v3872_v9 }
 0x3b0   : > { %6468 = vmatprep.mubr.f32.mxu0 %v3873_v46 }
 0x3b1   : > { %v6389_v61 = vpop.f32.mrb[136].mxu0 }
 0x3b2   : > { %v3691_v34 = vpop.f32.mrb[137].mxu0  ;;  %v3877_v45 = vmul.f32 %v6389_v61, %v11097_v58  ;;  %v11137_v61 = vld [vmem:[#allocation25_spill] sm:$0xff] }
 0x3b3   : > { %v3875_v47 = vmul.f32 %v3691_v34, %v11093_v1  ;;  %v6390_v51 = vpop.f32.mrb[138].mxu0  ;;  %6469 = vmatmul.mubr.f32.gmra.mrb[150].mxu0 %v3874_v55  ;;  %v11136_v55 = vld [vmem:[#allocation12_spill] sm:$0xff] }
 0x3b4   : > { %v3694_v35 = vpop.f32.mrb[139].mxu0  ;;  %v3878_v56 = vmul.f32 %v6390_v51, %v10933_v24  ;;  %v11124_v24 = vld [vmem:[#allocation60_spill] sm:$0xff]  ;;  %v11138_v34 = vmax.f32 %v11136_v55, %v11137_v61  ;;  %v11151_v55 = vld [vmem:[#allocation125_spill] sm:$0xff] }
 0x3b5   : > { %v3876_v22 = vmul.f32 %v3694_v35, %v11095_v17  ;;  %6471 = vmatprep.mubr.f32.mxu0 %v3875_v47  ;;  %v11126_v0 = vmax.f32 %v11124_v24, %v11125_v40  ;;  %v11139_v35 = vld [vmem:[#allocation14_spill] sm:$0xff] }
 0x3b7   : > { %6472 = vmatmul.mubr.f32.gmra.mrb[152].mxu0 %v3876_v22  ;;  %v11140_v22 = vld [vmem:[#allocation24_spill] sm:$0xff] }
 0x3b8   : > { %6474 = vmatprep.mubr.f32.mxu0 %v3877_v45  ;;  %v11141_v45 = vmax.f32 %v11139_v35, %v11140_v22 }
 0x3b9   : > { %v6393_v33 = vpop.f32.mrb[140].mxu0 }
 0x3ba   : > { %v3707_v39 = vpop.f32.mrb[141].mxu0  ;;  %v3881_v12 = vmul.f32 %v6393_v33, %v7949_v38 }
 0x3bb   : > { %v3879_v60 = vmul.f32 %v3707_v39, %v11099_v21  ;;  %v6394_v8 = vpop.f32.mrb[142].mxu0  ;;  %6475 = vmatmul.mubr.f32.gmra.mrb[154].mxu0 %v3878_v56  ;;  %v11142_v39 = vld [vmem:[#allocation22_spill] sm:$0xff] }
 0x3bc   : > { %v3710_v37 = vpop.f32.mrb[143].mxu0  ;;  %v3882_v17 = vmul.f32 %v6394_v8, %v7959_v11  ;;  %v11131_v11 = vld [vmem:[#allocation151_spill] sm:$0xff] }
 0x3bd   : > { %v3880_v1 = vmul.f32 %v3710_v37, %v7951_v43  ;;  %6477 = vmatprep.mubr.f32.mxu0 %v3879_v60  ;;  %v11128_v43 = vld [vmem:[#allocation150_spill] sm:$0xff]  ;;  %v11132_v16 = vmax.f32 %v11130_v25, %v11131_v11  ;;  %v11149_v25 = vld [vmem:[#allocation29_spill] sm:$0xff] }
 0x3be   : > { %v11129_v7 = vmax.f32 %v11127_v6, %v11128_v43  ;;  %v11143_v60 = vld [vmem:[#allocation26_spill] sm:$0xff] }
 0x3bf   : > { %6478 = vmatmul.mubr.f32.gmra.mrb[156].mxu0 %v3880_v1  ;;  %v11144_v8 = vmax.f32 %v11142_v39, %v11143_v60 }
 0x3c0   : > { %6480 = vmatprep.mubr.f32.mxu0 %v3881_v12  ;;  %v11145_v12 = vld [vmem:[#allocation121_spill] sm:$0xff] }
 0x3c3   : > { %6481 = vmatmul.mubr.f32.gmra.mrb[158].mxu0 %v3882_v17  ;;  %v11146_v17 = vld [vmem:[#allocation100_spill] sm:$0xff] }
 0x3c4   : > { %v11147_v24 = vmax.f32 %v11145_v12, %v11146_v17 }
 0x43c   : > { %v9181_v58 = vpop.f32.mrb[112].mxu1 }
 0x43d   : > { %v4077_v21 = vmax.f32 %v11126_v0, %v9181_v58  ;;  %v9187_v62 = vpop.f32.mrb[113].mxu1 }
 0x43e   : > { %v4076_v2 = vmax.f32 %v11129_v7, %v9187_v62  ;;  %v11148_v7 = vld [vmem:[#allocation123_spill] sm:$0xff] }
 0x440   : > { %v9193_v38 = vpop.f32.mrb[114].mxu1 }
 0x441   : > { %v9199_v5 = vmax.f32 %v11132_v16, %v9193_v38  ;;  %v9201_v10 = vpop.f32.mrb[115].mxu1  ;;  %v11150_v16 = vmax.f32 %v11148_v7, %v11149_v25  ;;  %v11155_v7 = vld [vmem:[#allocation128_spill] sm:$0xff] }
 0x442   : > { %v9207_v9 = vmax.f32 %v11135_v15, %v9201_v10 }
 0x444   : > { %v9209_v46 = vpop.f32.mrb[116].mxu1 }
 0x445   : > { %v9215_v47 = vmax.f32 %v11138_v34, %v9209_v46  ;;  %v9217_v51 = vpop.f32.mrb[117].mxu1  ;;  %v11152_v34 = vld [vmem:[#allocation103_spill] sm:$0xff] }
 0x446   : > { %v9223_v56 = vmax.f32 %v11141_v45, %v9217_v51  ;;  %v11153_v35 = vmax.f32 %v11151_v55, %v11152_v34  ;;  %v11158_v55 = vmax.f32 %v8946_v54, %v9073_v52  ;;  %v11165_v54 = vmax.f32 %v8970_v26, %v9089_v44 }
 0x448   : > { %v9225_v33 = vpop.f32.mrb[118].mxu1 }
 0x449   : > { %v9231_v37 = vmax.f32 %v11144_v8, %v9225_v33  ;;  %v9233_v1 = vpop.f32.mrb[119].mxu1  ;;  %v11154_v8 = vmax.f32 %v8930_v28, %v9061_v50  ;;  %v11160_v28 = vld [vmem:[#allocation30_spill] sm:$0xff] }
 0x44a   : > { %v9239_v0 = vmax.f32 %v11147_v24, %v9233_v1 }
 0x44c   : > { %v9241_v6 = vpop.f32.mrb[120].mxu1 }
 0x44d   : > { %v9247_v30 = vmax.f32 %v11150_v16, %v9241_v6  ;;  %v9249_v15 = vpop.f32.mrb[121].mxu1  ;;  %v11156_v16 = vld [vmem:[#allocation28_spill] sm:$0xff] }
 0x44e   : > { %v9255_v45 = vmax.f32 %v11153_v35, %v9249_v15  ;;  %v11157_v18 = vmax.f32 %v11155_v7, %v11156_v16 }
 0x450   : > { %v9257_v39 = vpop.f32.mrb[122].mxu1 }
 0x451   : > { %v9263_v12 = vmax.f32 %v11154_v8, %v9257_v39  ;;  %v9265_v24 = vpop.f32.mrb[123].mxu1  ;;  %v11161_v8 = vmax.f32 %v8954_v59, %v11160_v28  ;;  %v6822_v59 = vld [vmem:[%s10513_s5] sm:$0xff]  }
 0x452   : > { %v9271_v31 = vmax.f32 %v11157_v18, %v9265_v24  ;;  %v11163_v18 = vmax.f32 %v8962_v20, %v9085_v53  ;;  %6483 = vmatprep.subr.bf16.mxu1 %v6822_v59  ;;  %v6823_v20 = vld [vmem:[%s10513_s5 + $0x8] sm:$0xff]  }
 0x453   : > { %6484 = vmatpush3.bf16.msra.mxu1 %v6822_v59 }
 0x454   : > { %v9273_v41 = vpop.f32.mrb[124].mxu1  ;;  %6485 = vmatprep.subr.bf16.mxu1 %v6823_v20 }
 0x455   : > { %v9279_v35 = vmax.f32 %v11158_v55, %v9273_v41  ;;  %v9281_v57 = vpop.f32.mrb[125].mxu1 }
 0x456   : > { %11159 = vst [vmem:[#allocation10_spill] sm:$0xff] %v9281_v57  ;;  %v9287_v36 = vmax.f32 %v11161_v8, %v9281_v57  ;;  %v6824_v8 = vld [vmem:[%s10513_s5 + $0x10] sm:$0xff]  }
 0x457   : > { %6486 = vmatpush3.bf16.msra.mxu1 %v6823_v20  ;;  %v6826_v20 = vld [vmem:[%s10513_s5 + $0x20] sm:$0xff]  }
 0x458   : > { %v9289_v48 = vpop.f32.mrb[126].mxu1  ;;  %6487 = vmatprep.subr.bf16.mxu1 %v6824_v8 }
 0x459   : > { %11162 = vst [vmem:[#allocation23_spill] sm:$0xff] %v9289_v48  ;;  %v9295_v7 = vmax.f32 %v11163_v18, %v9289_v48  ;;  %v9297_v19 = vpop.f32.mrb[127].mxu1 }
 0x45a   : > { %11164 = vst [vmem:[#allocation27_spill] sm:$0xff] %v9297_v19  ;;  %v9303_v55 = vmax.f32 %v11165_v54, %v9297_v19  ;;  %v6825_v54 = vld [vmem:[%s10513_s5 + $0x18] sm:$0xff]  }
 0x45b   : > { %6488 = vmatpush3.bf16.msra.mxu1 %v6824_v8 }
 0x45c   : > { %11166 = vst [vmem:[#allocation60_spill] sm:$0xff] %v9303_v55  ;;  %v9314_v26 = vpop.f32.mrb[128].mxu1  ;;  %6489 = vmatprep.subr.bf16.mxu1 %v6825_v54 }
 0x45d   : > { %11167 = vst [vmem:[#allocation149_spill] sm:$0xff] %v9314_v26  ;;  %v9316_v18 = vpop.f32.mrb[129].mxu1 }
 0x45e   : > { %11168 = vst [vmem:[#allocation53_spill] sm:$0xff] %v9316_v18  ;;  %v9321_v59 = vpop.f32.mrb[130].mxu1 }
 0x45f   : > { %11169 = vst [vmem:[#allocation150_spill] sm:$0xff] %v9321_v59  ;;  %v9323_v13 = vpop.f32.mrb[131].mxu1  ;;  %6490 = vmatpush3.bf16.msra.mxu1 %v6825_v54  ;;  %v11175_v59 = vld [vmem:[#allocation62_spill] sm:$0xff] }
 0x460   : > { %11170 = vst [vmem:[#allocation55_spill] sm:$0xff] %v9323_v13  ;;  %6491 = vmatprep.subr.bf16.mxu1 %v6826_v20 }
 0x463   : > { %6492 = vmatpush3.bf16.msra.mxu1 %v6826_v20 }
 0x464   : > { %v9328_v27 = vpop.f32.mrb[132].mxu1 }
 0x465   : > { %11171 = vst [vmem:[#allocation151_spill] sm:$0xff] %v9328_v27  ;;  %v9330_v8 = vpop.f32.mrb[133].mxu1 }
 0x466   : > { %11172 = vst [vmem:[#allocation9_spill] sm:$0xff] %v9330_v8  ;;  %v9332_v29 = vpop.f32.mrb[134].mxu1  ;;  %v11178_v8 = vld [vmem:[#allocation63_spill] sm:$0xff] }
 0x467   : > { %11173 = vst [vmem:[#allocation152_spill] sm:$0xff] %v9332_v29  ;;  %v9334_v49 = vpop.f32.mrb[135].mxu1  ;;  %v11179_v29 = vld [vmem:[#allocation95_spill] sm:$0xff] }
 0x468   : > { %11174 = vst [vmem:[#allocation12_spill] sm:$0xff] %v9334_v49 }
 0x47a   : > { %v6461_v42 = vpop.f32.mrb[144].mxu0 }
 0x47b   : > { %v4093_v23 = vmax.f32 %v4077_v21, %v6461_v42  ;;  %v3949_v63 = vpop.f32.mrb[145].mxu0 }
 0x47c   : > { %v4092_v13 = vmax.f32 %v4076_v2, %v3949_v63  ;;  %v11180_v2 = vld [vmem:[#allocation61_spill] sm:$0xff] }
 0x47d   : > { %v4109_v54 = vsub.f32 %v11175_v59, %v4093_v23  ;;  %v4157_v18 = vsub.f32 %v11176_v32, %v4093_v23  ;;  %v4205_v26 = vsub.f32 %v11177_v4, %v4093_v23  ;;  %v4253_v3 = vsub.f32 %v11125_v40, %v4093_v23 }
 0x47e   : > { %v4301_v20 = vsub.f32 %v9181_v58, %v4093_v23  ;;  %v4349_v27 = vsub.f32 %v6461_v42, %v4093_v23  ;;  %v4108_v19 = vsub.f32 %v11178_v8, %v4092_v13  ;;  %v4156_v44 = vsub.f32 %v11179_v29, %v4092_v13  ;;  %v6464_v49 = vpop.f32.mrb[146].mxu0 }
 0x47f   : > { %v4126_v48 = vmul.f32 1.442695, %v4109_v54  ;;  %v4174_v21 = vmul.f32 1.442695, %v4157_v18  ;;  %v4222_v53 = vmul.f32 1.442695, %v4205_v26  ;;  %v4204_v57 = vsub.f32 %v11180_v2, %v4092_v13 }
 0x480   : > { %v4270_v59 = vmul.f32 1.442695, %v4253_v3  ;;  %v4318_v28 = vmul.f32 1.442695, %v4301_v20  ;;  %v4252_v32 = vsub.f32 %v11128_v43, %v4092_v13  ;;  %v4366_v4 = vmul.f32 1.442695, %v4349_v27 }
 0x481   : > { %6830 = vpow2.f32 %v4126_v48  ;;  %v4124_v40 = vmul.f32 1.442695, %v4108_v19  ;;  %v4172_v55 = vmul.f32 1.442695, %v4156_v44  ;;  %v4220_v23 = vmul.f32 1.442695, %v4204_v57 }
 0x482   : > { %6832 = vpow2.f32 %v4174_v21  ;;  %v4300_v42 = vsub.f32 %v9187_v62, %v4092_v13  ;;  %v4348_v58 = vsub.f32 %v3949_v63, %v4092_v13  ;;  %v3959_v29 = vpop.f32.mrb[147].mxu0  ;;  %v6827_v26 = vld [vmem:[%s10513_s5 + $0x28] sm:$0xff]   ;;  %v4268_v18 = vmul.f32 1.442695, %v4252_v32  ;;  %v6828_v44 = vld [vmem:[%s10513_s5 + $0x30] sm:$0xff]  }
 0x483   : > { %6834 = vpow2.f32 %v4222_v53  ;;  %v4095_v3 = vmax.f32 %v9199_v5, %v6464_v49  ;;  %v4094_v43 = vmax.f32 %v9207_v9, %v3959_v29  ;;  %v9351_v48 = vpop.f32.mrb[148].mxu0  ;;  %6493 = vmatprep.subr.bf16.mxu1 %v6827_v26  ;;  %v11181_v53 = vld [vmem:[#allocation64_spill] sm:$0xff]  ;;  %v11183_v9 = vld [vmem:[#allocation54_spill] sm:$0xff] }
 0x484   : > { %6836 = vpow2.f32 %v4270_v59  ;;  %v4316_v27 = vmul.f32 1.442695, %v4300_v42  ;;  %v4364_v63 = vmul.f32 1.442695, %v4348_v58  ;;  %v9358_v13 = vmax.f32 %v9215_v47, %v9351_v48  ;;  %v9360_v19 = vpop.f32.mrb[149].mxu0  ;;  %v11182_v62 = vld [vmem:[#allocation96_spill] sm:$0xff]  ;;  %6494 = vmatpush3.bf16.msra.mxu1 %v6827_v26 }
 0x485   : > { %6838 = vpow2.f32 %v4318_v28  ;;  %v4111_v57 = vsub.f32 %v11181_v53, %v4095_v3  ;;  %v4159_v5 = vsub.f32 %v11182_v62, %v4095_v3  ;;  %v4207_v8 = vsub.f32 %v11183_v9, %v4095_v3  ;;  %6495 = vmatprep.subr.bf16.mxu1 %v6828_v44  ;;  %v9369_v47 = vpop.f32.mrb[136].mxu1 }
 0x486   : > { %6840 = vpow2.f32 %v4366_v4  ;;  %v4255_v54 = vsub.f32 %v11131_v11, %v4095_v3  ;;  %v4303_v20 = vsub.f32 %v9193_v38, %v4095_v3  ;;  %v4351_v21 = vsub.f32 %v6464_v49, %v4095_v3  ;;  %v9367_v2 = vpop.f32.mrb[150].mxu0  ;;  %11184 = vst [vmem:[#allocation25_spill] sm:$0xff] %v9369_v47  ;;  %v11185_v4 = vld [vmem:[#allocation65_spill] sm:$0xff]  ;;  %v11187_v38 = vld [vmem:[#allocation8_spill] sm:$0xff]  ;;  %v9376_v9 = vpop.f32.mrb[137].mxu1 }
 0x487   : > { %6842 = vpow2.f32 %v4124_v40  ;;  %v4130_v28 = vmul.f32 1.442695, %v4111_v57  ;;  %v4178_v59 = vmul.f32 1.442695, %v4159_v5  ;;  %v4226_v32 = vmul.f32 1.442695, %v4207_v8 }
 0x488   : > { %6844 = vpow2.f32 %v4172_v55  ;;  %v4274_v42 = vmul.f32 1.442695, %v4255_v54  ;;  %v4322_v58 = vmul.f32 1.442695, %v4303_v20  ;;  %v4370_v53 = vmul.f32 1.442695, %v4351_v21  ;;  %6496 = vmatpush3.bf16.msra.mxu1 %v6828_v44 }
 0x489   : > { %6846 = vpow2.f32 %v4220_v23  ;;  %v4110_v26 = vsub.f32 %v11185_v4, %v4094_v43  ;;  %v11186_v11 = vld [vmem:[#allocation97_spill] sm:$0xff]  ;;  %v4206_v49 = vsub.f32 %v11187_v38, %v4094_v43  ;;  %v9374_v3 = vpop.f32.mrb[151].mxu0  ;;  %11188 = vst [vmem:[#allocation14_spill] sm:$0xff] %v9376_v9  ;;  %v4254_v40 = vsub.f32 %v11134_v14, %v4094_v43  ;;  %v9382_v23 = vpop.f32.mrb[138].mxu1 }
 0x48a   : > { %v4158_v62 = vsub.f32 %v11186_v11, %v4094_v43  ;;  %6848 = vpow2.f32 %v4268_v18  ;;  %v4302_v55 = vsub.f32 %v9201_v10, %v4094_v43  ;;  %v4350_v57 = vsub.f32 %v3959_v29, %v4094_v43  ;;  %v9380_v5 = vpop.f32.mrb[152].mxu0  ;;  %11189 = vst [vmem:[#allocation24_spill] sm:$0xff] %v9382_v23  ;;  %v11193_v43 = vld [vmem:[#allocation66_spill] sm:$0xff] }
 0x48b   : > { %v9384_v8 = vpop.eup %6830  ;;  %6850 = vpow2.f32 %v4316_v27  ;;  %v4128_v54 = vmul.f32 1.442695, %v4110_v26  ;;  %v4224_v21 = vmul.f32 1.442695, %v4206_v49  ;;  %v4272_v44 = vmul.f32 1.442695, %v4254_v40 }
 0x48c   : > { %11190 = vst [vmem:[#allocation22_spill] sm:$0xff] %v9384_v8  ;;  %v4176_v20 = vmul.f32 1.442695, %v4158_v62  ;;  %v9386_v4 = vpop.eup %6832  ;;  %6852 = vpow2.f32 %v4364_v63  ;;  %v9388_v18 = vmul.f32 1.442695, %v4302_v55  ;;  %v4113_v27 = vsub.f32 %v11193_v43, %v9358_v13  ;;  %v11194_v26 = vld [vmem:[#allocation98_spill] sm:$0xff] }
 0x48d   : > { %11191 = vst [vmem:[#allocation26_spill] sm:$0xff] %v9386_v4  ;;  %v9390_v14 = vmul.f32 1.442695, %v4350_v57  ;;  %v9392_v10 = vpop.eup %6834  ;;  %v4397_v29 = vadd.f32 %v9386_v4, %v9384_v8  ;;  %6854 = vpow2.f32 %v4130_v28  ;;  %v4161_v11 = vsub.f32 %v11194_v26, %v9358_v13  ;;  %v9400_v62 = vpop.f32.mrb[153].mxu0  ;;  %v11197_v49 = vld [vmem:[#allocation11_spill] sm:$0xff] }
 0x48e   : > { %11192 = vst [vmem:[#allocation121_spill] sm:$0xff] %v9392_v10  ;;  %v9402_v63 = vpop.f32.mrb[139].mxu1  ;;  %v9404_v38 = vpop.eup %6836  ;;  %6856 = vpow2.f32 %v4178_v59  ;;  %v4209_v40 = vsub.f32 %v11197_v49, %v9358_v13  ;;  %v4257_v55 = vsub.f32 %v11137_v61, %v9358_v13  ;;  %v4305_v28 = vsub.f32 %v9209_v46, %v9358_v13  ;;  %v6829_v61 = vld [vmem:[%s10513_s5 + $0x38] sm:$0xff]  }
 0x48f   : > { %11195 = vst [vmem:[#allocation100_spill] sm:$0xff] %v9402_v63  ;;  %11196 = vst [vmem:[#allocation123_spill] sm:$0xff] %v9404_v38  ;;  %v9412_v57 = vpop.f32.mrb[154].mxu0  ;;  %v9414_v43 = vpop.eup %6838  ;;  %v4413_v26 = vadd.f32 %v9392_v10, %v4397_v29  ;;  %6858 = vpow2.f32 %v4226_v32  ;;  %v9417_v63 = vmul.f32 1.442695, %v4113_v27  ;;  %v4353_v27 = vsub.f32 %v9351_v48, %v9358_v13  ;;  %6497 = vmatprep.subr.bf16.mxu1 %v6829_v61 }
 0x490   : > { %11198 = vst [vmem:[#allocation29_spill] sm:$0xff] %v9414_v43  ;;  %v9419_v23 = vmul.f32 1.442695, %v4161_v11  ;;  %v9421_v59 = vpop.f32.mrb[155].mxu0  ;;  %v9426_v49 = vpop.eup %6840  ;;  %6860 = vpow2.f32 %v4274_v42  ;;  %v9428_v46 = vmul.f32 1.442695, %v4209_v40  ;;  %v4096_v11 = vmax.f32 %v9223_v56, %v9360_v19  ;;  %6498 = vmatpush3.bf16.msra.mxu1 %v6829_v61 }
 0x491   : > { %11199 = vst [vmem:[#allocation125_spill] sm:$0xff] %v9426_v49  ;;  %v9430_v9 = vmul.f32 1.442695, %v4257_v55  ;;  %v9432_v47 = vmul.f32 1.442695, %v4305_v28  ;;  %v9434_v32 = vpop.eup %6842  ;;  %v4429_v29 = vadd.f32 %v9404_v38, %v4413_v26  ;;  %6862 = vpow2.f32 %v4322_v58  ;;  %v11203_v26 = vld [vmem:[#allocation99_spill] sm:$0xff] }
 0x492   : > { %11200 = vst [vmem:[#allocation103_spill] sm:$0xff] %v9434_v32  ;;  %v9441_v10 = vpop.eup %6844  ;;  %6864 = vpow2.f32 %v4370_v53  ;;  %v9445_v42 = vmax.f32 %v9231_v37, %v9367_v2  ;;  %v9449_v40 = vmax.f32 %v9239_v0, %v9374_v3  ;;  %v9453_v58 = vmax.f32 %v9247_v30, %v9380_v5  ;;  %v9455_v48 = vpop.f32.mrb[156].mxu0  ;;  %v11202_v30 = vld [vmem:[#allocation67_spill] sm:$0xff]  ;;  %v11204_v61 = vld [vmem:[#allocation13_spill] sm:$0xff] }
 0x493   : > { %11201 = vst [vmem:[#allocation128_spill] sm:$0xff] %v9441_v10  ;;  %v9457_v56 = vpop.eup %6846  ;;  %v4445_v13 = vadd.f32 %v9414_v43, %v4429_v29  ;;  %v4396_v53 = vadd.f32 %v9441_v10, %v9434_v32  ;;  %6866 = vpow2.f32 %v4128_v54  ;;  %v9462_v37 = vmul.f32 1.442695, %v4353_v27  ;;  %v9464_v55 = vpop.f32.mrb[157].mxu0 }
 0x494   : > { %v9466_v0 = vpop.eup %6848  ;;  %6868 = vpow2.f32 %v4176_v20  ;;  %v4112_v28 = vsub.f32 %v11202_v30, %v4096_v11  ;;  %v4160_v38 = vsub.f32 %v11203_v26, %v4096_v11  ;;  %v4208_v4 = vsub.f32 %v11204_v61, %v4096_v11 }
 0x495   : > { %v9471_v8 = vpop.eup %6850  ;;  %v4461_v29 = vadd.f32 %v9426_v49, %v4445_v13  ;;  %v4412_v43 = vadd.f32 %v9457_v56, %v4396_v53  ;;  %6870 = vpow2.f32 %v4224_v21  ;;  %v4256_v54 = vsub.f32 %v11140_v22, %v4096_v11  ;;  %v9490_v22 = vpop.f32.mrb[140].mxu1 }
 0x496   : > { %v9476_v27 = vpop.eup %6852  ;;  %6872 = vpow2.f32 %v4272_v44  ;;  %v4132_v10 = vmul.f32 1.442695, %v4112_v28  ;;  %v9478_v20 = vmul.f32 1.442695, %v4160_v38  ;;  %v9480_v30 = vmul.f32 1.442695, %v4208_v4 }
 0x497   : > { %v9482_v26 = vpop.eup %6854  ;;  %6874 = vrcp.f32 %v4461_v29  ;;  %v4428_v61 = vadd.f32 %v9466_v0, %v4412_v43  ;;  %v9485_v32 = vmul.f32 1.442695, %v4256_v54  ;;  %v4304_v13 = vsub.f32 %v9217_v51, %v4096_v11  ;;  %v9488_v21 = vpop.f32.mrb[158].mxu0  ;;  %11206 = vst [vmem:[#allocation62_spill] sm:$0xff] %v9490_v22  ;;  %v11208_v44 = vld [vmem:[#allocation68_spill] sm:$0xff]  ;;  %v11209_v28 = vld [vmem:[#allocation101_spill] sm:$0xff] }
 0x498   : > { %11205 = vst [vmem:[#allocation28_spill] sm:$0xff] %v9482_v26  ;;  %v9492_v53 = vpop.eup %6856  ;;  %6876 = vpow2.f32 %v9388_v18  ;;  %v4352_v4 = vsub.f32 %v9360_v19, %v4096_v11  ;;  %v4115_v38 = vsub.f32 %v11208_v44, %v9445_v42  ;;  %v4163_v43 = vsub.f32 %v11209_v28, %v9445_v42  ;;  %v9500_v29 = vpop.f32.mrb[159].mxu0 }
 0x499   : > { %11207 = vst [vmem:[#allocation94_spill] sm:$0xff] %v9492_v53  ;;  %v9502_v54 = vpop.f32.mrb[141].mxu1  ;;  %v9504_v51 = vpop.eup %6858  ;;  %v4444_v22 = vadd.f32 %v9471_v8, %v4428_v61  ;;  %v4399_v49 = vadd.f32 %v9492_v53, %v9482_v26  ;;  %6878 = vpow2.f32 %v9390_v14  ;;  %v9510_v19 = vmul.f32 1.442695, %v4304_v13  ;;  %v11215_v13 = vld [vmem:[#allocation21_spill] sm:$0xff] }
 0x49a   : > { %11210 = vst [vmem:[#allocation52_spill] sm:$0xff] %v9502_v54  ;;  %11211 = vst [vmem:[#allocation63_spill] sm:$0xff] %v9504_v51  ;;  %v9512_v18 = vpop.f32.mrb[142].mxu1  ;;  %v9514_v11 = vpop.eup %6860  ;;  %6880 = vpow2.f32 %v9417_v63  ;;  %v9517_v44 = vmul.f32 1.442695, %v4352_v4  ;;  %v4259_v4 = vsub.f32 %v11143_v60, %v9445_v42 }
 0x49b   : > { %11212 = vst [vmem:[#allocation95_spill] sm:$0xff] %v9512_v18  ;;  %11213 = vst [vmem:[#allocation61_spill] sm:$0xff] %v9514_v11  ;;  %v9519_v28 = vmul.f32 1.442695, %v4115_v38  ;;  %v9521_v54 = vmul.f32 1.442695, %v4163_v43  ;;  %v9523_v61 = vpop.eup %6862  ;;  %v4460_v53 = vadd.f32 %v9476_v27, %v4444_v22  ;;  %v4415_v14 = vadd.f32 %v9504_v51, %v4399_v49 }
 0x49c   : > { %11214 = vst [vmem:[#allocation64_spill] sm:$0xff] %v9523_v61  ;;  %6882 = vpow2.f32 %v9419_v23  ;;  %v4211_v18 = vsub.f32 %v11215_v13, %v9445_v42  ;;  %v9530_v26 = vpop.f32.mrb[143].mxu1  ;;  %v9532_v63 = vpop.eup %6864  ;;  %v4307_v38 = vsub.f32 %v9225_v33, %v9445_v42  ;;  %v4355_v49 = vsub.f32 %v9367_v2, %v9445_v42  ;;  %v11218_v13 = vld [vmem:[#allocation69_spill] sm:$0xff] }
 0x49d   : > { %11216 = vst [vmem:[#allocation96_spill] sm:$0xff] %v9530_v26  ;;  %11217 = vst [vmem:[#allocation54_spill] sm:$0xff] %v9532_v63  ;;  %6884 = vpow2.f32 %v9428_v46  ;;  %v9541_v22 = vpop.eup %6866  ;;  %v4431_v23 = vadd.f32 %v9514_v11, %v4415_v14  ;;  %v4114_v26 = vsub.f32 %v11218_v13, %v9449_v40  ;;  %v9551_v60 = vmul.f32 1.442695, %v4259_v4 }
 0x49e   : > { %6886 = vrcp.f32 %v4460_v53  ;;  %v9544_v43 = vmul.f32 1.442695, %v4211_v18  ;;  %v9548_v46 = vpop.eup %6868  ;;  %v9553_v33 = vmul.f32 1.442695, %v4307_v38  ;;  %v9555_v51 = vmul.f32 1.442695, %v4355_v49 }
 0x49f   : > { %6888 = vpow2.f32 %v9430_v9  ;;  %v9557_v2 = vpop.eup %6870  ;;  %v4447_v42 = vadd.f32 %v9523_v61, %v4431_v23  ;;  %v4398_v53 = vadd.f32 %v9548_v46, %v9541_v22  ;;  %v9563_v18 = vmul.f32 1.442695, %v4114_v26  ;;  %v11219_v9 = vld [vmem:[#allocation102_spill] sm:$0xff]  ;;  %v11220_v38 = vld [vmem:[#allocation120_spill] sm:$0xff] }
 0x4a0   : > { %6890 = vpow2.f32 %v9432_v47  ;;  %v9565_v14 = vpop.eup %6872  ;;  %v4162_v4 = vsub.f32 %v11219_v9, %v9449_v40  ;;  %v4210_v49 = vsub.f32 %v11220_v38, %v9449_v40  ;;  %v4258_v23 = vsub.f32 %v11146_v17, %v9449_v40 }
 0x4a1   : > { %6892 = vpow2.f32 %v9462_v37  ;;  %v9574_v13 = vpop.eup %6874  ;;  %v4463_v61 = vadd.f32 %v9532_v63, %v4447_v42  ;;  %v4414_v47 = vadd.f32 %v9557_v2, %v4398_v53  ;;  %v4306_v26 = vsub.f32 %v9233_v1, %v9449_v40 }
 0x4a2   : > { %11221 = vst [vmem:[#allocation65_spill] sm:$0xff] %v9574_v13  ;;  %6894 = vpow2.f32 %v4132_v10  ;;  %v9580_v37 = vpop.eup %6876  ;;  %v9583_v9 = vmul.f32 1.442695, %v4162_v4  ;;  %v9585_v38 = vmul.f32 1.442695, %v4210_v49  ;;  %v4354_v1 = vsub.f32 %v9374_v3, %v9449_v40  ;;  %v11224_v49 = vld [vmem:[#allocation104_spill] sm:$0xff] }
 0x4a3   : > { %6896 = vpow2.f32 %v9478_v20  ;;  %v9587_v11 = vmul.f32 1.442695, %v4258_v23  ;;  %v9589_v17 = vpop.eup %6878  ;;  %v4430_v42 = vadd.f32 %v9565_v14, %v4414_v47  ;;  %v9592_v53 = vmul.f32 1.442695, %v4306_v26  ;;  %v11223_v20 = vld [vmem:[#allocation70_spill] sm:$0xff] }
 0x4a4   : > { %6898 = vrcp.f32 %v4463_v61  ;;  %v9596_v10 = vpop.eup %6880  ;;  %v4117_v4 = vsub.f32 %v11223_v20, %v9453_v58  ;;  %v4165_v23 = vsub.f32 %v11224_v49, %v9453_v58  ;;  %v11225_v13 = vld [vmem:[#allocation122_spill] sm:$0xff]  ;;  %v9609_v3 = vmul.f32 1.442695, %v4354_v1 }
 0x4a5   : > { %11222 = vst [vmem:[#allocation97_spill] sm:$0xff] %v9596_v10  ;;  %6900 = vpow2.f32 %v9480_v30  ;;  %v4213_v61 = vsub.f32 %v11225_v13, %v9453_v58  ;;  %v4446_v47 = vadd.f32 %v9580_v37, %v4430_v42  ;;  %v4261_v40 = vsub.f32 %v11149_v25, %v9453_v58 }
 0x4a6   : > { %v9605_v63 = vpop.eup %6882  ;;  %6902 = vpow2.f32 %v9485_v32  ;;  %v9618_v20 = vmul.f32 1.442695, %v4117_v4  ;;  %v9620_v13 = vmul.f32 1.442695, %v4165_v23  ;;  %v4357_v4 = vsub.f32 %v9380_v5, %v9453_v58 }
 0x4a7   : > { %11226 = vst [vmem:[#allocation8_spill] sm:$0xff] %v9605_v63  ;;  %v9613_v30 = vpop.eup %6884  ;;  %v4401_v26 = vadd.f32 %v9605_v63, %v9596_v10  ;;  %6904 = vpow2.f32 %v9510_v19  ;;  %v4462_v32 = vadd.f32 %v9589_v17, %v4446_v47  ;;  %v9626_v42 = vmul.f32 1.442695, %v4213_v61 }
 0x4a8   : > { %11227 = vst [vmem:[#allocation66_spill] sm:$0xff] %v9613_v30  ;;  %v9622_v49 = vpop.eup %6886  ;;  %6906 = vpow2.f32 %v9517_v44  ;;  %v9628_v25 = vmul.f32 1.442695, %v4261_v40  ;;  %v4309_v19 = vsub.f32 %v9241_v6, %v9453_v58  ;;  %v4100_v44 = vmax.f32 %v9255_v45, %v9400_v62  ;;  %v11231_v45 = vld [vmem:[#allocation71_spill] sm:$0xff] }
 0x4a9   : > { %v9630_v1 = vpop.eup %6888  ;;  %v4417_v63 = vadd.f32 %v9613_v30, %v4401_v26  ;;  %6908 = vpow2.f32 %v9519_v28  ;;  %v9644_v61 = vmax.f32 %v9263_v12, %v9412_v57  ;;  %v9648_v47 = vmax.f32 %v9271_v31, %v9421_v59  ;;  %v11232_v26 = vld [vmem:[#allocation105_spill] sm:$0xff]  ;;  %v11233_v31 = vld [vmem:[#allocation124_spill] sm:$0xff] }
 0x4aa   : > { %11228 = vst [vmem:[#allocation98_spill] sm:$0xff] %v9630_v1  ;;  %v9638_v23 = vpop.eup %6890  ;;  %6910 = vrcp.f32 %v4462_v32  ;;  %v9654_v5 = vmul.f32 1.442695, %v4309_v19  ;;  %v9656_v58 = vmul.f32 1.442695, %v4357_v4  ;;  %v4116_v12 = vsub.f32 %v11231_v45, %v4100_v44 }
 0x4ab   : > { %11229 = vst [vmem:[#allocation11_spill] sm:$0xff] %v9638_v23  ;;  %v9650_v28 = vpop.eup %6892  ;;  %v4433_v6 = vadd.f32 %v9630_v1, %v4417_v63  ;;  %6912 = vpow2.f32 %v9521_v54  ;;  %v4164_v32 = vsub.f32 %v11232_v26, %v4100_v44  ;;  %v4212_v30 = vsub.f32 %v11233_v31, %v4100_v44 }
 0x4ac   : > { %11230 = vst [vmem:[#allocation67_spill] sm:$0xff] %v9650_v28  ;;  %v9658_v40 = vpop.eup %6894  ;;  %6914 = vpow2.f32 %v9544_v43  ;;  %v4260_v54 = vsub.f32 %v11152_v34, %v4100_v44  ;;  %v4308_v19 = vsub.f32 %v9249_v15, %v4100_v44  ;;  %v9675_v45 = vmul.f32 1.442695, %v4116_v12 }
 0x4ad   : > { %v9664_v10 = vpop.eup %6896  ;;  %v4449_v63 = vadd.f32 %v9638_v23, %v4433_v6  ;;  %6916 = vpow2.f32 %v9551_v60  ;;  %v9677_v26 = vmul.f32 1.442695, %v4164_v32  ;;  %v9683_v34 = vmul.f32 1.442695, %v4212_v30  ;;  %v11239_v30 = vld [vmem:[#allocation107_spill] sm:$0xff] }
 0x4ae   : > { %11234 = vst [vmem:[#allocation99_spill] sm:$0xff] %v9664_v10  ;;  %v9670_v4 = vpop.eup %6898  ;;  %v4400_v43 = vadd.f32 %v9664_v10, %v9658_v40  ;;  %6918 = vpow2.f32 %v9553_v33  ;;  %v9685_v15 = vmul.f32 1.442695, %v4260_v54  ;;  %v9691_v33 = vmul.f32 1.442695, %v4308_v19 }
 0x4af   : > { %v9679_v31 = vpop.eup %6900  ;;  %v4465_v6 = vadd.f32 %v9650_v28, %v4449_v63  ;;  %6920 = vpow2.f32 %v9555_v51  ;;  %v4356_v12 = vsub.f32 %v9400_v62, %v4100_v44  ;;  %v11238_v63 = vld [vmem:[#allocation72_spill] sm:$0xff]  ;;  %v4167_v54 = vsub.f32 %v11239_v30, %v9644_v61  ;;  %v11240_v28 = vld [vmem:[#allocation126_spill] sm:$0xff] }
 0x4b0   : > { %11235 = vst [vmem:[#allocation13_spill] sm:$0xff] %v9679_v31  ;;  %v9687_v60 = vpop.eup %6902  ;;  %v4416_v23 = vadd.f32 %v9679_v31, %v4400_v43  ;;  %6922 = vpow2.f32 %v9563_v18  ;;  %v4119_v51 = vsub.f32 %v11238_v63, %v9644_v61  ;;  %v4215_v1 = vsub.f32 %v11240_v28, %v9644_v61  ;;  %v11245_v30 = vld [vmem:[#allocation108_spill] sm:$0xff] }
 0x4b1   : > { %11236 = vst [vmem:[#allocation68_spill] sm:$0xff] %v9687_v60  ;;  %v9694_v32 = vpop.eup %6904  ;;  %6924 = vrcp.f32 %v4465_v6  ;;  %v9706_v19 = vmul.f32 1.442695, %v4356_v12  ;;  %v4263_v62 = vsub.f32 %v9061_v50, %v9644_v61  ;;  %v9715_v6 = vmul.f32 1.442695, %v4167_v54 }
 0x4b2   : > { %11237 = vst [vmem:[#allocation101_spill] sm:$0xff] %v9694_v32  ;;  %v9702_v10 = vpop.eup %6906  ;;  %v4432_v18 = vadd.f32 %v9687_v60, %v4416_v23  ;;  %6926 = vpow2.f32 %v9583_v9  ;;  %v9713_v43 = vmul.f32 1.442695, %v4119_v51  ;;  %v9717_v28 = vmul.f32 1.442695, %v4215_v1  ;;  %v11244_v1 = vld [vmem:[#allocation73_spill] sm:$0xff] }
 0x4b3   : > { %11241 = vst [vmem:[#allocation21_spill] sm:$0xff] %v9702_v10  ;;  %v9710_v44 = vpop.eup %6908  ;;  %6928 = vpow2.f32 %v9585_v38  ;;  %v9723_v9 = vmul.f32 1.442695, %v4263_v62  ;;  %v4311_v50 = vsub.f32 %v9257_v39, %v9644_v61  ;;  %v4359_v38 = vsub.f32 %v9412_v57, %v9644_v61  ;;  %v11270_v60 = vld [vmem:[#allocation131_spill] sm:$0xff] }
 0x4b4   : > { %11242 = vst [vmem:[#allocation69_spill] sm:$0xff] %v9710_v44  ;;  %v9719_v63 = vpop.eup %6910  ;;  %v4448_v23 = vadd.f32 %v9694_v32, %v4432_v18  ;;  %6930 = vpow2.f32 %v9587_v11  ;;  %v4118_v51 = vsub.f32 %v11244_v1, %v9648_v47  ;;  %v4166_v54 = vsub.f32 %v11245_v30, %v9648_v47 }
 0x4b5   : > { %v9727_v12 = vpop.eup %6912  ;;  %6932 = vpow2.f32 %v9592_v53  ;;  %v9742_v62 = vmul.f32 1.442695, %v4311_v50  ;;  %v9747_v57 = vmul.f32 1.442695, %v4359_v38  ;;  %v4262_v50 = vsub.f32 %v11156_v16, %v9648_v47 }
 0x4b6   : > { %11243 = vst [vmem:[#allocation102_spill] sm:$0xff] %v9727_v12  ;;  %v9736_v18 = vpop.eup %6914  ;;  %v4464_v11 = vadd.f32 %v9702_v10, %v4448_v23  ;;  %v4403_v39 = vadd.f32 %v9727_v12, %v9710_v44  ;;  %6934 = vpow2.f32 %v9609_v3  ;;  %v9749_v61 = vmul.f32 1.442695, %v4118_v51  ;;  %v11249_v12 = vld [vmem:[#allocation127_spill] sm:$0xff] }
 0x4b7   : > { %11246 = vst [vmem:[#allocation120_spill] sm:$0xff] %v9736_v18  ;;  %v9744_v53 = vpop.eup %6916  ;;  %6936 = vpow2.f32 %v9618_v20  ;;  %v9751_v1 = vmul.f32 1.442695, %v4166_v54  ;;  %v4214_v3 = vsub.f32 %v11249_v12, %v9648_v47  ;;  %v4310_v20 = vsub.f32 %v9265_v24, %v9648_v47 }
 0x4b8   : > { %11247 = vst [vmem:[#allocation70_spill] sm:$0xff] %v9744_v53  ;;  %v9753_v30 = vpop.eup %6918  ;;  %6938 = vrcp.f32 %v4464_v11  ;;  %v4419_v23 = vadd.f32 %v9736_v18, %v4403_v39  ;;  %v4358_v38 = vsub.f32 %v9421_v59, %v9648_v47  ;;  %v4105_v51 = vmax.f32 %v9279_v35, %v9455_v48  ;;  %v11252_v47 = vld [vmem:[#allocation74_spill] sm:$0xff] }
 0x4b9   : > { %11248 = vst [vmem:[#allocation104_spill] sm:$0xff] %v9753_v30  ;;  %v9760_v44 = vpop.eup %6920  ;;  %6940 = vpow2.f32 %v9620_v13  ;;  %v9773_v16 = vmul.f32 1.442695, %v4214_v3  ;;  %v9775_v11 = vmul.f32 1.442695, %v4262_v50  ;;  %v11254_v50 = vld [vmem:[#allocation129_spill] sm:$0xff] }
 0x4ba   : > { %11250 = vst [vmem:[#allocation122_spill] sm:$0xff] %v9760_v44  ;;  %v9769_v54 = vpop.eup %6922  ;;  %v4435_v12 = vadd.f32 %v9744_v53, %v4419_v23  ;;  %6942 = vpow2.f32 %v9626_v42  ;;  %v9780_v24 = vmul.f32 1.442695, %v4310_v20  ;;  %v9782_v59 = vmul.f32 1.442695, %v4358_v38  ;;  %v11253_v42 = vld [vmem:[#allocation110_spill] sm:$0xff] }
 0x4bb   : > { %v9777_v13 = vpop.eup %6924  ;;  %6944 = vpow2.f32 %v9628_v25  ;;  %v4121_v35 = vsub.f32 %v11252_v47, %v4105_v51  ;;  %v4169_v3 = vsub.f32 %v11253_v42, %v4105_v51  ;;  %v4217_v53 = vsub.f32 %v11254_v50, %v4105_v51 }
 0x4bc   : > { %11251 = vst [vmem:[#allocation71_spill] sm:$0xff] %v9777_v13  ;;  %v9785_v39 = vpop.eup %6926  ;;  %v4451_v23 = vadd.f32 %v9753_v30, %v4435_v12  ;;  %6946 = vpow2.f32 %v9654_v5  ;;  %v4265_v38 = vsub.f32 %v9073_v52, %v4105_v51  ;;  %v4313_v52 = vsub.f32 %v9273_v41, %v4105_v51  ;;  %v11256_v41 = vld [vmem:[#allocation60_spill] sm:$0xff] }
 0x4bd   : > { %v9791_v18 = vpop.eup %6928  ;;  %v4402_v25 = vadd.f32 %v9785_v39, %v9769_v54  ;;  %6948 = vpow2.f32 %v9656_v58  ;;  %v9796_v20 = vmul.f32 1.442695, %v4121_v35  ;;  %v9803_v5 = vmul.f32 1.442695, %v4169_v3 }
 0x4be   : > { %v9799_v47 = vpop.eup %6930  ;;  %v4467_v12 = vadd.f32 %v9760_v44, %v4451_v23  ;;  %6950 = vpow2.f32 %v9675_v45  ;;  %v9805_v42 = vmul.f32 1.442695, %v4217_v53  ;;  %v9811_v58 = vmul.f32 1.442695, %v4265_v38 }
 0x4bf   : > { %v9807_v50 = vpop.eup %6932  ;;  %v4418_v13 = vadd.f32 %v9791_v18, %v4402_v25  ;;  %6952 = vpow2.f32 %v9677_v26  ;;  %v4361_v23 = vsub.f32 %v9455_v48, %v4105_v51  ;;  %v4104_v45 = vmax.f32 %v9287_v36, %v9464_v55 }
 0x4c0   : > { %v9814_v35 = vpop.eup %6934  ;;  %6954 = vrcp.f32 %v4467_v12  ;;  %v9821_v53 = vmax.f32 %v9295_v7, %v9488_v21  ;;  %v9827_v25 = vmul.f32 1.442695, %v4313_v52  ;;  %v9831_v38 = vmax.f32 %v11256_v41, %v9500_v29  ;;  %v11258_v7 = vld [vmem:[#allocation75_spill] sm:$0xff]  ;;  %v11262_v41 = vld [vmem:[#allocation30_spill] sm:$0xff] }
 0x4c1   : > { %v9823_v3 = vpop.eup %6936  ;;  %v4434_v26 = vadd.f32 %v9799_v47, %v4418_v13  ;;  %6956 = vpow2.f32 %v9683_v34  ;;  %v9836_v36 = vmul.f32 1.442695, %v4361_v23  ;;  %v4120_v51 = vsub.f32 %v11258_v7, %v4104_v45  ;;  %v11259_v12 = vld [vmem:[#allocation111_spill] sm:$0xff]  ;;  %v11261_v13 = vld [vmem:[#allocation130_spill] sm:$0xff] }
 0x4c2   : > { %11255 = vst [vmem:[#allocation105_spill] sm:$0xff] %v9823_v3  ;;  %v9833_v48 = vpop.eup %6938  ;;  %6958 = vpow2.f32 %v9685_v15  ;;  %v4168_v44 = vsub.f32 %v11259_v12, %v4104_v45  ;;  %v4216_v52 = vsub.f32 %v11261_v13, %v4104_v45  ;;  %v4264_v10 = vsub.f32 %v11262_v41, %v4104_v45 }
 0x4c3   : > { %11257 = vst [vmem:[#allocation124_spill] sm:$0xff] %v9833_v48  ;;  %v9840_v30 = vpop.eup %6940  ;;  %v4450_v34 = vadd.f32 %v9807_v50, %v4434_v26  ;;  %6960 = vpow2.f32 %v9691_v33  ;;  %v9851_v23 = vmul.f32 1.442695, %v4120_v51  ;;  %v4219_v31 = vsub.f32 %v11270_v60, %v9821_v53 }
 0x4c4   : > { %11260 = vst [vmem:[#allocation72_spill] sm:$0xff] %v9840_v30  ;;  %v9846_v32 = vpop.eup %6942  ;;  %v4405_v15 = vadd.f32 %v9840_v30, %v9823_v3  ;;  %6962 = vpow2.f32 %v9706_v19  ;;  %v9853_v7 = vmul.f32 1.442695, %v4168_v44  ;;  %v9859_v33 = vmul.f32 1.442695, %v4216_v52  ;;  %v11266_v19 = vld [vmem:[#allocation10_spill] sm:$0xff] }
 0x4c5   : > { %11263 = vst [vmem:[#allocation107_spill] sm:$0xff] %v9846_v32  ;;  %v9855_v12 = vpop.eup %6944  ;;  %v4466_v26 = vadd.f32 %v9814_v35, %v4450_v34  ;;  %6964 = vpow2.f32 %v9713_v43  ;;  %v9861_v13 = vmul.f32 1.442695, %v4264_v10  ;;  %v4312_v51 = vsub.f32 %v11266_v19, %v4104_v45  ;;  %v11268_v34 = vld [vmem:[#allocation76_spill] sm:$0xff]  ;;  %v11269_v52 = vld [vmem:[#allocation34_spill] sm:$0xff] }
 0x4c6   : > { %11264 = vst [vmem:[#allocation126_spill] sm:$0xff] %v9855_v12  ;;  %v9863_v41 = vpop.eup %6946  ;;  %v4421_v30 = vadd.f32 %v9846_v32, %v4405_v15  ;;  %6966 = vpow2.f32 %v9715_v6  ;;  %v4360_v44 = vsub.f32 %v9464_v55, %v4104_v45  ;;  %v4123_v43 = vsub.f32 %v11268_v34, %v9821_v53 }
 0x4c7   : > { %11265 = vst [vmem:[#allocation73_spill] sm:$0xff] %v9863_v41  ;;  %v9869_v3 = vpop.eup %6948  ;;  %6968 = vrcp.f32 %v4466_v26  ;;  %v4171_v10 = vsub.f32 %v11269_v52, %v9821_v53  ;;  %v9881_v15 = vmul.f32 1.442695, %v4312_v51  ;;  %v9892_v34 = vmul.f32 1.442695, %v4219_v31  ;;  %v11271_v51 = vld [vmem:[#allocation106_spill] sm:$0xff] }
 0x4c8   : > { %11267 = vst [vmem:[#allocation108_spill] sm:$0xff] %v9869_v3  ;;  %v9877_v48 = vpop.eup %6950  ;;  %v4437_v6 = vadd.f32 %v9855_v12, %v4421_v30  ;;  %6970 = vpow2.f32 %v9717_v28  ;;  %v9883_v55 = vmul.f32 1.442695, %v4360_v44  ;;  %v9888_v26 = vmul.f32 1.442695, %v4123_v43 }
 0x4c9   : > { %v9885_v45 = vpop.eup %6952  ;;  %6972 = vpow2.f32 %v9723_v9  ;;  %v9890_v19 = vmul.f32 1.442695, %v4171_v10  ;;  %v4267_v44 = vsub.f32 %v11271_v51, %v9821_v53  ;;  %v11272_v9 = vld [vmem:[#allocation23_spill] sm:$0xff]  ;;  %v4363_v43 = vsub.f32 %v9488_v21, %v9821_v53  ;;  %v11273_v10 = vld [vmem:[#allocation77_spill] sm:$0xff] }
 0x4ca   : > { %v9894_v60 = vpop.eup %6954  ;;  %v4453_v30 = vadd.f32 %v9863_v41, %v4437_v6  ;;  %v4404_v28 = vadd.f32 %v9885_v45, %v9877_v48  ;;  %6974 = vpow2.f32 %v9742_v62  ;;  %v4315_v31 = vsub.f32 %v11272_v9, %v9821_v53 }
 0x4cb   : > { %v9902_v52 = vpop.eup %6956  ;;  %6976 = vpow2.f32 %v9747_v57  ;;  %v4122_v6 = vsub.f32 %v11273_v10, %v9831_v38  ;;  %v9916_v51 = vmul.f32 1.442695, %v4267_v44  ;;  %v9923_v21 = vmul.f32 1.442695, %v4363_v43  ;;  %v11278_v44 = vld [vmem:[#allocation132_spill] sm:$0xff]  ;;  %v11281_v43 = vld [vmem:[#allocation27_spill] sm:$0xff] }
 0x4cc   : > { %v9911_v41 = vpop.eup %6958  ;;  %v4469_v62 = vadd.f32 %v9869_v3, %v4453_v30  ;;  %v4420_v12 = vadd.f32 %v9902_v52, %v4404_v28  ;;  %6978 = vpow2.f32 %v9749_v61  ;;  %v9921_v9 = vmul.f32 1.442695, %v4315_v31  ;;  %v11277_v28 = vld [vmem:[#allocation112_spill] sm:$0xff] }
 0x4cd   : > { %11274 = vst [vmem:[#allocation127_spill] sm:$0xff] %v9911_v41  ;;  %v9918_v57 = vpop.eup %6960  ;;  %6980 = vpow2.f32 %v9751_v1  ;;  %v9925_v53 = vmul.f32 1.442695, %v4122_v6  ;;  %v4170_v61 = vsub.f32 %v11277_v28, %v9831_v38  ;;  %v4218_v3 = vsub.f32 %v11278_v44, %v9831_v38  ;;  %v11280_v1 = vld [vmem:[#allocation31_spill] sm:$0xff] }
 0x4ce   : > { %11275 = vst [vmem:[#allocation74_spill] sm:$0xff] %v9918_v57  ;;  %v9927_v10 = vpop.eup %6962  ;;  %6982 = vrcp.f32 %v4469_v62  ;;  %v4436_v30 = vadd.f32 %v9911_v41, %v4420_v12  ;;  %v4266_v31 = vsub.f32 %v11280_v1, %v9831_v38  ;;  %v4314_v6 = vsub.f32 %v11281_v43, %v9831_v38 }
 0x4cf   : > { %11276 = vst [vmem:[#allocation110_spill] sm:$0xff] %v9927_v10  ;;  %v9934_v32 = vpop.eup %6964  ;;  %6984 = vpow2.f32 %v9773_v16  ;;  %v4362_v62 = vsub.f32 %v9500_v29, %v9831_v38  ;;  %v9947_v44 = vmul.f32 1.442695, %v4170_v61  ;;  %v9949_v41 = vmul.f32 1.442695, %v4218_v3 }
 0x4d0   : > { %11279 = vst [vmem:[#allocation129_spill] sm:$0xff] %v9934_v32  ;;  %v9943_v12 = vpop.eup %6966  ;;  %v4452_v28 = vadd.f32 %v9918_v57, %v4436_v30  ;;  %6986 = vpow2.f32 %v9775_v11  ;;  %v9956_v43 = vmul.f32 1.442695, %v4266_v31  ;;  %v9958_v29 = vmul.f32 1.442695, %v4314_v6 }
 0x4d1   : > { %11282 = vst [vmem:[#allocation60_spill] sm:$0xff] %v9943_v12  ;;  %v9951_v16 = vpop.eup %6968  ;;  %v4407_v1 = vadd.f32 %v9943_v12, %v9934_v32  ;;  %6988 = vpow2.f32 %v9780_v24  ;;  %v9964_v11 = vmul.f32 1.442695, %v4362_v62  ;;  %v4494_v3 = vmul.f32 %v9719_v63, %v9541_v22 }
 0x4d2   : > { %v9960_v38 = vpop.eup %6970  ;;  %v4468_v30 = vadd.f32 %v9927_v10, %v4452_v28  ;;  %6990 = vpow2.f32 %v9782_v59  ;;  %v4526_v24 = vmul.f32 %v9719_v63, %v9548_v46  ;;  %v4574_v31 = vmul.f32 %v9719_v63, %v9557_v2  ;;  %v11284_v59 = vld [vmem:[#allocation36_spill] sm:$0xff]  ;;  %v11285_v46 = vld [vmem:[#allocation78_spill] sm:$0xff]  ;;  %v11286_v2 = vld [vmem:[#allocation113_spill] sm:$0xff] }
 0x4d3   : > { %11283 = vst [vmem:[#allocation75_spill] sm:$0xff] %v9960_v38  ;;  %v9968_v61 = vpop.eup %6972  ;;  %v4423_v12 = vadd.f32 %v9960_v38, %v4407_v1  ;;  %6992 = vpow2.f32 %v9796_v20  ;;  %v4510_v62 = vmul.f32 %v11284_v59, %v4494_v3  ;;  %v4622_v22 = vmul.f32 %v9719_v63, %v9565_v14  ;;  %v11288_v14 = vld [vmem:[#allocation33_spill] sm:$0xff] }
 0x4d4   : > { %v9976_v6 = vpop.eup %6974  ;;  %6994 = vrcp.f32 %v4468_v30  ;;  %v4670_v28 = vmul.f32 %v9719_v63, %v9580_v37  ;;  %v4542_v38 = vmul.f32 %v11285_v46, %v4526_v24  ;;  %v4590_v32 = vmul.f32 %v11286_v2, %v4574_v31  ;;  %v11287_v30 = vld [vmem:[#allocation133_spill] sm:$0xff]  ;;  %v11289_v24 = vld [vmem:[#allocation103_spill] sm:$0xff] }
 0x4d5   : > { %v9983_v1 = vpop.eup %6976  ;;  %v4439_v20 = vadd.f32 %v9968_v61, %v4423_v12  ;;  %6996 = vpow2.f32 %v9803_v5  ;;  %v4638_v3 = vmul.f32 %v11287_v30, %v4622_v22  ;;  %v4718_v37 = vmul.f32 %v9719_v63, %v9589_v17  ;;  %v11290_v22 = vld [vmem:[#allocation149_spill] sm:$0xff]  ;;  %v11291_v17 = vld [vmem:[#allocation128_spill] sm:$0xff] }
 0x4d6   : > { %v9989_v10 = vpop.eup %6978  ;;  %6998 = vpow2.f32 %v9805_v42  ;;  %v4686_v59 = vmul.f32 %v11288_v14, %v4670_v28  ;;  %v4558_v5 = vadd.f32 %v4542_v38, %v4510_v62  ;;  %v4492_v31 = vmul.f32 %v9622_v49, %v11289_v24  ;;  %v11292_v62 = vld [vmem:[#allocation37_spill] sm:$0xff] }
 0x4d7   : > { %v9996_v57 = vpop.eup %6980  ;;  %v4455_v12 = vadd.f32 %v9976_v6, %v4439_v20  ;;  %7000 = vpow2.f32 %v9811_v58  ;;  %v4734_v28 = vmul.f32 %v11290_v22, %v4718_v37  ;;  %v4524_v63 = vmul.f32 %v9622_v49, %v11291_v17 }
 0x4d8   : > { %v10002_v46 = vpop.eup %6982  ;;  %v4406_v42 = vadd.f32 %v9996_v57, %v9989_v10  ;;  %7002 = vpow2.f32 %v9827_v25  ;;  %v4606_v38 = vadd.f32 %v4590_v32, %v4558_v5  ;;  %v4508_v20 = vmul.f32 %v4492_v31, %v11292_v62  ;;  %v11293_v25 = vld [vmem:[#allocation79_spill] sm:$0xff] }
 0x4d9   : > { %v10010_v2 = vpop.eup %6984  ;;  %v4471_v58 = vadd.f32 %v9983_v1, %v4455_v12  ;;  %7004 = vpow2.f32 %v9836_v36  ;;  %v4540_v37 = vmul.f32 %v4524_v63, %v11293_v25  ;;  %v4572_v24 = vmul.f32 %v9622_v49, %v9457_v56  ;;  %v11296_v63 = vld [vmem:[#allocation134_spill] sm:$0xff] }
 0x4da   : > { %v10015_v30 = vpop.eup %6986  ;;  %v4422_v14 = vadd.f32 %v10010_v2, %v4406_v42  ;;  %7006 = vpow2.f32 %v9851_v23  ;;  %v4654_v12 = vadd.f32 %v4638_v3, %v4606_v38  ;;  %v4620_v32 = vmul.f32 %v9622_v49, %v9466_v0  ;;  %v11294_v42 = vld [vmem:[#allocation114_spill] sm:$0xff]  ;;  %v11297_v0 = vld [vmem:[#allocation109_spill] sm:$0xff] }
 0x4db   : > { %v10022_v22 = vpop.eup %6988  ;;  %7008 = vrcp.f32 %v4471_v58  ;;  %v4668_v36 = vmul.f32 %v9622_v49, %v9471_v8  ;;  %v4556_v23 = vadd.f32 %v4540_v37, %v4508_v20  ;;  %v4588_v17 = vmul.f32 %v4572_v24, %v11294_v42  ;;  %v11300_v37 = vld [vmem:[#allocation94_spill] sm:$0xff] }
 0x4dc   : > { %v10028_v5 = vpop.eup %6990  ;;  %v4438_v31 = vadd.f32 %v10015_v30, %v4422_v14  ;;  %7010 = vpow2.f32 %v9853_v7  ;;  %v4702_v3 = vadd.f32 %v4686_v59, %v4654_v12  ;;  %v4636_v58 = vmul.f32 %v4620_v32, %v11296_v63  ;;  %v11299_v59 = vld [vmem:[#allocation28_spill] sm:$0xff] }
 0x4dd   : > { %v10033_v56 = vpop.eup %6992  ;;  %7012 = vpow2.f32 %v9859_v33  ;;  %v4684_v38 = vmul.f32 %v4668_v36, %v11297_v0  ;;  %v4604_v14 = vadd.f32 %v4588_v17, %v4556_v23  ;;  %v4716_v7 = vmul.f32 %v9622_v49, %v9476_v27  ;;  %v11304_v36 = vld [vmem:[#allocation38_spill] sm:$0xff]  ;;  %v11305_v23 = vld [vmem:[#allocation80_spill] sm:$0xff]  ;;  %v11307_v0 = vld [vmem:[#allocation63_spill] sm:$0xff] }
 0x4de   : > { %11295 = vst [vmem:[#allocation111_spill] sm:$0xff] %v10033_v56  ;;  %v10038_v62 = vpop.eup %6994  ;;  %v4454_v8 = vadd.f32 %v10022_v22, %v4438_v31  ;;  %7014 = vpow2.f32 %v9861_v13  ;;  %v10047_v33 = vadd.f32 %v4734_v28, %v4702_v3  ;;  %v4495_v25 = vmul.f32 %v9670_v4, %v11299_v59 }
 0x4df   : > { %v10044_v20 = vpop.eup %6996  ;;  %7016 = vpow2.f32 %v9881_v15  ;;  %v4527_v24 = vmul.f32 %v9670_v4, %v11300_v37  ;;  %v4652_v27 = vadd.f32 %v4636_v58, %v4604_v14  ;;  %v11303_v15 = vld [vmem:[#allocation53_spill] sm:$0xff] }
 0x4e0   : > { %11298 = vst [vmem:[#allocation130_spill] sm:$0xff] %v10044_v20  ;;  %v10053_v12 = vpop.eup %6998  ;;  %v4470_v13 = vadd.f32 %v10028_v5, %v4454_v8  ;;  %v4409_v32 = vadd.f32 %v10044_v20, %v10033_v56  ;;  %7018 = vpow2.f32 %v9883_v55  ;;  %v4732_v28 = vmul.f32 %v4716_v7, %v11303_v15  ;;  %v11309_v8 = vld [vmem:[#allocation61_spill] sm:$0xff]  ;;  %v11310_v7 = vld [vmem:[#allocation64_spill] sm:$0xff] }
 0x4e1   : > { %11301 = vst [vmem:[#allocation30_spill] sm:$0xff] %v10053_v12  ;;  %v10059_v49 = vpop.eup %7000  ;;  %7020 = vpow2.f32 %v9888_v26  ;;  %v4511_v31 = vmul.f32 %v11304_v36, %v4495_v25  ;;  %v4543_v42 = vmul.f32 %v11305_v23, %v4527_v24  ;;  %v4700_v63 = vadd.f32 %v4684_v38, %v4652_v27  ;;  %v11311_v24 = vld [vmem:[#allocation115_spill] sm:$0xff]  ;;  %v11313_v15 = vld [vmem:[#allocation32_spill] sm:$0xff]  ;;  %v11349_v20 = vld [vmem:[#allocation21_spill] sm:$0xff] }
 0x4e2   : > { %11302 = vst [vmem:[#allocation10_spill] sm:$0xff] %v10059_v49  ;;  %v10065_v17 = vpop.eup %7002  ;;  %7022 = vrcp.f32 %v4470_v13  ;;  %v4425_v3 = vadd.f32 %v10053_v12, %v4409_v32  ;;  %v4575_v55 = vmul.f32 %v9670_v4, %v11307_v0  ;;  %v4623_v14 = vmul.f32 %v9670_v4, %v11309_v8  ;;  %v11317_v8 = vld [vmem:[#allocation150_spill] sm:$0xff] }
 0x4e3   : > { %11306 = vst [vmem:[#allocation76_spill] sm:$0xff] %v10065_v17  ;;  %v10070_v58 = vpop.eup %7004  ;;  %7024 = vpow2.f32 %v9890_v19  ;;  %v4559_v26 = vadd.f32 %v4543_v42, %v4511_v31  ;;  %v4671_v59 = vmul.f32 %v9670_v4, %v11310_v7  ;;  %v10081_v38 = vadd.f32 %v4732_v28, %v4700_v63  ;;  %v11312_v19 = vld [vmem:[#allocation135_spill] sm:$0xff]  ;;  %v11314_v31 = vld [vmem:[#allocation54_spill] sm:$0xff]  ;;  %v11316_v63 = vld [vmem:[#allocation65_spill] sm:$0xff] }
 0x4e4   : > { %11308 = vst [vmem:[#allocation34_spill] sm:$0xff] %v10070_v58  ;;  %v10077_v25 = vpop.eup %7006  ;;  %v4441_v37 = vadd.f32 %v10059_v49, %v4425_v3  ;;  %7026 = vpow2.f32 %v9892_v34  ;;  %v4591_v13 = vmul.f32 %v11311_v24, %v4575_v55  ;;  %v4639_v27 = vmul.f32 %v11312_v19, %v4623_v14  ;;  %v11315_v28 = vld [vmem:[#allocation22_spill] sm:$0xff] }
 0x4e5   : > { %v10084_v32 = vpop.eup %7008  ;;  %7028 = vpow2.f32 %v9916_v51  ;;  %v4687_v36 = vmul.f32 %v11313_v15, %v4671_v59  ;;  %v4719_v23 = vmul.f32 %v9670_v4, %v11314_v31  ;;  %v4493_v0 = vmul.f32 %v11316_v63, %v11315_v28  ;;  %v11318_v4 = vld [vmem:[#allocation26_spill] sm:$0xff]  ;;  %v11321_v31 = vld [vmem:[#allocation121_spill] sm:$0xff] }
 0x4e6   : > { %v10091_v42 = vpop.eup %7010  ;;  %v4457_v3 = vadd.f32 %v10065_v17, %v4441_v37  ;;  %7030 = vpow2.f32 %v9921_v9  ;;  %v4607_v34 = vadd.f32 %v4591_v13, %v4559_v26  ;;  %v4525_v7 = vmul.f32 %v11316_v63, %v11318_v4  ;;  %v11319_v37 = vld [vmem:[#allocation39_spill] sm:$0xff]  ;;  %v11324_v4 = vld [vmem:[#allocation116_spill] sm:$0xff] }
 0x4e7   : > { %v10097_v55 = vpop.eup %7012  ;;  %v4408_v51 = vadd.f32 %v10091_v42, %v10077_v25  ;;  %7032 = vpow2.f32 %v9923_v21  ;;  %v4735_v14 = vmul.f32 %v11317_v8, %v4719_v23  ;;  %v4509_v24 = vmul.f32 %v4493_v0, %v11319_v37  ;;  %v11320_v21 = vld [vmem:[#allocation81_spill] sm:$0xff]  ;;  %v11322_v8 = vld [vmem:[#allocation123_spill] sm:$0xff] }
 0x4e8   : > { %v10105_v59 = vpop.eup %7014  ;;  %v4473_v9 = vadd.f32 %v10070_v58, %v4457_v3  ;;  %7034 = vpow2.f32 %v9925_v53  ;;  %v4655_v26 = vadd.f32 %v4639_v27, %v4607_v34  ;;  %v4541_v15 = vmul.f32 %v4525_v7, %v11320_v21  ;;  %v11323_v27 = vld [vmem:[#allocation29_spill] sm:$0xff]  ;;  %v11326_v21 = vld [vmem:[#allocation35_spill] sm:$0xff] }
 0x4e9   : > { %v10110_v13 = vpop.eup %7016  ;;  %v4424_v19 = vadd.f32 %v10097_v55, %v4408_v51  ;;  %7036 = vpow2.f32 %v9947_v44  ;;  %v4573_v23 = vmul.f32 %v11316_v63, %v11321_v31  ;;  %v4621_v53 = vmul.f32 %v11316_v63, %v11322_v8 }
 0x4ea   : > { %v10117_v28 = vpop.eup %7018  ;;  %7038 = vrcp.f32 %v4473_v9  ;;  %v4703_v3 = vadd.f32 %v4687_v36, %v4655_v26  ;;  %v4669_v34 = vmul.f32 %v11316_v63, %v11323_v27  ;;  %v4557_v44 = vadd.f32 %v4541_v15, %v4509_v24  ;;  %v11325_v9 = vld [vmem:[#allocation136_spill] sm:$0xff]  ;;  %v11327_v24 = vld [vmem:[#allocation125_spill] sm:$0xff] }
 0x4eb   : > { %v10123_v0 = vpop.eup %7020  ;;  %v4440_v51 = vadd.f32 %v10105_v59, %v4424_v19  ;;  %7040 = vpow2.f32 %v9949_v41  ;;  %v4589_v7 = vmul.f32 %v4573_v23, %v11324_v4  ;;  %v4637_v26 = vmul.f32 %v4621_v53, %v11325_v9  ;;  %v11332_v4 = vld [vmem:[#allocation40_spill] sm:$0xff] }
 0x4ec   : > { %v10128_v37 = vpop.eup %7022  ;;  %7042 = vpow2.f32 %v9956_v43  ;;  %v10131_v36 = vadd.f32 %v4735_v14, %v4703_v3  ;;  %v4685_v31 = vmul.f32 %v4669_v34, %v11326_v21  ;;  %v4717_v19 = vmul.f32 %v11316_v63, %v11327_v24  ;;  %v11330_v34 = vld [vmem:[#allocation55_spill] sm:$0xff] }
 0x4ed   : > { %v10135_v8 = vpop.eup %7024  ;;  %v4456_v27 = vadd.f32 %v10110_v13, %v4440_v51  ;;  %7044 = vpow2.f32 %v9958_v29  ;;  %v4605_v41 = vadd.f32 %v4589_v7, %v4557_v44  ;;  %v4498_v23 = vmul.f32 %v9951_v16, %v9769_v54 }
 0x4ee   : > { %v10141_v15 = vpop.eup %7026  ;;  %v4411_v43 = vadd.f32 %v10135_v8, %v10123_v0  ;;  %7046 = vpow2.f32 %v9964_v11  ;;  %v4733_v63 = vmul.f32 %v4717_v19, %v11330_v34  ;;  %v4530_v51 = vmul.f32 %v9951_v16, %v9785_v39  ;;  %v11336_v34 = vld [vmem:[#allocation137_spill] sm:$0xff] }
 0x4ef   : > { %11328 = vst [vmem:[#allocation131_spill] sm:$0xff] %v10141_v15  ;;  %v10150_v3 = vpop.eup %7028  ;;  %v4472_v29 = vadd.f32 %v10117_v28, %v4456_v27  ;;  %v4653_v53 = vadd.f32 %v4637_v26, %v4605_v41  ;;  %v4514_v7 = vmul.f32 %v11332_v4, %v4498_v23  ;;  %v4578_v9 = vmul.f32 %v9951_v16, %v9791_v18  ;;  %v11334_v27 = vld [vmem:[#allocation82_spill] sm:$0xff] }
 0x4f0   : > { %11329 = vst [vmem:[#allocation106_spill] sm:$0xff] %v10150_v3  ;;  %v10156_v44 = vpop.eup %7030  ;;  %v4427_v11 = vadd.f32 %v10141_v15, %v4411_v43  ;;  %v4626_v54 = vmul.f32 %v9951_v16, %v9799_v47  ;;  %v4546_v41 = vmul.f32 %v11334_v27, %v4530_v51  ;;  %v4674_v39 = vmul.f32 %v9951_v16, %v9807_v50  ;;  %v11335_v43 = vld [vmem:[#allocation117_spill] sm:$0xff]  ;;  %v11338_v50 = vld [vmem:[#allocation124_spill] sm:$0xff]  ;;  %v11362_v15 = vld [vmem:[#allocation122_spill] sm:$0xff] }
 0x4f1   : > { %11331 = vst [vmem:[#allocation23_spill] sm:$0xff] %v10156_v44  ;;  %v10164_v21 = vpop.eup %7032  ;;  %7048 = vrcp.f32 %v4472_v29  ;;  %v4701_v26 = vadd.f32 %v4685_v31, %v4653_v53  ;;  %v4594_v23 = vmul.f32 %v11335_v43, %v4578_v9  ;;  %v4722_v47 = vmul.f32 %v9951_v16, %v9814_v35  ;;  %v11337_v53 = vld [vmem:[#allocation153_spill] sm:$0xff]  ;;  %v11341_v35 = vld [vmem:[#allocation99_spill] sm:$0xff] }
 0x4f2   : > { %11333 = vst [vmem:[#allocation77_spill] sm:$0xff] %v10164_v21  ;;  %v10169_v24 = vpop.eup %7034  ;;  %v4443_v19 = vadd.f32 %v10150_v3, %v4427_v11  ;;  %v4642_v18 = vmul.f32 %v11336_v34, %v4626_v54  ;;  %v4562_v31 = vadd.f32 %v4546_v41, %v4514_v7  ;;  %v4690_v51 = vmul.f32 %v11337_v53, %v4674_v39  ;;  %v11340_v54 = vld [vmem:[#allocation151_spill] sm:$0xff]  ;;  %v11343_v39 = vld [vmem:[#allocation13_spill] sm:$0xff]  ;;  %v11344_v34 = vld [vmem:[#allocation68_spill] sm:$0xff] }
 0x4f3   : > { %v10176_v4 = vpop.eup %7036  ;;  %v10178_v29 = vadd.f32 %v4733_v63, %v4701_v26  ;;  %v4496_v27 = vmul.f32 %v11338_v50, %v9658_v40  ;;  %v4738_v43 = vmul.f32 %v11340_v54, %v4722_v47  ;;  %v4528_v16 = vmul.f32 %v11338_v50, %v11341_v35  ;;  %v11342_v26 = vld [vmem:[#allocation41_spill] sm:$0xff]  ;;  %v11345_v54 = vld [vmem:[#allocation83_spill] sm:$0xff] }
 0x4f4   : > { %v10183_v14 = vpop.eup %7038  ;;  %v4459_v11 = vadd.f32 %v10156_v44, %v4443_v19  ;;  %v4410_v9 = vadd.f32 %v10176_v4, %v10169_v24  ;;  %v4610_v7 = vadd.f32 %v4594_v23, %v4562_v31  ;;  %v4576_v40 = vmul.f32 %v11338_v50, %v11343_v39  ;;  %v11346_v35 = vld [vmem:[#allocation101_spill] sm:$0xff]  ;;  %v11348_v39 = vld [vmem:[#allocation138_spill] sm:$0xff] }
 0x4f5   : > { %11339 = vst [vmem:[#allocation112_spill] sm:$0xff] %v10183_v14  ;;  %v10191_v63 = vpop.eup %7040  ;;  %v4512_v41 = vmul.f32 %v4496_v27, %v11342_v26  ;;  %v4624_v53 = vmul.f32 %v11338_v50, %v11344_v34  ;;  %v4544_v17 = vmul.f32 %v4528_v16, %v11345_v54  ;;  %v4672_v49 = vmul.f32 %v11338_v50, %v11346_v35  ;;  %v11347_v27 = vld [vmem:[#allocation118_spill] sm:$0xff]  ;;  %v11351_v35 = vld [vmem:[#allocation9_spill] sm:$0xff] }
 0x4f6   : > { %v10198_v19 = vpop.eup %7042  ;;  %v4475_v58 = vadd.f32 %v10164_v21, %v4459_v11  ;;  %v4426_v47 = vadd.f32 %v10191_v63, %v4410_v9  ;;  %v4658_v31 = vadd.f32 %v4642_v18, %v4610_v7  ;;  %v4592_v26 = vmul.f32 %v4576_v40, %v11347_v27  ;;  %v11350_v16 = vld [vmem:[#allocation154_spill] sm:$0xff]  ;;  %v11352_v44 = vld [vmem:[#allocation69_spill] sm:$0xff] }
 0x4f7   : > { %v10205_v23 = vpop.eup %7044  ;;  %v4640_v12 = vmul.f32 %v4624_v53, %v11348_v39  ;;  %v4720_v34 = vmul.f32 %v11338_v50, %v11349_v20  ;;  %v4560_v9 = vadd.f32 %v4544_v17, %v4512_v41  ;;  %v4688_v54 = vmul.f32 %v4672_v49, %v11350_v16  ;;  %v11353_v7 = vld [vmem:[#allocation102_spill] sm:$0xff]  ;;  %v11354_v50 = vld [vmem:[#allocation120_spill] sm:$0xff] }
 0x4f8   : > { %v10211_v14 = vpop.eup %7046  ;;  %7050 = vrcp.f32 %v4475_v58  ;;  %v4442_v11 = vadd.f32 %v10198_v19, %v4426_v47  ;;  %v4706_v56 = vadd.f32 %v4690_v51, %v4658_v31  ;;  %v4499_v18 = vmul.f32 %v9894_v60, %v11352_v44  ;;  %v11355_v27 = vld [vmem:[#allocation70_spill] sm:$0xff]  ;;  %v11357_v31 = vld [vmem:[#allocation84_spill] sm:$0xff] }
 0x4f9   : > { %v4736_v21 = vmul.f32 %v4720_v34, %v11351_v35  ;;  %v4531_v40 = vmul.f32 %v9894_v60, %v11353_v7  ;;  %v4608_v20 = vadd.f32 %v4592_v26, %v4560_v9  ;;  %v4579_v58 = vmul.f32 %v9894_v60, %v11354_v50  ;;  %v11356_v51 = vld [vmem:[#allocation42_spill] sm:$0xff]  ;;  %v11358_v39 = vld [vmem:[#allocation104_spill] sm:$0xff]  ;;  %v11359_v9 = vld [vmem:[#allocation119_spill] sm:$0xff] }
 0x4fa   : > { %v4458_v53 = vadd.f32 %v10205_v23, %v4442_v11  ;;  %v4627_v17 = vmul.f32 %v9894_v60, %v11355_v27  ;;  %v10227_v49 = vadd.f32 %v4738_v43, %v4706_v56  ;;  %v4515_v47 = vmul.f32 %v11356_v51, %v4499_v18  ;;  %v11360_v35 = vld [vmem:[#allocation139_spill] sm:$0xff]  ;;  %v11363_v43 = vld [vmem:[#allocation97_spill] sm:$0xff] }
 0x4fb   : > { %v10225_v41 = vpop.eup %7048  ;;  %v4547_v44 = vmul.f32 %v11357_v31, %v4531_v40  ;;  %v4675_v34 = vmul.f32 %v9894_v60, %v11358_v39  ;;  %v4656_v26 = vadd.f32 %v4640_v12, %v4608_v20  ;;  %v4595_v16 = vmul.f32 %v11359_v9, %v4579_v58  ;;  %v11361_v27 = vld [vmem:[#allocation155_spill] sm:$0xff]  ;;  %v11365_v31 = vld [vmem:[#allocation8_spill] sm:$0xff] }
 0x4fc   : > { %v4474_v11 = vadd.f32 %v10211_v14, %v4458_v53  ;;  %v4643_v7 = vmul.f32 %v11360_v35, %v4627_v17  ;;  %v4723_v56 = vmul.f32 %v9894_v60, %v11362_v15  ;;  %v11364_v18 = vld [vmem:[#allocation71_spill] sm:$0xff]  ;;  %v11366_v53 = vld [vmem:[#allocation66_spill] sm:$0xff]  ;;  %v11367_v58 = vld [vmem:[#allocation152_spill] sm:$0xff] }
 0x4fd   : > { %v4563_v50 = vadd.f32 %v4547_v44, %v4515_v47  ;;  %v4691_v3 = vmul.f32 %v11361_v27, %v4675_v34  ;;  %v4497_v51 = vmul.f32 %v11364_v18, %v11363_v43  ;;  %v4704_v40 = vadd.f32 %v4688_v54, %v4656_v26  ;;  %v11368_v47 = vld [vmem:[#allocation43_spill] sm:$0xff]  ;;  %v11369_v34 = vld [vmem:[#allocation98_spill] sm:$0xff]  ;;  %v11370_v15 = vld [vmem:[#allocation85_spill] sm:$0xff] }
 0x4fe   : > { %7052 = vrcp.f32 %v4474_v11  ;;  %v4529_v39 = vmul.f32 %v11364_v18, %v11365_v31  ;;  %v4577_v12 = vmul.f32 %v11364_v18, %v11366_v53  ;;  %v4739_v17 = vmul.f32 %v11367_v58, %v4723_v56  ;;  %v11371_v11 = vld [vmem:[#allocation6_spill] sm:$0xff]  ;;  %v11372_v26 = vld [vmem:[#allocation11_spill] sm:$0xff]  ;;  %v11373_v31 = vld [vmem:[#allocation140_spill] sm:$0xff] }
 0x4ff   : > { %v4611_v20 = vadd.f32 %v4595_v16, %v4563_v50  ;;  %v4513_v44 = vmul.f32 %v4497_v51, %v11368_v47  ;;  %v4625_v9 = vmul.f32 %v11364_v18, %v11369_v34  ;;  %v10249_v60 = vadd.f32 %v4736_v21, %v4704_v40  ;;  %v11374_v16 = vld [vmem:[#allocation67_spill] sm:$0xff]  ;;  %v11375_v40 = vld [vmem:[#allocation156_spill] sm:$0xff] }
 0x500   : > { %v4545_v35 = vmul.f32 %v4529_v39, %v11370_v15  ;;  %v4593_v54 = vmul.f32 %v4577_v12, %v11371_v11  ;;  %v4673_v27 = vmul.f32 %v11364_v18, %v11372_v26  ;;  %v4721_v50 = vmul.f32 %v11364_v18, %v11374_v16  ;;  %v11377_v34 = vld [vmem:[#allocation44_spill] sm:$0xff]  ;;  %v11378_v15 = vld [vmem:[#allocation86_spill] sm:$0xff] }
 0x501   : > { %v4659_v43 = vadd.f32 %v4643_v7, %v4611_v20  ;;  %v4641_v53 = vmul.f32 %v4625_v9, %v11373_v31  ;;  %v4502_v56 = vmul.f32 %v10128_v37, %v9989_v10  ;;  %v4534_v39 = vmul.f32 %v10128_v37, %v9996_v57  ;;  %v11376_v20 = vld [vmem:[#allocation12_spill] sm:$0xff] }
 0x502   : > { %v10260_v51 = vpop.eup %7050  ;;  %v4561_v21 = vadd.f32 %v4545_v35, %v4513_v44  ;;  %v4689_v58 = vmul.f32 %v4673_v27, %v11375_v40  ;;  %v4582_v12 = vmul.f32 %v10128_v37, %v10010_v2  ;;  %v4737_v47 = vmul.f32 %v4721_v50, %v11376_v20  ;;  %v11379_v44 = vld [vmem:[#allocation7_spill] sm:$0xff]  ;;  %v11380_v27 = vld [vmem:[#allocation141_spill] sm:$0xff]  ;;  %v11386_v20 = vld [vmem:[#allocation74_spill] sm:$0xff] }
 0x503   : > { %v4707_v7 = vadd.f32 %v4691_v3, %v4659_v43  ;;  %v4518_v9 = vmul.f32 %v11377_v34, %v4502_v56  ;;  %v4630_v18 = vmul.f32 %v10128_v37, %v10015_v30  ;;  %v4550_v11 = vmul.f32 %v11378_v15, %v4534_v39  ;;  %v11382_v56 = vld [vmem:[#allocation25_spill] sm:$0xff]  ;;  %v11384_v39 = vld [vmem:[#allocation127_spill] sm:$0xff]  ;;  %v11389_v15 = vld [vmem:[#allocation110_spill] sm:$0xff] }
 0x504   : > { %v4609_v10 = vadd.f32 %v4593_v54, %v4561_v21  ;;  %v4598_v35 = vmul.f32 %v11379_v44, %v4582_v12  ;;  %v4678_v26 = vmul.f32 %v10128_v37, %v10022_v22  ;;  %v4726_v3 = vmul.f32 %v10128_v37, %v10028_v5  ;;  %v11381_v54 = vld [vmem:[#allocation157_spill] sm:$0xff] }
 0x505   : > { %v10275_v57 = vadd.f32 %v4739_v17, %v4707_v7  ;;  %v4646_v2 = vmul.f32 %v11380_v27, %v4630_v18  ;;  %v4500_v43 = vmul.f32 %v10038_v62, %v9877_v48  ;;  %v4566_v30 = vadd.f32 %v4550_v11, %v4518_v9  ;;  %v11383_v22 = vld [vmem:[#allocation45_spill] sm:$0xff]  ;;  %v11387_v9 = vld [vmem:[#allocation15_spill] sm:$0xff]  ;;  %v11388_v18 = vld [vmem:[#allocation142_spill] sm:$0xff] }
 0x506   : > { %v4657_v31 = vadd.f32 %v4641_v53, %v4609_v10  ;;  %v4694_v16 = vmul.f32 %v11381_v54, %v4678_v26  ;;  %v4532_v50 = vmul.f32 %v10038_v62, %v9885_v45  ;;  %v4742_v21 = vmul.f32 %v11382_v56, %v4726_v3  ;;  %v11385_v53 = vld [vmem:[#allocation87_spill] sm:$0xff]  ;;  %v11390_v44 = vld [vmem:[#allocation129_spill] sm:$0xff] }
 0x507   : > { %v4516_v17 = vmul.f32 %v4500_v43, %v11383_v22  ;;  %v4580_v40 = vmul.f32 %v10038_v62, %v9902_v52  ;;  %v4628_v5 = vmul.f32 %v10038_v62, %v11384_v39  ;;  %v4614_v48 = vadd.f32 %v4598_v35, %v4566_v30  ;;  %v11391_v35 = vld [vmem:[#allocation158_spill] sm:$0xff]  ;;  %v11395_v22 = vld [vmem:[#allocation75_spill] sm:$0xff] }
 0x508   : > { %v7053_v37 = vpop.eup %7052  ;;  %v4705_v12 = vadd.f32 %v4689_v58, %v4657_v31  ;;  %v4548_v7 = vmul.f32 %v4532_v50, %v11385_v53  ;;  %v4676_v34 = vmul.f32 %v10038_v62, %v11386_v20  ;;  %v4724_v11 = vmul.f32 %v10038_v62, %v11389_v15  ;;  %v11392_v43 = vld [vmem:[#allocation14_spill] sm:$0xff]  ;;  %v11394_v50 = vld [vmem:[#allocation60_spill] sm:$0xff] }
 0x509   : > { %v4596_v45 = vmul.f32 %v4580_v40, %v11387_v9  ;;  %v4644_v10 = vmul.f32 %v4628_v5, %v11388_v18  ;;  %v4503_v52 = vmul.f32 %v10084_v32, %v11390_v44  ;;  %v4662_v27 = vadd.f32 %v4646_v2, %v4614_v48  ;;  %v11393_v30 = vld [vmem:[#allocation46_spill] sm:$0xff]  ;;  %v11399_v9 = vld [vmem:[#allocation143_spill] sm:$0xff] }
 0x50a   : > { %v10300_v26 = vadd.f32 %v4737_v47, %v4705_v12  ;;  %v4564_v58 = vadd.f32 %v4548_v7, %v4516_v17  ;;  %v4692_v3 = vmul.f32 %v4676_v34, %v11391_v35  ;;  %v4740_v31 = vmul.f32 %v4724_v11, %v11392_v43  ;;  %v11396_v17 = vld [vmem:[#allocation88_spill] sm:$0xff]  ;;  %v11398_v7 = vld [vmem:[#allocation105_spill] sm:$0xff]  ;;  %v11400_v18 = vld [vmem:[#allocation159_spill] sm:$0xff] }
 0x50b   : > { %v4519_v54 = vmul.f32 %v11393_v30, %v4503_v52  ;;  %v4535_v56 = vmul.f32 %v10084_v32, %v11394_v50  ;;  %v4583_v40 = vmul.f32 %v10084_v32, %v11395_v22  ;;  %v4710_v62 = vadd.f32 %v4694_v16, %v4662_v27  ;;  %v11397_v12 = vld [vmem:[#allocation56_spill] sm:$0xff]  ;;  %v11402_v44 = vld [vmem:[#allocation47_spill] sm:$0xff]  ;;  %v11405_v43 = vld [vmem:[#allocation126_spill] sm:$0xff] }
 0x50c   : > { %v4612_v39 = vadd.f32 %v4596_v45, %v4564_v58  ;;  %v4631_v47 = vmul.f32 %v10084_v32, %v9968_v61  ;;  %v4679_v2 = vmul.f32 %v10084_v32, %v9976_v6  ;;  %v4727_v53 = vmul.f32 %v10084_v32, %v9983_v1  ;;  %v11401_v11 = vld [vmem:[#allocation24_spill] sm:$0xff]  ;;  %v11404_v1 = vld [vmem:[#allocation107_spill] sm:$0xff] }
 0x50d   : > { %v4551_v5 = vmul.f32 %v11396_v17, %v4535_v56  ;;  %v4599_v48 = vmul.f32 %v11397_v12, %v4583_v40  ;;  %v4501_v20 = vmul.f32 %v10002_v46, %v11398_v7  ;;  %v10319_v34 = vadd.f32 %v4742_v21, %v4710_v62  ;;  %v11403_v27 = vld [vmem:[#allocation72_spill] sm:$0xff]  ;;  %v11407_v56 = vld [vmem:[#allocation89_spill] sm:$0xff] }
 0x50e   : > { %v4660_v16 = vadd.f32 %v4644_v10, %v4612_v39  ;;  %v4647_v45 = vmul.f32 %v11399_v9, %v4631_v47  ;;  %v4695_v61 = vmul.f32 %v11400_v18, %v4679_v2  ;;  %v4743_v6 = vmul.f32 %v11401_v11, %v4727_v53  ;;  %v11406_v10 = vld [vmem:[#allocation73_spill] sm:$0xff]  ;;  %v11408_v22 = vld [vmem:[#allocation108_spill] sm:$0xff] }
 0x50f   : > { %v4567_v15 = vadd.f32 %v4551_v5, %v4519_v54  ;;  %v4517_v52 = vmul.f32 %v4501_v20, %v11402_v44  ;;  %v4533_v58 = vmul.f32 %v10002_v46, %v11403_v27  ;;  %v4581_v32 = vmul.f32 %v10002_v46, %v11404_v1  ;;  %v11410_v2 = vld [vmem:[#allocation144_spill] sm:$0xff]  ;;  %v11416_v27 = vld [vmem:[#allocation57_spill] sm:$0xff] }
 0x510   : > { %v4708_v35 = vadd.f32 %v4692_v3, %v4660_v16  ;;  %v4629_v21 = vmul.f32 %v10002_v46, %v11405_v43  ;;  %v4677_v30 = vmul.f32 %v10002_v46, %v11406_v10  ;;  %v4725_v40 = vmul.f32 %v10002_v46, %v11408_v22  ;;  %v11409_v3 = vld [vmem:[#allocation16_spill] sm:$0xff]  ;;  %v11420_v10 = vld [vmem:[#allocation49_spill] sm:$0xff] }
 0x511   : > { %v4615_v50 = vadd.f32 %v4599_v48, %v4567_v15  ;;  %v4549_v54 = vmul.f32 %v4533_v58, %v11407_v56  ;;  %v4764_v62 = vpack.c.bf16 %v10178_v29, %v10081_v38  ;;  %v4597_v47 = vmul.f32 %v4581_v32, %v11409_v3  ;;  %v11411_v5 = vld [vmem:[#allocation160_spill] sm:$0xff]  ;;  %v11421_v56 = vld [vmem:[#allocation91_spill] sm:$0xff]  ;;  %v11422_v22 = vld [vmem:[#allocation17_spill] sm:$0xff] }
 0x512   : > { %v10338_v39 = vadd.f32 %v4740_v31, %v4708_v35  ;;  %v4645_v17 = vmul.f32 %v4629_v21, %v11410_v2  ;;  %v4693_v12 = vmul.f32 %v4677_v30, %v11411_v5  ;;  %v11412_v20 = vld [vmem:[#allocation100_spill] sm:$0xff]  ;;  %v4506_v16 = vmul.f32 %v7053_v37, %v10169_v24  ;;  %v11418_v35 = vld [vmem:[#allocation161_spill] sm:$0xff]  ;;  %v11424_v3 = vld [vmem:[#allocation19_spill] sm:$0xff] }
 0x513   : > { %v4663_v53 = vadd.f32 %v4647_v45, %v4615_v50  ;;  %v4565_v7 = vadd.f32 %v4549_v54, %v4517_v52  ;;  %v4741_v48 = vmul.f32 %v4725_v40, %v11412_v20  ;;  %6499 = vmatprep.mubr.bf16.mxu1 %v4764_v62  ;;  %v11413_v46 = vpack.c.bf16 %v10131_v36, %v10047_v33  ;;  %v11414_v15 = vld [vmem:[#allocation48_spill] sm:$0xff]  ;;  %v11415_v52 = vld [vmem:[#allocation90_spill] sm:$0xff]  ;;  %v11417_v33 = vld [vmem:[#allocation145_spill] sm:$0xff] }
 0x514   : > { %v4538_v38 = vmul.f32 %v7053_v37, %v10176_v4  ;;  %v4586_v29 = vmul.f32 %v7053_v37, %v10191_v63  ;;  %v4634_v31 = vmul.f32 %v7053_v37, %v10198_v19  ;;  %v4682_v9 = vmul.f32 %v7053_v37, %v10205_v23  ;;  %v11419_v19 = vld [vmem:[#allocation62_spill] sm:$0xff] }
 0x515   : > { %6500 = vmatmul.mubr.bf16.vlgmr.msra.gmra.mrb[144].mxu1 %v11413_v46  ;;  %v4711_v18 = vadd.f32 %v4695_v61, %v4663_v53  ;;  %v4613_v45 = vadd.f32 %v4597_v47, %v4565_v7  ;;  %v4522_v11 = vmul.f32 %v11414_v15, %v4506_v16  ;;  %v4730_v44 = vmul.f32 %v7053_v37, %v10211_v14  ;;  %v11423_v40 = vld [vmem:[#allocation146_spill] sm:$0xff]  ;;  %v11429_v16 = vld [vmem:[#allocation23_spill] sm:$0xff] }
 0x516   : > { %v4554_v24 = vmul.f32 %v11415_v52, %v4538_v38  ;;  %v4602_v58 = vmul.f32 %v11416_v27, %v4586_v29  ;;  %v4650_v36 = vmul.f32 %v11417_v33, %v4634_v31  ;;  %v4698_v4 = vmul.f32 %v11418_v35, %v4682_v9  ;;  %v11427_v53 = vld [vmem:[#allocation50_spill] sm:$0xff]  ;;  %v11430_v38 = vld [vmem:[#allocation77_spill] sm:$0xff]  ;;  %v11431_v9 = vld [vmem:[#allocation92_spill] sm:$0xff] }
 0x517   : > { %v10358_v1 = vadd.f32 %v4743_v6, %v4711_v18  ;;  %v4661_v63 = vadd.f32 %v4645_v17, %v4613_v45  ;;  %v4746_v32 = vmul.f32 %v11419_v19, %v4730_v44  ;;  %v4504_v23 = vmul.f32 %v10225_v41, %v10077_v25  ;;  %v11428_v20 = vld [vmem:[#allocation106_spill] sm:$0xff]  ;;  %v11433_v15 = vld [vmem:[#allocation147_spill] sm:$0xff]  ;;  %v11437_v33 = vld [vmem:[#allocation112_spill] sm:$0xff] }
 0x518   : > { %v4570_v61 = vadd.f32 %v4554_v24, %v4522_v11  ;;  %v4536_v14 = vmul.f32 %v10225_v41, %v10091_v42  ;;  %v4584_v37 = vmul.f32 %v10225_v41, %v10097_v55  ;;  %v4632_v43 = vmul.f32 %v10225_v41, %v10105_v59  ;;  %v11425_v59 = vld [vmem:[#allocation52_spill] sm:$0xff]  ;;  %v11432_v45 = vld [vmem:[#allocation58_spill] sm:$0xff]  ;;  %v11434_v44 = vld [vmem:[#allocation59_spill] sm:$0xff] }
 0x519   : > { %v4709_v21 = vadd.f32 %v4693_v12, %v4661_v63  ;;  %v4520_v6 = vmul.f32 %v4504_v23, %v11420_v10  ;;  %v4680_v30 = vmul.f32 %v10225_v41, %v10110_v13  ;;  %v4728_v50 = vmul.f32 %v10225_v41, %v10117_v28  ;;  %v11426_v41 = vld [vmem:[#allocation131_spill] sm:$0xff]  ;;  %v11438_v23 = vld [vmem:[#allocation130_spill] sm:$0xff]  ;;  %v11442_v10 = vld [vmem:[#allocation76_spill] sm:$0xff] }
 0x51a   : > { %v4618_v25 = vadd.f32 %v4602_v58, %v4570_v61  ;;  %v4552_v54 = vmul.f32 %v4536_v14, %v11421_v56  ;;  %v4600_v42 = vmul.f32 %v4584_v37, %v11422_v22  ;;  %v4648_v62 = vmul.f32 %v4632_v43, %v11423_v40  ;;  %v11435_v24 = vld [vmem:[#allocation95_spill] sm:$0xff]  ;;  %v11440_v14 = vld [vmem:[#allocation30_spill] sm:$0xff]  ;;  %v11446_v40 = vld [vmem:[#allocation148_spill] sm:$0xff] }
 0x51b   : > { %v4757_v55 = vadd.f32 %v4741_v48, %v4709_v21  ;;  %v4696_v47 = vmul.f32 %v4680_v30, %v11424_v3  ;;  %v4744_v2 = vmul.f32 %v4728_v50, %v11425_v59  ;;  %v4507_v17 = vmul.f32 %v10260_v51, %v10123_v0  ;;  %v11436_v58 = vld [vmem:[#allocation111_spill] sm:$0xff]  ;;  %v11441_v43 = vld [vmem:[#allocation10_spill] sm:$0xff]  ;;  %v11447_v3 = vld [vmem:[#allocation20_spill] sm:$0xff] }
 0x51c   : > { %v4666_v5 = vadd.f32 %v4650_v36, %v4618_v25  ;;  %v4568_v13 = vadd.f32 %v4552_v54, %v4520_v6  ;;  %v4539_v28 = vmul.f32 %v10260_v51, %v10135_v8  ;;  %v4587_v12 = vmul.f32 %v10260_v51, %v11426_v41  ;;  %v11443_v25 = vld [vmem:[#allocation93_spill] sm:$0xff]  ;;  %v11444_v56 = vld [vmem:[#allocation34_spill] sm:$0xff]  ;;  %v11448_v41 = vld [vmem:[#allocation96_spill] sm:$0xff] }
 0x51d   : > { %v4523_v7 = vmul.f32 %v11427_v53, %v4507_v17  ;;  %v4635_v48 = vmul.f32 %v10260_v51, %v11428_v20  ;;  %v4683_v46 = vmul.f32 %v10260_v51, %v11429_v16  ;;  %v4731_v29 = vmul.f32 %v10260_v51, %v11430_v38  ;;  %v11445_v22 = vld [vmem:[#allocation18_spill] sm:$0xff] }
 0x51e   : > { %v4714_v0 = vadd.f32 %v4698_v4, %v4666_v5  ;;  %v4616_v31 = vadd.f32 %v4600_v42, %v4568_v13  ;;  %v4555_v18 = vmul.f32 %v11431_v9, %v4539_v28  ;;  %v4603_v8 = vmul.f32 %v11432_v45, %v4587_v12  ;;  %v11439_v4 = vld [vmem:[#allocation51_spill] sm:$0xff] }
 0x51f   : > { %v4651_v11 = vmul.f32 %v11433_v15, %v4635_v48  ;;  %v4699_v52 = vmul.f32 %v11434_v44, %v4683_v46  ;;  %v4747_v27 = vmul.f32 %v11435_v24, %v4731_v29  ;;  %v4505_v36 = vmul.f32 %v11437_v33, %v11436_v58  ;;  %v7075_v15 = vld [vmem:[%s7406_s22 + $0x30] sm:$0xff]  ;;  %v7077_v58 = vld [vmem:[%s7406_s22 + $0x38] sm:$0xff] }
 0x520   : > { %v4762_v35 = vadd.f32 %v4746_v32, %v4714_v0  ;;  %v4664_v63 = vadd.f32 %v4648_v62, %v4616_v31  ;;  %v4571_v19 = vadd.f32 %v4555_v18, %v4523_v7  ;;  %v4537_v51 = vmul.f32 %v11437_v33, %v11438_v23  ;;  %v7073_v0 = vld [vmem:[%s7406_s22 + $0x18] sm:$0xff]  ;;  %v7074_v18 = vld [vmem:[%s7406_s22 + $0x8] sm:$0xff]  ;;  %v7079_v23 = vld [vmem:[%s7406_s22 + $0x50] sm:$0xff] }
 0x521   : > { %v4521_v61 = vmul.f32 %v4505_v36, %v11439_v4  ;;  %v4585_v37 = vmul.f32 %v11437_v33, %v11440_v14  ;;  %v4633_v21 = vmul.f32 %v11437_v33, %v11441_v43  ;;  %v4681_v6 = vmul.f32 %v11437_v33, %v11442_v10  ;;  %v7081_v43 = vld [vmem:[%s7406_s22 + $0x58] sm:$0xff] }
 0x522   : > { %v4712_v30 = vadd.f32 %v4696_v47, %v4664_v63  ;;  %v4619_v50 = vadd.f32 %v4603_v8, %v4571_v19  ;;  %v4553_v32 = vmul.f32 %v4537_v51, %v11443_v25  ;;  %v4729_v54 = vmul.f32 %v11437_v33, %v11444_v56  ;;  %v7083_v25 = vld [vmem:[%s7406_s22 + $0x70] sm:$0xff] }
 0x523   : > { %v4601_v42 = vmul.f32 %v4585_v37, %v11445_v22  ;;  %v4649_v62 = vmul.f32 %v4633_v21, %v11446_v40  ;;  %v4697_v59 = vmul.f32 %v4681_v6, %v11447_v3  ;;  %v4766_v17 = vpack.c.bf16 %v10300_v26, %v10249_v60  ;;  %v7082_v6 = vld [vmem:[%s7406_s22 + $0x48] sm:$0xff]  ;;  %v7085_v40 = vld [vmem:[%s7406_s22 + $0x78] sm:$0xff] }
 0x524   : > { %v4760_v5 = vadd.f32 %v4744_v2, %v4712_v30  ;;  %v4667_v13 = vadd.f32 %v4651_v11, %v4619_v50  ;;  %v4569_v28 = vadd.f32 %v4553_v32, %v4521_v61  ;;  %v4745_v47 = vmul.f32 %v4729_v54, %v11448_v41  ;;  %v7080_v61 = vld [vmem:[%s7406_s22 + $0x40] sm:$0xff] }
 0x525   : > { %6503 = vmatprep.mubr.bf16.mxu1 %v4766_v17  ;;  %v4767_v12 = vpack.c.bf16 %v10275_v57, %v10227_v49  ;;  %v4768_v53 = vpack.c.bf16 %v4757_v55, %v10338_v39  ;;  %v4769_v7 = vpack.c.bf16 %v10358_v1, %v10319_v34  ;;  %v7071_v57 = vld [vmem:[%s7406_s22 + $0x10] sm:$0xff]  ;;  %v7072_v1 = vld [vmem:[%s7406_s22] sm:$0xff] }
 0x526   : > { %v4715_v20 = vadd.f32 %v4699_v52, %v4667_v13  ;;  %v4617_v48 = vadd.f32 %v4601_v42, %v4569_v28  ;;  %v7076_v52 = vld [vmem:[%s7406_s22 + $0x20] sm:$0xff] }
 0x527   : > { %6504 = vmatmul.mubr.bf16.gmra.mrb[148].mxu1 %v4767_v12  ;;  %v7084_v54 = vld [vmem:[%s7406_s22 + $0x60] sm:$0xff] }
 0x528   : > { %v4763_v60 = vadd.f32 %v4747_v27, %v4715_v20  ;;  %v4665_v26 = vadd.f32 %v4649_v62, %v4617_v48  ;;  %6507 = vmatprep.mubr.bf16.mxu1 %v4768_v53 }
 0x52a   : > { %v4713_v2 = vadd.f32 %v4697_v59, %v4665_v26  ;;  %v4771_v16 = vpack.c.bf16 %v4763_v60, %v4762_v35  ;;  %v7078_v35 = vld [vmem:[%s7406_s22 + $0x28] sm:$0xff] }
 0x52b   : > { %v7086_v59 = vld [vmem:[%s7406_s22 + $0x68] sm:$0xff] }
 0x52c   : > { %v4761_v46 = vadd.f32 %v4745_v47, %v4713_v2 }
 0x52e   : > { %v4770_v38 = vpack.c.bf16 %v4761_v46, %v4760_v5 }
 0x52f   : > { %6508 = vmatmul.mubr.bf16.gmra.mrb[152].mxu1 %v4769_v7 }
 0x530   : > { %6511 = vmatprep.mubr.bf16.mxu1 %v4770_v38 }
 0x537   : > { %6512 = vmatmul.mubr.bf16.gmra.mrb[156].mxu1 %v4771_v16 }
 0x5e8   : > { %v6501_v49 = vpop.f32.mrb[144].mxu1 }
 0x5e9   : > { %v4935_v34 = vadd.f32 %v7071_v57, %v6501_v49  ;;  %v4870_v39 = vpop.f32.mrb[145].mxu1 }
 0x5ea   : > { %v4933_v55 = vadd.f32 %v7072_v1, %v4870_v39  ;;  %v6502_v29 = vpop.f32.mrb[146].mxu1 }
 0x5eb   : > { %4951 = vst [vmem:[%s10425_s18 + $0x10] sm:$0xff] %v4935_v34  ;;  %v4936_v31 = vadd.f32 %v7073_v0, %v6502_v29  ;;  %v4873_v9 = vpop.f32.mrb[147].mxu1 }
 0x5ec   : > { %4949 = vst [vmem:[%s10425_s18] sm:$0xff] %v4933_v55  ;;  %v4934_v45 = vadd.f32 %v7074_v18, %v4873_v9 }
 0x5ed   : > { %4952 = vst [vmem:[%s10425_s18 + $0x18] sm:$0xff] %v4936_v31 }
 0x5ee   : > { %4950 = vst [vmem:[%s10425_s18 + $0x8] sm:$0xff] %v4934_v45 }
 0x5fa   : > { %v6505_v8 = vpop.f32.mrb[148].mxu1 }
 0x5fb   : > { %v4939_v11 = vadd.f32 %v7075_v15, %v6505_v8  ;;  %v4886_v44 = vpop.f32.mrb[149].mxu1 }
 0x5fc   : > { %v4937_v24 = vadd.f32 %v7076_v52, %v4886_v44  ;;  %v6506_v27 = vpop.f32.mrb[150].mxu1 }
 0x5fd   : > { %4955 = vst [vmem:[%s10425_s18 + $0x30] sm:$0xff] %v4939_v11  ;;  %v4940_v33 = vadd.f32 %v7077_v58, %v6506_v27  ;;  %v4889_v36 = vpop.f32.mrb[151].mxu1 }
 0x5fe   : > { %4953 = vst [vmem:[%s10425_s18 + $0x20] sm:$0xff] %v4937_v24  ;;  %v4938_v63 = vadd.f32 %v7078_v35, %v4889_v36 }
 0x5ff   : > { %4956 = vst [vmem:[%s10425_s18 + $0x38] sm:$0xff] %v4940_v33 }
 0x600   : > { %4954 = vst [vmem:[%s10425_s18 + $0x28] sm:$0xff] %v4938_v63 }
 0x602   : > { %v6509_v19 = vpop.f32.mrb[152].mxu1 }
 0x603   : > { %v4943_v51 = vadd.f32 %v7079_v23, %v6509_v19  ;;  %v4902_v4 = vpop.f32.mrb[153].mxu1 }
 0x604   : > { %v4941_v14 = vadd.f32 %v7080_v61, %v4902_v4  ;;  %v6510_v37 = vpop.f32.mrb[154].mxu1 }
 0x605   : > { %4959 = vst [vmem:[%s10425_s18 + $0x50] sm:$0xff] %v4943_v51  ;;  %v4944_v21 = vadd.f32 %v7081_v43, %v6510_v37  ;;  %v4905_v10 = vpop.f32.mrb[155].mxu1 }
 0x606   : > { %4957 = vst [vmem:[%s10425_s18 + $0x40] sm:$0xff] %v4941_v14  ;;  %v4942_v30 = vadd.f32 %v7082_v6, %v4905_v10 }
 0x607   : > { %4960 = vst [vmem:[%s10425_s18 + $0x58] sm:$0xff] %v4944_v21 }
 0x608   : > { %4958 = vst [vmem:[%s10425_s18 + $0x48] sm:$0xff] %v4942_v30 }
 0x60a   : > { %v6513_v50 = vpop.f32.mrb[156].mxu1 }
 0x60b   : > { %v4947_v32 = vadd.f32 %v7083_v25, %v6513_v50  ;;  %v4918_v56 = vpop.f32.mrb[157].mxu1 }
 0x60c   : > { %v4945_v22 = vadd.f32 %v7084_v54, %v4918_v56  ;;  %v6514_v42 = vpop.f32.mrb[158].mxu1 }
 0x60d   : > { %4963 = vst [vmem:[%s10425_s18 + $0x70] sm:$0xff] %v4947_v32  ;;  %v4948_v62 = vadd.f32 %v7085_v40, %v6514_v42  ;;  %v4921_v3 = vpop.f32.mrb[159].mxu1 }
 0x60e   : > { %4961 = vst [vmem:[%s10425_s18 + $0x60] sm:$0xff] %v4945_v22  ;;  %v4946_v17 = vadd.f32 %v7086_v59, %v4921_v3 }
 0x60f   : > { %4964 = vst [vmem:[%s10425_s18 + $0x78] sm:$0xff] %v4948_v62 }
 0x610   : > { %4962 = vst [vmem:[%s10425_s18 + $0x68] sm:$0xff] %v4946_v17 }
 0x611   : > { %7100 = shalt.err (!%p7097_p7)
}
 0x612   : > { %s7101_s22 = scalar_lea.hbm %s10458_s8, 2048  ;;  %s7105_s18 = scalar_lea.hbm %s10515_s7, 4096 }
 0x613   : > { %p7102_p10 = scmp.ne.s32.totalorder %s10458_s8, %s7101_s22  ;;  %p7106_p13 = scmp.lt.u32.totalorder %s10458_s8, %s10515_s7 }
 0x614   : > { %p7107_p0 = scmp.lt.u32.totalorder %s7105_s18, %s7101_s22  ;;  %p7109_p2 = scmp.lt.u32.totalorder %s7101_s22, %s10458_s8 }
 0x615   : > { %p7103_p11 = pnand %p7102_p10, %p7233_p6 }
 0x616   : > { %p7108_p1 = por %p7107_p0, %p7106_p13 }
 0x617   : > { %p7104_p12 = pneg %p7103_p11 }
 0x618   : > { %p7110_p3 = por %p7109_p2, %p7108_p1 }
 0x61a   : > { %p7111_p4 = pnand %p7110_p3, %p7104_p12 }
 0x61c   : > { %7114 = shalt.err (!%p7111_p4)
}
 0x61d   : > { %s7152_s29 = smov 128   ;;  %s7153_s13 = smov 8  }
 0x61e   : > { %6709 = dma.vmem_to_hbm [thread:$0]  (%p7233_p6), %s10460_s20, 2048, %s10458_s8, %s4966_s28, %s7152_s29, %s7152_s29, %s7153_s13  }
 0x61f PF: > { %s4994_s14 = sand.u32 1, %s7137_s24   ;;  %p6712_p5 = pnand %p5061_p9, %p7237_p8 }
 0x620   : > { %s4995_s9 = scalar_lea.sflag [#allocation4], %s4994_s14 }
 0x621   : > { %7132 = dma.done.wait (!%p6712_p5), %s4995_s9, 2048  }
 0x622   : > { %7134 = vsyncadd (!%p6712_p5), %s4995_s9, 4294965248  ;;  %p17_p7 = scmp.ge.s32.totalorder %s7219_s30, 4   ;;  %s11449_s24 = smov %s7141_s25 }
 0x623   : > { %s11450_s25 = smov %s7145_s26  ;;  %s11451_s26 = smov %s7231_s10 }
 0x624   : > { %s11452_s27 = smov %s7219_s30  ;;  %19 = sbr.rel (!%p17_p7) target bundleno = 3 (0x3), region = 137 }
 0x62b   :  { %5000 = vsyncpa [#allocation4], 1 }
 0x62c   :  { %5002 = vsyncpa [#allocation4 + $0x1], 1 }

</bundles_post_ra>
